<compile_context>
chip_gen: v6e
topology: v6e:2x2x1
jax: 0.10.0
libtpu: 0.0.40
codegen_flags: <defaults>
</compile_context>

<pallas_src>
import jax
import jax.numpy as jnp
from jax.experimental import pallas as pl
from jax.experimental.pallas import tpu as pltpu


def _conv3x3_from_padded(pad_ref, w_ref, b_ref, H, W, C):
    """3x3 'same' conv reading a zero-padded (H+2, W+2, C) f32 VMEM scratch.

    w_ref: (3, 3*C, C) bf16 — per-dy weight slabs, ordered dx-major, c_in-minor.
    b_ref: (1, C) f32.
    Returns (H*W, C) float32.
    """
    acc = None
    for dy in range(3):
        # Partial im2col for this dy-row of taps: lane-concat of the three
        # dx-shifted patches -> (H*W, 3C) bf16 operand; only this dy-row is live.
        # W is a multiple of 8, so the (H, W, C)->(H*W, C) reshape is layout-free.
        p = jnp.concatenate(
            [pad_ref[dy:dy + H, dx:dx + W, :].astype(jnp.bfloat16)
                 .reshape(H * W, C)
             for dx in range(3)],
            axis=-1)                                           # (H*W, 3C) bf16
        # One accumulating MXU matmul per dy, f32 accumulation.
        d = jnp.dot(p, w_ref[dy], preferred_element_type=jnp.float32)
        acc = d if acc is None else acc + d
    return acc + b_ref[0]                                      # (H*W, C) f32


def residual_block_kernel(x_ref, w1_ref, b1_ref, w2_ref, b2_ref, alpha_ref,
                          out_ref, pad_ref):
    """One batch element per grid step.

    x_ref    : (1, H, W, C)   unpadded input (NHWC)
    w*_ref   : (3, 3*C, C)    bf16 conv weights, per-dy (dx-major, c_in-minor)
    b*_ref   : (1, C)         f32 conv biases
    alpha_ref: (1, 1) SMEM    shared PReLU slope
    out_ref  : (1, H, W, C)
    pad_ref  : (H+2, W+2, C)  f32 VMEM scratch reused for both padded tensors
    """
    H, W, C = out_ref.shape[1], out_ref.shape[2], out_ref.shape[3]
    f32 = jnp.float32

    # Zero only the 1-pixel border ring.  The interior is fully overwritten
    # below, and doing this every step keeps the kernel correct no matter which
    # TensorCore runs which grid index under "parallel" semantics.
    pad_ref[0:1, :, :] = jnp.zeros((1, W + 2, C), f32)
    pad_ref[H + 1:H + 2, :, :] = jnp.zeros((1, W + 2, C), f32)
    pad_ref[1:1 + H, 0:1, :] = jnp.zeros((H, 1, C), f32)
    pad_ref[1:1 + H, W + 1:W + 2, :] = jnp.zeros((H, 1, C), f32)

    # ---- conv1: pad x inside the kernel (no pre-padded HBM copy) ----
    x = x_ref[0].astype(f32)
    pad_ref[1:1 + H, 1:1 + W, :] = x
    z = _conv3x3_from_padded(pad_ref, w1_ref, b1_ref, H, W, C)   # (H*W, C) f32

    # ---- PReLU (single shared alpha, nn.PReLU() default), f32 on the VPU ----
    alpha = alpha_ref[0, 0]
    h = jnp.where(z >= 0.0, z, alpha * z)

    # ---- conv2: reuse the same scratch (border still zero) ----
    pad_ref[1:1 + H, 1:1 + W, :] = h.reshape(H, W, C)
    y = _conv3x3_from_padded(pad_ref, w2_ref, b2_ref, H, W, C)   # (H*W, C) f32

    # ---- residual add ----
    out_ref[0] = (x + y.reshape(H, W, C)).astype(out_ref.dtype)


def residual_block_nhwc(x_nhwc, w1, b1, alpha, w2, b2):
    """x_nhwc: (N, H, W, C). w*: (3, 3, C, C) HWIO. b*: (C,). alpha: scalar."""
    N, H, W, C = x_nhwc.shape

    # HWIO (3, 3, C_in, C_out) -> per-dy (3*C_in, C_out) slabs (dx-major,
    # c_in-minor), bf16 for the MXU.
    w1r = w1.reshape(3, 3 * C, C).astype(jnp.bfloat16)
    w2r = w2.reshape(3, 3 * C, C).astype(jnp.bfloat16)
    b1r = b1.reshape(1, C).astype(jnp.float32)
    b2r = b2.reshape(1, C).astype(jnp.float32)
    alpha_arr = jnp.full((1, 1), alpha, dtype=jnp.float32)

    return pl.pallas_call(
        residual_block_kernel,
        out_shape=jax.ShapeDtypeStruct((N, H, W, C), x_nhwc.dtype),
        grid_spec=pltpu.PrefetchScalarGridSpec(
            num_scalar_prefetch=0,
            grid=(N,),
            in_specs=[
                pl.BlockSpec((1, H, W, C), lambda n: (n, 0, 0, 0)),
                pl.BlockSpec((3, 3 * C, C), lambda n: (0, 0, 0)),
                pl.BlockSpec((1, C), lambda n: (0, 0)),
                pl.BlockSpec((3, 3 * C, C), lambda n: (0, 0, 0)),
                pl.BlockSpec((1, C), lambda n: (0, 0)),
                pl.BlockSpec((1, 1), lambda n: (0, 0),
                             memory_space=pltpu.MemorySpace.SMEM),
            ],
            out_specs=pl.BlockSpec((1, H, W, C), lambda n: (n, 0, 0, 0)),
            scratch_shapes=[pltpu.VMEM((H + 2, W + 2, C), jnp.float32)],
        ),
        compiler_params=pltpu.CompilerParams(
            dimension_semantics=("parallel",),
            # Demo working set is tiny; 32 MiB is safe on v7x (64 MiB physical)
            # and can be raised on v5e/v6e if larger spatial blocks are adopted.
            vmem_limit_bytes=32 * 1024 * 1024),
    )(x_nhwc, w1r, b1r, w2r, b2r, alpha_arr)


def residual_block(x_nchw, w1, b1, alpha, w2, b2):
    """NCHW compatibility wrapper matching the PyTorch module's layout.

    Callers that already keep activations in NHWC should call
    residual_block_nhwc directly and skip the two transposes.
    """
    x_nhwc = jnp.transpose(x_nchw, (0, 2, 3, 1))
    y = residual_block_nhwc(x_nhwc, w1, b1, alpha, w2, b2)
    return jnp.transpose(y, (0, 3, 1, 2))


def ref_residual_block(x_nchw, w1, b1, alpha, w2, b2):
    """Pure-JAX f32 reference (same semantics as the PyTorch module)."""
    x = jnp.transpose(x_nchw, (0, 2, 3, 1))

    def conv(v, w, b):
        y = jax.lax.conv_general_dilated(
            v, w, window_strides=(1, 1), padding='SAME',
            dimension_numbers=('NHWC', 'HWIO', 'NHWC'))
        return y + b

    h = conv(x, w1, b1)
    h = jnp.where(h >= 0.0, h, alpha * h)
    y = conv(h, w2, b2)
    return jnp.transpose(x + y, (0, 3, 1, 2))


if __name__ == "__main__":
    key = jax.random.PRNGKey(0)
    k_x, k_w1, k_b1, k_w2, k_b2 = jax.random.split(key, 5)

    # Small but representative: SRGAN residual blocks run at 64 features.
    N, C, H, W = 2, 64, 16, 16
    x = jax.random.normal(k_x, (N, C, H, W), dtype=jnp.float32)

    # Weights stored directly in HWIO = (kh, kw, C_in, C_out).
    w1 = 0.1 * jax.random.normal(k_w1, (3, 3, C, C), dtype=jnp.float32)
    b1 = 0.1 * jax.random.normal(k_b1, (C,), dtype=jnp.float32)
    w2 = 0.1 * jax.random.normal(k_w2, (3, 3, C, C), dtype=jnp.float32)
    b2 = 0.1 * jax.random.normal(k_b2, (C,), dtype=jnp.float32)
    alpha = 0.25                        # nn.PReLU() default single parameter

    out = residual_block(x, w1, b1, alpha, w2, b2)
    out = jax.block_until_ready(out)

    ref = ref_residual_block(x, w1, b1, alpha, w2, b2)
    assert out.shape == (N, C, H, W)
    max_err = float(jnp.max(jnp.abs(out - ref)))
    # bf16 MXU operands with f32 accumulation vs the f32 reference:
    # expected |err| ~ fan-in(576) * 2^-9 * operand magnitudes ~ a few 1e-2 at
    # these scales (ref std ~ 4), so validate with a bf16-appropriate tolerance.
    assert jnp.allclose(out, ref, atol=1e-1, rtol=1e-2), (
        f"mismatch vs. reference, max abs err {max_err}")

    print("KERNEL_OK")
</pallas_src>

<mosaic_0001>
module attributes {stable_mosaic.version = 11 : i64} {
  func.func @residual_block_kernel(%arg0: i32, %arg1: memref<1x16x16x64xf32, #tpu.memory_space<vmem>>, %arg2: memref<3x192x64xbf16, #tpu.memory_space<vmem>>, %arg3: memref<1x64xf32, #tpu.memory_space<vmem>>, %arg4: memref<3x192x64xbf16, #tpu.memory_space<vmem>>, %arg5: memref<1x64xf32, #tpu.memory_space<vmem>>, %arg6: memref<1x1xf32, #tpu.memory_space<smem>>, %arg7: memref<1x16x16x64xf32, #tpu.memory_space<vmem>>, %arg8: memref<18x18x64xf32, #tpu.memory_space<vmem>>) attributes {dimension_semantics = [#tpu.dimension_semantics<parallel>], iteration_bounds = array<i64: 2>, scalar_prefetch = 0 : i64, scratch_operands = 1 : i64, tpu.core_type = #tpu.core_type<tc>, window_params = [{transform_indices = @transform_0, window_bounds = array<i64: 1, 16, 16, 64>}, {pipeline_mode = #tpu.pipeline_mode<synchronous>, transform_indices = @transform_1, window_bounds = array<i64: 3, 192, 64>}, {pipeline_mode = #tpu.pipeline_mode<synchronous>, transform_indices = @transform_2, window_bounds = array<i64: 1, 64>}, {pipeline_mode = #tpu.pipeline_mode<synchronous>, transform_indices = @transform_3, window_bounds = array<i64: 3, 192, 64>}, {pipeline_mode = #tpu.pipeline_mode<synchronous>, transform_indices = @transform_4, window_bounds = array<i64: 1, 64>}, {transform_indices = @transform_5, window_bounds = array<i64: 1, 1>}, {transform_indices = @transform_6, window_bounds = array<i64: 1, 16, 16, 64>}]} {
    %cst = arith.constant 0.000000e+00 : f32
    %0 = vector.broadcast %cst : f32 to vector<1x18x64xf32>
    %c0 = arith.constant 0 : index
    %c0_0 = arith.constant 0 : index
    %c0_1 = arith.constant 0 : index
    %1 = vector.load %arg8[%c0, %c0_0, %c0_1] : memref<18x18x64xf32, #tpu.memory_space<vmem>>, vector<1x18x64xf32>
    tpu.vector_store %arg8[%c0, %c0_0, %c0_1], %0 {strides = array<i32>} : memref<18x18x64xf32, #tpu.memory_space<vmem>>, vector<1x18x64xf32>,
    %cst_2 = arith.constant 0.000000e+00 : f32
    %2 = vector.broadcast %cst_2 : f32 to vector<1x18x64xf32>
    %c17 = arith.constant 17 : index
    %c0_3 = arith.constant 0 : index
    %c0_4 = arith.constant 0 : index
    %3 = vector.load %arg8[%c17, %c0_3, %c0_4] : memref<18x18x64xf32, #tpu.memory_space<vmem>>, vector<1x18x64xf32>
    tpu.vector_store %arg8[%c17, %c0_3, %c0_4], %2 {strides = array<i32>} : memref<18x18x64xf32, #tpu.memory_space<vmem>>, vector<1x18x64xf32>,
    %cst_5 = arith.constant 0.000000e+00 : f32
    %4 = vector.broadcast %cst_5 : f32 to vector<16x1x64xf32>
    %c1 = arith.constant 1 : index
    %c0_6 = arith.constant 0 : index
    %c0_7 = arith.constant 0 : index
    %5 = vector.load %arg8[%c1, %c0_6, %c0_7] : memref<18x18x64xf32, #tpu.memory_space<vmem>>, vector<16x1x64xf32>
    tpu.vector_store %arg8[%c1, %c0_6, %c0_7], %4 {strides = array<i32>} : memref<18x18x64xf32, #tpu.memory_space<vmem>>, vector<16x1x64xf32>,
    %cst_8 = arith.constant 0.000000e+00 : f32
    %6 = vector.broadcast %cst_8 : f32 to vector<16x1x64xf32>
    %c1_9 = arith.constant 1 : index
    %c17_10 = arith.constant 17 : index
    %c0_11 = arith.constant 0 : index
    %7 = vector.load %arg8[%c1_9, %c17_10, %c0_11] : memref<18x18x64xf32, #tpu.memory_space<vmem>>, vector<16x1x64xf32>
    tpu.vector_store %arg8[%c1_9, %c17_10, %c0_11], %6 {strides = array<i32>} : memref<18x18x64xf32, #tpu.memory_space<vmem>>, vector<16x1x64xf32>,
    %c0_12 = arith.constant 0 : index
    %c0_13 = arith.constant 0 : index
    %c0_14 = arith.constant 0 : index
    %c0_15 = arith.constant 0 : index
    %8 = vector.load %arg1[%c0_12, %c0_13, %c0_14, %c0_15] : memref<1x16x16x64xf32, #tpu.memory_space<vmem>>, vector<1x16x16x64xf32>
    %9 = vector.shape_cast %8 : vector<1x16x16x64xf32> to vector<16x16x64xf32>
    %c1_16 = arith.constant 1 : index
    %c1_17 = arith.constant 1 : index
    %c0_18 = arith.constant 0 : index
    %10 = vector.load %arg8[%c1_16, %c1_17, %c0_18] : memref<18x18x64xf32, #tpu.memory_space<vmem>>, vector<16x16x64xf32>
    tpu.vector_store %arg8[%c1_16, %c1_17, %c0_18], %9 {strides = array<i32>} : memref<18x18x64xf32, #tpu.memory_space<vmem>>, vector<16x16x64xf32>,
    %c0_19 = arith.constant 0 : index
    %c0_20 = arith.constant 0 : index
    %c0_21 = arith.constant 0 : index
    %11 = vector.load %arg8[%c0_19, %c0_20, %c0_21] : memref<18x18x64xf32, #tpu.memory_space<vmem>>, vector<16x16x64xf32>
    %12 = arith.truncf %11 : vector<16x16x64xf32> to vector<16x16x64xbf16>
    %13 = vector.shape_cast %12 : vector<16x16x64xbf16> to vector<256x64xbf16>
    %c0_22 = arith.constant 0 : index
    %c1_23 = arith.constant 1 : index
    %c0_24 = arith.constant 0 : index
    %14 = vector.load %arg8[%c0_22, %c1_23, %c0_24] : memref<18x18x64xf32, #tpu.memory_space<vmem>>, vector<16x16x64xf32>
    %15 = arith.truncf %14 : vector<16x16x64xf32> to vector<16x16x64xbf16>
    %16 = vector.shape_cast %15 : vector<16x16x64xbf16> to vector<256x64xbf16>
    %c0_25 = arith.constant 0 : index
    %c2 = arith.constant 2 : index
    %c0_26 = arith.constant 0 : index
    %17 = vector.load %arg8[%c0_25, %c2, %c0_26] : memref<18x18x64xf32, #tpu.memory_space<vmem>>, vector<16x16x64xf32>
    %18 = arith.truncf %17 : vector<16x16x64xf32> to vector<16x16x64xbf16>
    %19 = vector.shape_cast %18 : vector<16x16x64xbf16> to vector<256x64xbf16>
    %20 = tpu.concatenate %13, %16, %19 in 1 : vector<256x64xbf16>, vector<256x64xbf16>, vector<256x64xbf16> -> vector<256x192xbf16>
    %c0_27 = arith.constant 0 : index
    %c0_28 = arith.constant 0 : index
    %c0_29 = arith.constant 0 : index
    %21 = vector.load %arg2[%c0_27, %c0_28, %c0_29] : memref<3x192x64xbf16, #tpu.memory_space<vmem>>, vector<1x192x64xbf16>
    %22 = vector.shape_cast %21 : vector<1x192x64xbf16> to vector<192x64xbf16>
    %cst_30 = arith.constant dense<0.000000e+00> : vector<256x64xf32>
    %23 = tpu.matmul %20, %22, %cst_30 {dimension_numbers = #tpu.dot_dimension_numbers<[1], [0], [0], [1], [0, 0, 1, 1], [], []>} : vector<256x192xbf16>, vector<192x64xbf16>, vector<256x64xf32> -> vector<256x64xf32>
    %c1_31 = arith.constant 1 : index
    %c0_32 = arith.constant 0 : index
    %c0_33 = arith.constant 0 : index
    %24 = vector.load %arg8[%c1_31, %c0_32, %c0_33] : memref<18x18x64xf32, #tpu.memory_space<vmem>>, vector<16x16x64xf32>
    %25 = arith.truncf %24 : vector<16x16x64xf32> to vector<16x16x64xbf16>
    %26 = vector.shape_cast %25 : vector<16x16x64xbf16> to vector<256x64xbf16>
    %c1_34 = arith.constant 1 : index
    %c1_35 = arith.constant 1 : index
    %c0_36 = arith.constant 0 : index
    %27 = vector.load %arg8[%c1_34, %c1_35, %c0_36] : memref<18x18x64xf32, #tpu.memory_space<vmem>>, vector<16x16x64xf32>
    %28 = arith.truncf %27 : vector<16x16x64xf32> to vector<16x16x64xbf16>
    %29 = vector.shape_cast %28 : vector<16x16x64xbf16> to vector<256x64xbf16>
    %c1_37 = arith.constant 1 : index
    %c2_38 = arith.constant 2 : index
    %c0_39 = arith.constant 0 : index
    %30 = vector.load %arg8[%c1_37, %c2_38, %c0_39] : memref<18x18x64xf32, #tpu.memory_space<vmem>>, vector<16x16x64xf32>
    %31 = arith.truncf %30 : vector<16x16x64xf32> to vector<16x16x64xbf16>
    %32 = vector.shape_cast %31 : vector<16x16x64xbf16> to vector<256x64xbf16>
    %33 = tpu.concatenate %26, %29, %32 in 1 : vector<256x64xbf16>, vector<256x64xbf16>, vector<256x64xbf16> -> vector<256x192xbf16>
    %c1_40 = arith.constant 1 : index
    %c0_41 = arith.constant 0 : index
    %c0_42 = arith.constant 0 : index
    %34 = vector.load %arg2[%c1_40, %c0_41, %c0_42] : memref<3x192x64xbf16, #tpu.memory_space<vmem>>, vector<1x192x64xbf16>
    %35 = vector.shape_cast %34 : vector<1x192x64xbf16> to vector<192x64xbf16>
    %cst_43 = arith.constant dense<0.000000e+00> : vector<256x64xf32>
    %36 = tpu.matmul %33, %35, %cst_43 {dimension_numbers = #tpu.dot_dimension_numbers<[1], [0], [0], [1], [0, 0, 1, 1], [], []>} : vector<256x192xbf16>, vector<192x64xbf16>, vector<256x64xf32> -> vector<256x64xf32>
    %37 = arith.addf %23, %36 : vector<256x64xf32>
    %c2_44 = arith.constant 2 : index
    %c0_45 = arith.constant 0 : index
    %c0_46 = arith.constant 0 : index
    %38 = vector.load %arg8[%c2_44, %c0_45, %c0_46] : memref<18x18x64xf32, #tpu.memory_space<vmem>>, vector<16x16x64xf32>
    %39 = arith.truncf %38 : vector<16x16x64xf32> to vector<16x16x64xbf16>
    %40 = vector.shape_cast %39 : vector<16x16x64xbf16> to vector<256x64xbf16>
    %c2_47 = arith.constant 2 : index
    %c1_48 = arith.constant 1 : index
    %c0_49 = arith.constant 0 : index
    %41 = vector.load %arg8[%c2_47, %c1_48, %c0_49] : memref<18x18x64xf32, #tpu.memory_space<vmem>>, vector<16x16x64xf32>
    %42 = arith.truncf %41 : vector<16x16x64xf32> to vector<16x16x64xbf16>
    %43 = vector.shape_cast %42 : vector<16x16x64xbf16> to vector<256x64xbf16>
    %c2_50 = arith.constant 2 : index
    %c2_51 = arith.constant 2 : index
    %c0_52 = arith.constant 0 : index
    %44 = vector.load %arg8[%c2_50, %c2_51, %c0_52] : memref<18x18x64xf32, #tpu.memory_space<vmem>>, vector<16x16x64xf32>
    %45 = arith.truncf %44 : vector<16x16x64xf32> to vector<16x16x64xbf16>
    %46 = vector.shape_cast %45 : vector<16x16x64xbf16> to vector<256x64xbf16>
    %47 = tpu.concatenate %40, %43, %46 in 1 : vector<256x64xbf16>, vector<256x64xbf16>, vector<256x64xbf16> -> vector<256x192xbf16>
    %c2_53 = arith.constant 2 : index
    %c0_54 = arith.constant 0 : index
    %c0_55 = arith.constant 0 : index
    %48 = vector.load %arg2[%c2_53, %c0_54, %c0_55] : memref<3x192x64xbf16, #tpu.memory_space<vmem>>, vector<1x192x64xbf16>
    %49 = vector.shape_cast %48 : vector<1x192x64xbf16> to vector<192x64xbf16>
    %cst_56 = arith.constant dense<0.000000e+00> : vector<256x64xf32>
    %50 = tpu.matmul %47, %49, %cst_56 {dimension_numbers = #tpu.dot_dimension_numbers<[1], [0], [0], [1], [0, 0, 1, 1], [], []>} : vector<256x192xbf16>, vector<192x64xbf16>, vector<256x64xf32> -> vector<256x64xf32>
    %51 = arith.addf %37, %50 : vector<256x64xf32>
    %c0_57 = arith.constant 0 : index
    %c0_58 = arith.constant 0 : index
    %52 = vector.load %arg3[%c0_57, %c0_58] : memref<1x64xf32, #tpu.memory_space<vmem>>, vector<1x64xf32>
    %53 = vector.shape_cast %52 : vector<1x64xf32> to vector<64xf32>
    %54 = vector.shape_cast %53 : vector<64xf32> to vector<1x64xf32>
    %55 = vector.broadcast %54 : vector<1x64xf32> to vector<256x64xf32>
    %56 = arith.addf %51, %55 : vector<256x64xf32>
    %c0_59 = arith.constant 0 : index
    %c0_60 = arith.constant 0 : index
    %57 = memref.load %arg6[%c0_59, %c0_60] : memref<1x1xf32, #tpu.memory_space<smem>>
    %cst_61 = arith.constant 0.000000e+00 : f32
    %58 = vector.broadcast %cst_61 : f32 to vector<256x64xf32>
    %59 = arith.cmpf oge, %56, %58 : vector<256x64xf32>
    %60 = vector.broadcast %57 : f32 to vector<256x64xf32>
    %61 = arith.mulf %60, %56 : vector<256x64xf32>
    %62 = arith.select %59, %56, %61 : vector<256x64xi1>, vector<256x64xf32>
    %63 = vector.shape_cast %62 : vector<256x64xf32> to vector<16x16x64xf32>
    %c1_62 = arith.constant 1 : index
    %c1_63 = arith.constant 1 : index
    %c0_64 = arith.constant 0 : index
    %64 = vector.load %arg8[%c1_62, %c1_63, %c0_64] : memref<18x18x64xf32, #tpu.memory_space<vmem>>, vector<16x16x64xf32>
    tpu.vector_store %arg8[%c1_62, %c1_63, %c0_64], %63 {strides = array<i32>} : memref<18x18x64xf32, #tpu.memory_space<vmem>>, vector<16x16x64xf32>,
    %c0_65 = arith.constant 0 : index
    %c0_66 = arith.constant 0 : index
    %c0_67 = arith.constant 0 : index
    %65 = vector.load %arg8[%c0_65, %c0_66, %c0_67] : memref<18x18x64xf32, #tpu.memory_space<vmem>>, vector<16x16x64xf32>
    %66 = arith.truncf %65 : vector<16x16x64xf32> to vector<16x16x64xbf16>
    %67 = vector.shape_cast %66 : vector<16x16x64xbf16> to vector<256x64xbf16>
    %c0_68 = arith.constant 0 : index
    %c1_69 = arith.constant 1 : index
    %c0_70 = arith.constant 0 : index
    %68 = vector.load %arg8[%c0_68, %c1_69, %c0_70] : memref<18x18x64xf32, #tpu.memory_space<vmem>>, vector<16x16x64xf32>
    %69 = arith.truncf %68 : vector<16x16x64xf32> to vector<16x16x64xbf16>
    %70 = vector.shape_cast %69 : vector<16x16x64xbf16> to vector<256x64xbf16>
    %c0_71 = arith.constant 0 : index
    %c2_72 = arith.constant 2 : index
    %c0_73 = arith.constant 0 : index
    %71 = vector.load %arg8[%c0_71, %c2_72, %c0_73] : memref<18x18x64xf32, #tpu.memory_space<vmem>>, vector<16x16x64xf32>
    %72 = arith.truncf %71 : vector<16x16x64xf32> to vector<16x16x64xbf16>
    %73 = vector.shape_cast %72 : vector<16x16x64xbf16> to vector<256x64xbf16>
    %74 = tpu.concatenate %67, %70, %73 in 1 : vector<256x64xbf16>, vector<256x64xbf16>, vector<256x64xbf16> -> vector<256x192xbf16>
    %c0_74 = arith.constant 0 : index
    %c0_75 = arith.constant 0 : index
    %c0_76 = arith.constant 0 : index
    %75 = vector.load %arg4[%c0_74, %c0_75, %c0_76] : memref<3x192x64xbf16, #tpu.memory_space<vmem>>, vector<1x192x64xbf16>
    %76 = vector.shape_cast %75 : vector<1x192x64xbf16> to vector<192x64xbf16>
    %cst_77 = arith.constant dense<0.000000e+00> : vector<256x64xf32>
    %77 = tpu.matmul %74, %76, %cst_77 {dimension_numbers = #tpu.dot_dimension_numbers<[1], [0], [0], [1], [0, 0, 1, 1], [], []>} : vector<256x192xbf16>, vector<192x64xbf16>, vector<256x64xf32> -> vector<256x64xf32>
    %c1_78 = arith.constant 1 : index
    %c0_79 = arith.constant 0 : index
    %c0_80 = arith.constant 0 : index
    %78 = vector.load %arg8[%c1_78, %c0_79, %c0_80] : memref<18x18x64xf32, #tpu.memory_space<vmem>>, vector<16x16x64xf32>
    %79 = arith.truncf %78 : vector<16x16x64xf32> to vector<16x16x64xbf16>
    %80 = vector.shape_cast %79 : vector<16x16x64xbf16> to vector<256x64xbf16>
    %c1_81 = arith.constant 1 : index
    %c1_82 = arith.constant 1 : index
    %c0_83 = arith.constant 0 : index
    %81 = vector.load %arg8[%c1_81, %c1_82, %c0_83] : memref<18x18x64xf32, #tpu.memory_space<vmem>>, vector<16x16x64xf32>
    %82 = arith.truncf %81 : vector<16x16x64xf32> to vector<16x16x64xbf16>
    %83 = vector.shape_cast %82 : vector<16x16x64xbf16> to vector<256x64xbf16>
    %c1_84 = arith.constant 1 : index
    %c2_85 = arith.constant 2 : index
    %c0_86 = arith.constant 0 : index
    %84 = vector.load %arg8[%c1_84, %c2_85, %c0_86] : memref<18x18x64xf32, #tpu.memory_space<vmem>>, vector<16x16x64xf32>
    %85 = arith.truncf %84 : vector<16x16x64xf32> to vector<16x16x64xbf16>
    %86 = vector.shape_cast %85 : vector<16x16x64xbf16> to vector<256x64xbf16>
    %87 = tpu.concatenate %80, %83, %86 in 1 : vector<256x64xbf16>, vector<256x64xbf16>, vector<256x64xbf16> -> vector<256x192xbf16>
    %c1_87 = arith.constant 1 : index
    %c0_88 = arith.constant 0 : index
    %c0_89 = arith.constant 0 : index
    %88 = vector.load %arg4[%c1_87, %c0_88, %c0_89] : memref<3x192x64xbf16, #tpu.memory_space<vmem>>, vector<1x192x64xbf16>
    %89 = vector.shape_cast %88 : vector<1x192x64xbf16> to vector<192x64xbf16>
    %cst_90 = arith.constant dense<0.000000e+00> : vector<256x64xf32>
    %90 = tpu.matmul %87, %89, %cst_90 {dimension_numbers = #tpu.dot_dimension_numbers<[1], [0], [0], [1], [0, 0, 1, 1], [], []>} : vector<256x192xbf16>, vector<192x64xbf16>, vector<256x64xf32> -> vector<256x64xf32>
    %91 = arith.addf %77, %90 : vector<256x64xf32>
    %c2_91 = arith.constant 2 : index
    %c0_92 = arith.constant 0 : index
    %c0_93 = arith.constant 0 : index
    %92 = vector.load %arg8[%c2_91, %c0_92, %c0_93] : memref<18x18x64xf32, #tpu.memory_space<vmem>>, vector<16x16x64xf32>
    %93 = arith.truncf %92 : vector<16x16x64xf32> to vector<16x16x64xbf16>
    %94 = vector.shape_cast %93 : vector<16x16x64xbf16> to vector<256x64xbf16>
    %c2_94 = arith.constant 2 : index
    %c1_95 = arith.constant 1 : index
    %c0_96 = arith.constant 0 : index
    %95 = vector.load %arg8[%c2_94, %c1_95, %c0_96] : memref<18x18x64xf32, #tpu.memory_space<vmem>>, vector<16x16x64xf32>
    %96 = arith.truncf %95 : vector<16x16x64xf32> to vector<16x16x64xbf16>
    %97 = vector.shape_cast %96 : vector<16x16x64xbf16> to vector<256x64xbf16>
    %c2_97 = arith.constant 2 : index
    %c2_98 = arith.constant 2 : index
    %c0_99 = arith.constant 0 : index
    %98 = vector.load %arg8[%c2_97, %c2_98, %c0_99] : memref<18x18x64xf32, #tpu.memory_space<vmem>>, vector<16x16x64xf32>
    %99 = arith.truncf %98 : vector<16x16x64xf32> to vector<16x16x64xbf16>
    %100 = vector.shape_cast %99 : vector<16x16x64xbf16> to vector<256x64xbf16>
    %101 = tpu.concatenate %94, %97, %100 in 1 : vector<256x64xbf16>, vector<256x64xbf16>, vector<256x64xbf16> -> vector<256x192xbf16>
    %c2_100 = arith.constant 2 : index
    %c0_101 = arith.constant 0 : index
    %c0_102 = arith.constant 0 : index
    %102 = vector.load %arg4[%c2_100, %c0_101, %c0_102] : memref<3x192x64xbf16, #tpu.memory_space<vmem>>, vector<1x192x64xbf16>
    %103 = vector.shape_cast %102 : vector<1x192x64xbf16> to vector<192x64xbf16>
    %cst_103 = arith.constant dense<0.000000e+00> : vector<256x64xf32>
    %104 = tpu.matmul %101, %103, %cst_103 {dimension_numbers = #tpu.dot_dimension_numbers<[1], [0], [0], [1], [0, 0, 1, 1], [], []>} : vector<256x192xbf16>, vector<192x64xbf16>, vector<256x64xf32> -> vector<256x64xf32>
    %105 = arith.addf %91, %104 : vector<256x64xf32>
    %c0_104 = arith.constant 0 : index
    %c0_105 = arith.constant 0 : index
    %106 = vector.load %arg5[%c0_104, %c0_105] : memref<1x64xf32, #tpu.memory_space<vmem>>, vector<1x64xf32>
    %107 = vector.shape_cast %106 : vector<1x64xf32> to vector<64xf32>
    %108 = vector.shape_cast %107 : vector<64xf32> to vector<1x64xf32>
    %109 = vector.broadcast %108 : vector<1x64xf32> to vector<256x64xf32>
    %110 = arith.addf %105, %109 : vector<256x64xf32>
    %111 = vector.shape_cast %110 : vector<256x64xf32> to vector<16x16x64xf32>
    %112 = arith.addf %9, %111 : vector<16x16x64xf32>
    %c0_106 = arith.constant 0 : index
    %c0_107 = arith.constant 0 : index
    %c0_108 = arith.constant 0 : index
    %c0_109 = arith.constant 0 : index
    %113 = vector.load %arg7[%c0_106, %c0_107, %c0_108, %c0_109] : memref<1x16x16x64xf32, #tpu.memory_space<vmem>>, vector<1x16x16x64xf32>
    %114 = vector.shape_cast %113 : vector<1x16x16x64xf32> to vector<16x16x64xf32>
    %115 = vector.shape_cast %112 : vector<16x16x64xf32> to vector<1x16x16x64xf32>
    tpu.vector_store %arg7[%c0_106, %c0_107, %c0_108, %c0_109], %115 {strides = array<i32>} : memref<1x16x16x64xf32, #tpu.memory_space<vmem>>, vector<1x16x16x64xf32>,
    return
  }
  func.func @transform_0(%arg0: i32) -> (i32, i32, i32, i32) {
    %c0_i32 = arith.constant 0 : i32
    %c0_i32_0 = arith.constant 0 : i32
    %c0_i32_1 = arith.constant 0 : i32
    %c0_i32_2 = arith.constant 0 : i32
    return %arg0, %c0_i32, %c0_i32_0, %c0_i32_1 : i32, i32, i32, i32
  }
  func.func @transform_1(%arg0: i32) -> (i32, i32, i32) {
    %c0_i32 = arith.constant 0 : i32
    %c0_i32_0 = arith.constant 0 : i32
    %c0_i32_1 = arith.constant 0 : i32
    %c0_i32_2 = arith.constant 0 : i32
    return %c0_i32, %c0_i32_0, %c0_i32_1 : i32, i32, i32
  }
  func.func @transform_2(%arg0: i32) -> (i32, i32) {
    %c0_i32 = arith.constant 0 : i32
    %c0_i32_0 = arith.constant 0 : i32
    %c0_i32_1 = arith.constant 0 : i32
    return %c0_i32, %c0_i32_0 : i32, i32
  }
  func.func @transform_3(%arg0: i32) -> (i32, i32, i32) {
    %c0_i32 = arith.constant 0 : i32
    %c0_i32_0 = arith.constant 0 : i32
    %c0_i32_1 = arith.constant 0 : i32
    %c0_i32_2 = arith.constant 0 : i32
    return %c0_i32, %c0_i32_0, %c0_i32_1 : i32, i32, i32
  }
  func.func @transform_4(%arg0: i32) -> (i32, i32) {
    %c0_i32 = arith.constant 0 : i32
    %c0_i32_0 = arith.constant 0 : i32
    %c0_i32_1 = arith.constant 0 : i32
    return %c0_i32, %c0_i32_0 : i32, i32
  }
  func.func @transform_5(%arg0: i32) -> (i32, i32) {
    %c0_i32 = arith.constant 0 : i32
    %c0_i32_0 = arith.constant 0 : i32
    %c0_i32_1 = arith.constant 0 : i32
    return %c0_i32, %c0_i32_0 : i32, i32
  }
  func.func @transform_6(%arg0: i32) -> (i32, i32, i32, i32) {
    %c0_i32 = arith.constant 0 : i32
    %c0_i32_0 = arith.constant 0 : i32
    %c0_i32_1 = arith.constant 0 : i32
    %c0_i32_2 = arith.constant 0 : i32
    return %arg0, %c0_i32, %c0_i32_0, %c0_i32_1 : i32, i32, i32, i32
  }
}

</mosaic_0001>

<bundles_post_ra>
// kernel: tpu_custom_call.1
= control target key start
LH: loop header
LB: loop body
LE: loop exit
PB: predicated region body
PF: predicated region fallthrough
CT: control target
= control target key end

     0   :  { %s6471_s0 = inlined_call_operand.vmem [shape: f32[2,16,16,64], index: 0, kind: input, shape index: {}]   ;;  %s6472_s1 = inlined_call_operand.vmem [shape: bf16[3,192,64], index: 1, kind: input, shape index: {}]   ;;  %s6473_s2 = inlined_call_operand.vmem [shape: f32[1,64], index: 2, kind: input, shape index: {}]   ;;  %s6474_s3 = inlined_call_operand.vmem [shape: bf16[3,192,64], index: 3, kind: input, shape index: {}]   ;;  %s6475_s4 = inlined_call_operand.vmem [shape: f32[1,64], index: 4, kind: input, shape index: {}]   ;;  %s6476_s5 = inlined_call_operand.<no memory space> [shape: f32[1,1], index: 5, kind: input, shape index: {}]   ;;  %s6477_s6 = inlined_call_operand.hbm [shape: f32[2,16,16,64], index: 6, kind: output, shape index: {}]  }
   0x1   :  { %11 = sst [smem:[#allocation3]] %s6476_s5 }
   0x2   :  { %12 = vsyncpa [#allocation5], 0 }
   0x3   :  { %14 = vsyncpa [#allocation5 + $0x1], 0  ;;  %s4644_s23 = smov 0   ;;  %s4646_s24 = smov 0  }
   0x4   :  { %s4648_s25 = smov 0   ;;  %s4650_s26 = smov 0  }
   0x5 LB: > { %s4665_s5 = sadd.s32 4294967295, %s4598_s26   ;;  %s4142_s27 = sadd.s32 4294967294, %s4598_s26   ;;  %s4598_s26 = sphi %s4650_s26, %s6537_s26   ;;  %s4594_s25 = sphi %s4648_s25, %s6536_s25   ;;  %s4590_s24 = sphi %s4646_s24, %s6535_s24   ;;  %s4586_s23 = sphi %s4644_s23, %s6534_s23  }
   0x6   : > { %s4669_s28 = sadd.s32 1, %s4598_s26   ;;  %s158_s29 = sadd.s32 1, %s4594_s25 }
   0x7   : > { %s155_s30 = ssub.s32 %s4598_s26, %s4669_s28  ;;  %p168_p0 = scmp.ne.s32.totalorder %s4594_s25, %s4590_s24 }
   0x8   : > { %p156_p1 = scmp.eq.s32.totalorder %s155_s30, 0  ;;  %p169_p2 = scmp.eq.s32.totalorder %s4665_s5, 1 }
   0x9   : > { %p174_p3 = scmp.ne.s32.totalorder %s4590_s24, %s4586_s23  ;;  %p175_p4 = scmp.eq.s32.totalorder %s4142_s27, 1 }
   0xa   : > { %s4680_s7 = scalar_select %p156_p1, %s4594_s25, %s158_s29  }
   0xb   : > { %p4682_p5 = por %p169_p2, %p168_p0  ;;  %p4686_p6 = por %p175_p4, %p174_p3 }
   0xc   : > { %p4145_p7 = scmp.ge.s32.totalorder %s4598_s26, 1  ;;  %p216_p8 = scmp.lt.s32.totalorder %s4598_s26, 3 }
   0xe   : > { %p217_p9 = pnand %p4145_p7, %p216_p8 }
  0x10   : > { %220 = sbr.rel (%p217_p9) target bundleno = 1091 (0x443), region = 44 }
  0x15   : > { %p246_p10 = scmp.lt.s32.totalorder %s4665_s5, 1  ;;  %vm252_vm0 = vcmask 523264   ;;  %vm255_vm1 = vcmask 517120   ;;  %v4600_v0 = vmov 0.0   ;;  %v6478_v1 = vmov 0   ;;  %v4466_v2 = vld [vmem:[%s6472_s1 + $0x98] sm:$0xff]  }
  0x16   : > { %253 = vst.msk [vmem:[#allocation2] sm:$0xff] %vm252_vm0, %v4600_v0  ;;  %254 = vst.msk [vmem:[#allocation2 + $0x8] sm:$0xff] %vm252_vm0, %v4600_v0  ;;  %1040 = vmatprep.subr.bf16.mxu0 %v6478_v1  ;;  %1321 = vmatprep.subr.bf16.mxu1 %v6478_v1  ;;  %vm262_vm2 = vcmask 516096   ;;  %v4467_v3 = vld [vmem:[%s6472_s1 + $0x90] sm:$0xff]   ;;  %v4468_v4 = vld [vmem:[%s6472_s1 + $0x88] sm:$0xff]   ;;  %s4602_s30 = smov 64  }
  0x17   : > { %256 = vst.msk [vmem:[#allocation2 + $0x10] sm:$0x3] %vm255_vm1, %v4600_v0  ;;  %260 = vst.msk [vmem:[#allocation2 + $0x1a8] sm:$0x3] %vm255_vm1, %v4600_v0  ;;  %s4705_s12 = scalar_select %p246_p10, %s4665_s5, 1  ;;  %1041 = vmatpush1.bf16.msra.mxu0 %v4466_v2  ;;  %v4469_v17 = vld [vmem:[%s6472_s1 + $0x80] sm:$0xff]  }
  0x18   : > { %258 = vst.msk [vmem:[#allocation2 + $0x198] sm:$0xff] %vm252_vm0, %v4600_v0  ;;  %259 = vst.msk [vmem:[#allocation2 + $0x1a0] sm:$0xff] %vm252_vm0, %v4600_v0  ;;  %1042 = vmatprep.subr.bf16.mxu0 %v6478_v1  ;;  %v4470_v33 = vld [vmem:[%s6472_s1 + $0x78] sm:$0xff]   ;;  %v4471_v52 = vld [vmem:[%s6472_s1 + $0x70] sm:$0xff]   ;;  %s4421_s17 = sshll.u32 %s4665_s5, 12  ;;  %s4603_s27 = smov [#allocation4]  }
  0x19   : > { %279 = vst.msk [vmem:[#allocation2 + $0x29] sm:$0x1] %vm262_vm2, %v4600_v0  ;;  %263 = vst.msk [vmem:[#allocation2 + $0x18] sm:$0x1] %vm262_vm2, %v4600_v0  ;;  %s4420_s15 = sshll.u32 %s4705_s12, 8  ;;  %v4472_v58 = vld [vmem:[%s6472_s1 + $0x68] sm:$0xff]   ;;  %s6422_s21 = scalar_lea.hbm %s6477_s6, %s4421_s17 }
  0x1a   : > { %264 = vst.msk [vmem:[#allocation2 + $0x30] sm:$0x1] %vm262_vm2, %v4600_v0  ;;  %265 = vst.msk [vmem:[#allocation2 + $0x48] sm:$0x1] %vm262_vm2, %v4600_v0  ;;  %s4747_s18 = scalar_lea.vmem %s6471_s0, %s4420_s15  ;;  %v4475_v63 = vld [vmem:[%s6472_s1 + $0x38] sm:$0xff]   ;;  %s4542_s29 = sshll.u32 %s4603_s27, 4  ;;  %s4543_s29 = int_to_ptr.vmem [resolvable:$false] %s4542_s29 }
  0x1b   : > { %266 = vst.msk [vmem:[#allocation2 + $0x60] sm:$0x1] %vm262_vm2, %v4600_v0  ;;  %267 = vst.msk [vmem:[#allocation2 + $0x78] sm:$0x1] %vm262_vm2, %v4600_v0  ;;  %v4753_v5 = vld [vmem:[%s4747_s18] sm:$0xff]  ;;  %v4756_v6 = vld [vmem:[%s4747_s18 + $0x8] sm:$0xff]  ;;  %1043 = vmatpush1.bf16.msra.mxu0 %v4467_v3  ;;  %1322 = vmatpush1.bf16.msra.mxu1 %v4475_v63 }
  0x1c   : > { %268 = vst.msk [vmem:[#allocation2 + $0x90] sm:$0x1] %vm262_vm2, %v4600_v0  ;;  %269 = vst.msk [vmem:[#allocation2 + $0xa8] sm:$0x1] %vm262_vm2, %v4600_v0  ;;  %v4759_v7 = vld [vmem:[%s4747_s18 + $0x10] sm:$0xff]  ;;  %v4766_v8 = vld [vmem:[%s4747_s18 + $0x18] sm:$0xff]  ;;  %1044 = vmatprep.subr.bf16.mxu0 %v6478_v1  ;;  %1323 = vmatprep.subr.bf16.mxu1 %v6478_v1 }
  0x1d   : > { %270 = vst.msk [vmem:[#allocation2 + $0xc0] sm:$0x1] %vm262_vm2, %v4600_v0  ;;  %271 = vst.msk [vmem:[#allocation2 + $0xd8] sm:$0x1] %vm262_vm2, %v4600_v0  ;;  %v4771_v9 = vld [vmem:[%s4747_s18 + $0x40] sm:$0xff]  ;;  %v4774_v10 = vld [vmem:[%s4747_s18 + $0x48] sm:$0xff] }
  0x1e   : > { %272 = vst.msk [vmem:[#allocation2 + $0xf0] sm:$0x1] %vm262_vm2, %v4600_v0  ;;  %273 = vst.msk [vmem:[#allocation2 + $0x108] sm:$0x1] %vm262_vm2, %v4600_v0  ;;  %v4783_v11 = vld [vmem:[%s4747_s18 + $0x60] sm:$0xff]  ;;  %v4786_v12 = vld [vmem:[%s4747_s18 + $0x68] sm:$0xff] }
  0x1f   : > { %274 = vst.msk [vmem:[#allocation2 + $0x120] sm:$0x1] %vm262_vm2, %v4600_v0  ;;  %275 = vst.msk [vmem:[#allocation2 + $0x138] sm:$0x1] %vm262_vm2, %v4600_v0  ;;  %v4789_v13 = vld [vmem:[%s4747_s18 + $0x20] sm:$0xff]  ;;  %v4797_v14 = vld [vmem:[%s4747_s18 + $0x28] sm:$0xff]  ;;  %1045 = vmatpush1.bf16.msra.mxu0 %v4468_v4 }
  0x20   : > { %276 = vst.msk [vmem:[#allocation2 + $0x150] sm:$0x1] %vm262_vm2, %v4600_v0  ;;  %277 = vst.msk [vmem:[#allocation2 + $0x168] sm:$0x1] %vm262_vm2, %v4600_v0  ;;  %v4802_v15 = vld [vmem:[%s4747_s18 + $0x80] sm:$0xff]  ;;  %v4805_v16 = vld [vmem:[%s4747_s18 + $0x88] sm:$0xff]  ;;  %1046 = vmatprep.subr.bf16.mxu0 %v6478_v1 }
  0x21   : > { %278 = vst.msk [vmem:[#allocation2 + $0x180] sm:$0x1] %vm262_vm2, %v4600_v0  ;;  %280 = vst.msk [vmem:[#allocation2 + $0x41] sm:$0x1] %vm262_vm2, %v4600_v0  ;;  %v4817_v18 = vld [vmem:[%s4747_s18 + $0xa0] sm:$0xff]  ;;  %v4820_v19 = vld [vmem:[%s4747_s18 + $0xa8] sm:$0xff] }
  0x22   : > { %281 = vst.msk [vmem:[#allocation2 + $0x59] sm:$0x1] %vm262_vm2, %v4600_v0  ;;  %282 = vst.msk [vmem:[#allocation2 + $0x71] sm:$0x1] %vm262_vm2, %v4600_v0  ;;  %v4823_v20 = vld [vmem:[%s4747_s18 + $0x30] sm:$0xff]  ;;  %v4830_v21 = vld [vmem:[%s4747_s18 + $0x38] sm:$0xff] }
  0x23   : > { %283 = vst.msk [vmem:[#allocation2 + $0x89] sm:$0x1] %vm262_vm2, %v4600_v0  ;;  %284 = vst.msk [vmem:[#allocation2 + $0xa1] sm:$0x1] %vm262_vm2, %v4600_v0  ;;  %v4835_v22 = vld [vmem:[%s4747_s18 + $0xc0] sm:$0xff]  ;;  %v4838_v23 = vld [vmem:[%s4747_s18 + $0xc8] sm:$0xff]  ;;  %1047 = vmatpush1.bf16.msra.mxu0 %v4469_v17 }
  0x24   : > { %285 = vst.msk [vmem:[#allocation2 + $0xb9] sm:$0x1] %vm262_vm2, %v4600_v0  ;;  %286 = vst.msk [vmem:[#allocation2 + $0xd1] sm:$0x1] %vm262_vm2, %v4600_v0  ;;  %v4847_v24 = vld [vmem:[%s4747_s18 + $0xe0] sm:$0xff]  ;;  %v4850_v25 = vld [vmem:[%s4747_s18 + $0xe8] sm:$0xff]  ;;  %1048 = vmatprep.subr.bf16.mxu0 %v6478_v1 }
  0x25   : > { %287 = vst.msk [vmem:[#allocation2 + $0xe9] sm:$0x1] %vm262_vm2, %v4600_v0  ;;  %288 = vst.msk [vmem:[#allocation2 + $0x101] sm:$0x1] %vm262_vm2, %v4600_v0  ;;  %v4858_v26 = vld [vmem:[%s4747_s18 + $0x50] sm:$0xff]  ;;  %v4861_v27 = vld [vmem:[%s4747_s18 + $0x58] sm:$0xff] }
  0x26   : > { %289 = vst.msk [vmem:[#allocation2 + $0x119] sm:$0x1] %vm262_vm2, %v4600_v0  ;;  %290 = vst.msk [vmem:[#allocation2 + $0x131] sm:$0x1] %vm262_vm2, %v4600_v0  ;;  %v4884_v45 = vld [vmem:[%s4747_s18 + $0x70] sm:$0xff]  ;;  %v4892_v49 = vld [vmem:[%s4747_s18 + $0x78] sm:$0xff] }
  0x27   : > { %291 = vst.msk [vmem:[#allocation2 + $0x149] sm:$0x1] %vm262_vm2, %v4600_v0  ;;  %292 = vst.msk [vmem:[#allocation2 + $0x161] sm:$0x1] %vm262_vm2, %v4600_v0  ;;  %1049 = vmatpush1.bf16.msra.mxu0 %v4470_v33  ;;  %v4899_v50 = vld [vmem:[%s4747_s18 + $0x90] sm:$0xff]  ;;  %v4902_v51 = vld [vmem:[%s4747_s18 + $0x98] sm:$0xff] }
  0x28   : > { %293 = vst.msk [vmem:[#allocation2 + $0x179] sm:$0x1] %vm262_vm2, %v4600_v0  ;;  %294 = vst.msk [vmem:[#allocation2 + $0x191] sm:$0x1] %vm262_vm2, %v4600_v0  ;;  %1050 = vmatprep.subr.bf16.mxu0 %v6478_v1  ;;  %v4912_v53 = vld [vmem:[%s4747_s18 + $0xb0] sm:$0xff]  ;;  %v4919_v56 = vld [vmem:[%s4747_s18 + $0xb8] sm:$0xff] }
  0x29   : > { %327 = vst.msk [vmem:[#allocation2 + $0x19] sm:$0xff] %vm252_vm0, %v4753_v5  ;;  %328 = vst.msk [vmem:[#allocation2 + $0x21] sm:$0xff] %vm252_vm0, %v4756_v6  ;;  %v4473_v3 = vld [vmem:[%s6472_s1 + $0x60] sm:$0xff]   ;;  %s4544_s10 = scalar_lea.vmem %s4543_s29, 8192 }
  0x2a   : > { %329 = vst.msk [vmem:[#allocation2 + $0x31] sm:$0xff] %vm252_vm0, %v4759_v7  ;;  %330 = vst.msk [vmem:[#allocation2 + $0x39] sm:$0xff] %vm252_vm0, %v4766_v8 }
  0x2b   : > { %335 = vst.msk [vmem:[#allocation2 + $0x79] sm:$0xff] %vm252_vm0, %v4771_v9  ;;  %336 = vst.msk [vmem:[#allocation2 + $0x81] sm:$0xff] %vm252_vm0, %v4774_v10  ;;  %1051 = vmatpush1.bf16.msra.mxu0 %v4471_v52 }
  0x2c   : > { %339 = vst.msk [vmem:[#allocation2 + $0xa9] sm:$0xff] %vm252_vm0, %v4783_v11  ;;  %340 = vst.msk [vmem:[#allocation2 + $0xb1] sm:$0xff] %vm252_vm0, %v4786_v12  ;;  %1052 = vmatprep.subr.bf16.mxu0 %v6478_v1 }
  0x2d   : > { %331 = vst.msk [vmem:[#allocation2 + $0x49] sm:$0xff] %vm252_vm0, %v4789_v13  ;;  %6499 = vst [vmem:[#allocation7_spill] sm:$0xff] %v4802_v15 }
  0x2e   : > { %6500 = vst [vmem:[#allocation8_spill] sm:$0xff] %v4805_v16  ;;  %332 = vst.msk [vmem:[#allocation2 + $0x51] sm:$0xff] %vm252_vm0, %v4797_v14 }
  0x2f   : > { %343 = vst.msk [vmem:[#allocation2 + $0xd9] sm:$0xff] %vm252_vm0, %v4802_v15  ;;  %344 = vst.msk [vmem:[#allocation2 + $0xe1] sm:$0xff] %vm252_vm0, %v4805_v16  ;;  %1053 = vmatpush1.bf16.msra.mxu0 %v4472_v58 }
  0x30   : > { %6501 = vst [vmem:[#allocation9_spill] sm:$0xff] %v4817_v18  ;;  %6502 = vst [vmem:[#allocation10_spill] sm:$0xff] %v4820_v19  ;;  %v687_v28 = vld [vmem:[#allocation2 + $0x19] sm:$0xff]  ;;  %v688_v29 = vld [vmem:[#allocation2 + $0x21] sm:$0xff]  ;;  %1054 = vmatprep.subr.bf16.mxu0 %v6478_v1 }
  0x31   : > { %347 = vst.msk [vmem:[#allocation2 + $0x109] sm:$0xff] %vm252_vm0, %v4817_v18  ;;  %348 = vst.msk [vmem:[#allocation2 + $0x111] sm:$0xff] %vm252_vm0, %v4820_v19  ;;  %v689_v30 = vld [vmem:[#allocation2 + $0x31] sm:$0xff]  ;;  %v4867_v31 = vpack.c.bf16 %v688_v29, %v687_v28  ;;  %v690_v32 = vld [vmem:[#allocation2 + $0x39] sm:$0xff] }
  0x32   : > { %333 = vst.msk [vmem:[#allocation2 + $0x61] sm:$0xff] %vm252_vm0, %v4823_v20  ;;  %6503 = vst [vmem:[#allocation11_spill] sm:$0xff] %v4835_v22  ;;  %v4875_v35 = vpack.c.bf16 %v690_v32, %v689_v30  ;;  %v695_v37 = vld [vmem:[#allocation2 + $0x79] sm:$0xff]  ;;  %v696_v38 = vld [vmem:[#allocation2 + $0x81] sm:$0xff] }
  0x33   : > { %6504 = vst [vmem:[#allocation12_spill] sm:$0xff] %v4838_v23  ;;  %334 = vst.msk [vmem:[#allocation2 + $0x69] sm:$0xff] %vm252_vm0, %v4830_v21  ;;  %799 = vrot.lane.b32.xlu0 %v4867_v31, %s4602_s30  ;;  %v699_v42 = vld [vmem:[#allocation2 + $0xa9] sm:$0xff]  ;;  %v700_v43 = vld [vmem:[#allocation2 + $0xb1] sm:$0xff]  ;;  %v4889_v46 = vpack.c.bf16 %v696_v38, %v695_v37  ;;  %1055 = vmatpush1.bf16.msra.mxu0 %v4473_v3 }
  0x34   : > { %351 = vst.msk [vmem:[#allocation2 + $0x139] sm:$0xff] %vm252_vm0, %v4835_v22  ;;  %352 = vst.msk [vmem:[#allocation2 + $0x141] sm:$0xff] %vm252_vm0, %v4838_v23  ;;  %v691_v34 = vld [vmem:[#allocation2 + $0x49] sm:$0xff]  ;;  %v4925_v57 = vpack.c.bf16 %v700_v43, %v699_v42  ;;  %v4474_v30 = vld [vmem:[%s6472_s1 + $0xb8] sm:$0xff]   ;;  %1064 = vmatprep.subr.bf16.mxu0 %v6478_v1 }
  0x35   : > { %6505 = vst [vmem:[#allocation13_spill] sm:$0xff] %v4847_v24  ;;  %6506 = vst [vmem:[#allocation14_spill] sm:$0xff] %v4850_v25  ;;  %v692_v36 = vld [vmem:[#allocation2 + $0x51] sm:$0xff]  ;;  %v4479_v42 = vld [vmem:[%s6472_s1 + $0x28] sm:$0xff]  }
  0x36   : > { %355 = vst.msk [vmem:[#allocation2 + $0x169] sm:$0xff] %vm252_vm0, %v4847_v24  ;;  %356 = vst.msk [vmem:[#allocation2 + $0x171] sm:$0xff] %vm252_vm0, %v4850_v25  ;;  %v4877_v39 = vpack.c.bf16 %v692_v36, %v691_v34  ;;  %v703_v54 = vld [vmem:[#allocation2 + $0xd9] sm:$0xff]  ;;  %v704_v59 = vld [vmem:[#allocation2 + $0xe1] sm:$0xff] }
  0x37   : > { %337 = vst.msk [vmem:[#allocation2 + $0x91] sm:$0xff] %vm252_vm0, %v4858_v26  ;;  %338 = vst.msk [vmem:[#allocation2 + $0x99] sm:$0xff] %vm252_vm0, %v4861_v27  ;;  %801 = vrot.lane.b32.xlu0 %v4875_v35, %s4602_s30  ;;  %v4940_v0 = vpack.c.bf16 %v704_v59, %v703_v54  ;;  %v4949_v29 = vld [vmem:[%s4747_s18 + $0xd0] sm:$0xff]  ;;  %v4956_v32 = vld [vmem:[%s4747_s18 + $0xd8] sm:$0xff]  ;;  %1065 = vmatpush2.bf16.msra.mxu0 %v4474_v30 }
  0x38   : > { %803 = vrot.lane.b32.xlu1 %v4877_v39, %s4602_s30  ;;  %6507 = vst [vmem:[#allocation15_spill] sm:$0xff] %v4892_v49  ;;  %341 = vst.msk [vmem:[#allocation2 + $0xc1] sm:$0xff] %vm252_vm0, %v4884_v45  ;;  %v707_v60 = vld [vmem:[#allocation2 + $0x109] sm:$0xff]  ;;  %v708_v61 = vld [vmem:[#allocation2 + $0x111] sm:$0xff]  ;;  %1066 = vmatprep.subr.bf16.mxu0 %v6478_v1 }
  0x39   : > { %v693_v40 = vld [vmem:[#allocation2 + $0x61] sm:$0xff]  ;;  %342 = vst.msk [vmem:[#allocation2 + $0xc9] sm:$0xff] %vm252_vm0, %v4892_v49  ;;  %6508 = vst [vmem:[#allocation16_spill] sm:$0xff] %v4899_v50  ;;  %v4477_v38 = vld [vmem:[%s6472_s1 + $0x30] sm:$0xff]  }
  0x3a   : > { %v694_v41 = vld [vmem:[#allocation2 + $0x69] sm:$0xff]  ;;  %6509 = vst [vmem:[#allocation17_spill] sm:$0xff] %v4902_v51  ;;  %345 = vst.msk [vmem:[#allocation2 + $0xf1] sm:$0xff] %vm252_vm0, %v4899_v50  ;;  %1324 = vmatpush1.bf16.msra.mxu1 %v4477_v38  ;;  %v735_v58 = vld [vmem:[#allocation2 + $0x1a] sm:$0xff] }
  0x3b   : > { %v4881_v44 = vpack.c.bf16 %v694_v41, %v693_v40  ;;  %346 = vst.msk [vmem:[#allocation2 + $0xf9] sm:$0xff] %vm252_vm0, %v4902_v51  ;;  %6510 = vst [vmem:[#allocation18_spill] sm:$0xff] %v4912_v53  ;;  %807 = vrot.lane.b32.xlu0 %v4889_v46, %s4602_s30  ;;  %v711_v33 = vld [vmem:[#allocation2 + $0x139] sm:$0xff]  ;;  %v712_v34 = vld [vmem:[#allocation2 + $0x141] sm:$0xff]  ;;  %v4971_v40 = vpack.c.bf16 %v708_v61, %v707_v60  ;;  %1325 = vmatprep.subr.bf16.mxu1 %v6478_v1 }
  0x3c   : > { %6511 = vst [vmem:[#allocation19_spill] sm:$0xff] %v4919_v56  ;;  %349 = vst.msk [vmem:[#allocation2 + $0x121] sm:$0xff] %vm252_vm0, %v4912_v53  ;;  %v4984_v52 = vpack.c.bf16 %v712_v34, %v711_v33  ;;  %v4476_v54 = vld [vmem:[%s6472_s1 + $0xb0] sm:$0xff]   ;;  %v736_v59 = vld [vmem:[#allocation2 + $0x22] sm:$0xff] }
  0x3d   : > { %805 = vrot.lane.b32.xlu1 %v4881_v44, %s4602_s30  ;;  %350 = vst.msk [vmem:[#allocation2 + $0x129] sm:$0xff] %vm252_vm0, %v4919_v56  ;;  %6512 = vst [vmem:[#allocation20_spill] sm:$0xff] %v4949_v29  ;;  %v715_v43 = vld [vmem:[#allocation2 + $0x169] sm:$0xff]  ;;  %v4481_v61 = vld [vmem:[%s6472_s1 + $0x20] sm:$0xff]   ;;  %1067 = vmatpush2.bf16.msra.mxu0 %v4476_v54 }
  0x3e   : > { %v697_v47 = vld [vmem:[#allocation2 + $0x91] sm:$0xff]  ;;  %v698_v48 = vld [vmem:[#allocation2 + $0x99] sm:$0xff]  ;;  %6513 = vst [vmem:[#allocation21_spill] sm:$0xff] %v4956_v32  ;;  %353 = vst.msk [vmem:[#allocation2 + $0x151] sm:$0xff] %vm252_vm0, %v4949_v29  ;;  %1326 = vmatpush1.bf16.msra.mxu1 %v4479_v42  ;;  %1068 = vmatprep.subr.bf16.mxu0 %v6478_v1 }
  0x3f   : > { %v4916_v55 = vpack.c.bf16 %v698_v48, %v697_v47  ;;  %v701_v62 = vld [vmem:[#allocation2 + $0xc1] sm:$0xff]  ;;  %811 = vrot.lane.b32.xlu0 %v4925_v57, %s4602_s30  ;;  %354 = vst.msk [vmem:[#allocation2 + $0x159] sm:$0xff] %vm252_vm0, %v4956_v32  ;;  %v716_v47 = vld [vmem:[#allocation2 + $0x171] sm:$0xff]  ;;  %1327 = vmatprep.subr.bf16.mxu1 %v6478_v1  ;;  %v408_v34 = vld [vmem:[#allocation2 + $0x9] sm:$0xff] }
  0x40   : > { %v702_v2 = vld [vmem:[#allocation2 + $0xc9] sm:$0xff]  ;;  %v5013_v33 = vld [vmem:[%s4747_s18 + $0xf8] sm:$0xff]  ;;  %v4513_v51 = vld [vmem:[%s6474_s3 + $0xa0] sm:$0xff]  }
  0x41   : > { %809 = vrot.lane.b32.xlu1 %v4916_v55, %s4602_s30  ;;  %v4945_v4 = vpack.c.bf16 %v702_v2, %v701_v62  ;;  %v705_v17 = vld [vmem:[#allocation2 + $0xf1] sm:$0xff]  ;;  %v4993_v62 = vpack.c.bf16 %v736_v59, %v735_v58  ;;  %v407_v2 = vld [vmem:[#allocation2 + $0x1] sm:$0xff]  ;;  %6515 = vst [vmem:[#allocation23_spill] sm:$0xff] %v5013_v33  ;;  %358 = vst.msk [vmem:[#allocation2 + $0x189] sm:$0xff] %vm252_vm0, %v5013_v33 }
  0x42   : > { %v706_v28 = vld [vmem:[#allocation2 + $0xf9] sm:$0xff]  ;;  %v5010_v30 = vld [vmem:[%s4747_s18 + $0xf0] sm:$0xff]  ;;  %1328 = vmatpush1.bf16.msra.mxu1 %v4481_v61  ;;  %v439_v38 = vpack.c.bf16 %v408_v34, %v407_v2  ;;  %v4485_v58 = vld [vmem:[%s6472_s1 + $0x8] sm:$0xff]   ;;  %s2116_s18 = sld [smem:[#allocation3]] }
  0x43   : > { %v4962_v36 = vpack.c.bf16 %v706_v28, %v705_v17  ;;  %v709_v37 = vld [vmem:[#allocation2 + $0x121] sm:$0xff]  ;;  %815 = vrot.lane.b32.xlu0 %v4940_v0, %s4602_s30  ;;  %4185 = vmatprep.mubr.msk.bf16.mxu0 %vm252_vm0, %v4993_v62  ;;  %v5007_v28 = vpack.c.bf16 %v716_v47, %v715_v43  ;;  %6514 = vst [vmem:[#allocation22_spill] sm:$0xff] %v5010_v30  ;;  %357 = vst.msk [vmem:[#allocation2 + $0x181] sm:$0xff] %vm252_vm0, %v5010_v30  ;;  %v4484_v42 = vld [vmem:[%s6472_s1 + $0x10] sm:$0xff]  }
  0x44   : > { %v710_v41 = vld [vmem:[#allocation2 + $0x129] sm:$0xff]  ;;  %1329 = vmatprep.subr.bf16.mxu1 %v6478_v1  ;;  %v4487_v59 = vld [vmem:[%s6472_s1] sm:$0xff]   ;;  %v1550_v34 = vld [vmem:[#allocation2 + $0x111] sm:$0xff] }
  0x45   : > { %813 = vrot.lane.b32.xlu1 %v4945_v4, %s4602_s30  ;;  %v4980_v48 = vpack.c.bf16 %v710_v41, %v709_v37  ;;  %v713_v60 = vld [vmem:[#allocation2 + $0x151] sm:$0xff]  ;;  %v4478_v17 = vld [vmem:[%s6472_s1 + $0xa8] sm:$0xff]   ;;  %v4480_v41 = vld [vmem:[%s6472_s1 + $0xa0] sm:$0xff]  }
  0x46   : > { %v714_v63 = vld [vmem:[#allocation2 + $0x159] sm:$0xff]  ;;  %1069 = vmatpush2.bf16.msra.mxu0 %v4478_v17  ;;  %v456_v61 = vld [vmem:[#allocation2 + $0xa] sm:$0xff]  ;;  %v757_v33 = vld [vmem:[#allocation2 + $0x122] sm:$0xff] }
  0x47   : > { %819 = vrot.lane.b32.xlu0 %v4971_v40, %s4602_s30  ;;  %v4998_v3 = vpack.c.bf16 %v714_v63, %v713_v60  ;;  %v4483_v37 = vld [vmem:[%s6472_s1 + $0x18] sm:$0xff]   ;;  %1070 = vmatprep.subr.bf16.mxu0 %v6478_v1  ;;  %v455_v60 = vld [vmem:[#allocation2 + $0x2] sm:$0xff] }
  0x48   : > { %1330 = vmatpush1.bf16.msra.mxu1 %v4483_v37  ;;  %v718_v47 = vld [vmem:[#allocation2 + $0x189] sm:$0xff]  ;;  %v487_v63 = vpack.c.bf16 %v456_v61, %v455_v60  ;;  %v1562_v61 = vld [vmem:[#allocation2 + $0x1a1] sm:$0xff]  ;;  %v761_v24 = vld [vmem:[#allocation2 + $0x152] sm:$0xff] }
  0x49   : > { %817 = vrot.lane.b32.xlu1 %v4962_v36, %s4602_s30  ;;  %1331 = vmatprep.subr.bf16.mxu1 %v6478_v1  ;;  %v4491_v2 = vld [vmem:[%s6472_s1 + $0x48] sm:$0xff]   ;;  %v764_v29 = vld [vmem:[#allocation2 + $0x172] sm:$0xff] }
  0x4a   : > { %1071 = vmatpush2.bf16.msra.mxu0 %v4480_v41  ;;  %v717_v43 = vld [vmem:[#allocation2 + $0x181] sm:$0xff]  ;;  %4213 = vmatprep.mubr.msk.bf16.mxu1 %vm252_vm0, %v487_v63  ;;  %v737_v41 = vld [vmem:[#allocation2 + $0x32] sm:$0xff] }
  0x4b   : > { %823 = vrot.lane.b32.xlu0 %v4984_v52, %s4602_s30  ;;  %1884 = vmatprep.subr.bf16.mxu0 %v6478_v1  ;;  %v5038_v54 = vpack.c.bf16 %v718_v47, %v717_v43  ;;  %v760_v25 = vld [vmem:[#allocation2 + $0x142] sm:$0xff] }
  0x4c   : > { %1332 = vmatpush1.bf16.msra.mxu1 %v4484_v42  ;;  %v738_v42 = vld [vmem:[#allocation2 + $0x3a] sm:$0xff]  ;;  %v765_v23 = vld [vmem:[#allocation2 + $0x182] sm:$0xff] }
  0x4d   : > { %821 = vrot.lane.b32.xlu1 %v4980_v48, %s4602_s30  ;;  %1333 = vmatprep.subr.bf16.mxu1 %v6478_v1  ;;  %v5129_v47 = vpack.c.bf16 %v738_v42, %v737_v41  ;;  %v4494_v42 = vld [vmem:[%s6472_s1 + $0xd8] sm:$0xff]  }
  0x4f   : > { %827 = vrot.lane.b32.xlu0 %v5007_v28, %s4602_s30 }
  0x50   : > { %1334 = vmatpush1.bf16.msra.mxu1 %v4485_v58  ;;  %v641_v58 = vld [vmem:[#allocation2 + $0x30] sm:$0xff] }
  0x51   : > { %825 = vrot.lane.b32.xlu1 %v4998_v3, %s4602_s30  ;;  %1335 = vmatprep.subr.bf16.mxu1 %v6478_v1 }
  0x53   : > { %519 = vrot.lane.b32.xlu0 %v439_v38, %s4602_s30  ;;  %v640_v38 = vld [vmem:[#allocation2 + $0x20] sm:$0xff] }
  0x54   : > { %1336 = vmatpush1.bf16.msra.mxu1 %v4487_v59  ;;  %v642_v59 = vld [vmem:[#allocation2 + $0x38] sm:$0xff] }
  0x55   : > { %829 = vrot.lane.b32.xlu1 %v5038_v54, %s4602_s30  ;;  %1345 = vmatprep.subr.bf16.mxu1 %v6478_v1  ;;  %v5135_v63 = vpack.c.bf16 %v642_v59, %v641_v58  ;;  %v646_v58 = vld [vmem:[#allocation2 + $0x68] sm:$0xff] }
  0x57   : > { %521 = vrot.lane.b32.xlu0 %v4867_v31, %s4602_s30  ;;  %v4488_v31 = vld [vmem:[%s6472_s1 + $0x58] sm:$0xff]  }
  0x58   : > { %1346 = vmatpush2.bf16.msra.mxu1 %v4488_v31  ;;  %v4486_v31 = vld [vmem:[%s6472_s1 + $0xf0] sm:$0xff]  }
  0x59   : > { %1643 = vrot.lane.b32.xlu1 %v4875_v35, %s4602_s30  ;;  %1347 = vmatprep.subr.bf16.mxu1 %v6478_v1 }
  0x5b   : > { %523 = vrot.lane.b32.xlu0 %v4875_v35, %s4602_s30  ;;  %v4489_v35 = vld [vmem:[%s6472_s1 + $0x50] sm:$0xff]  }
  0x5c   : > { %1348 = vmatpush2.bf16.msra.mxu1 %v4489_v35 }
  0x5d   : > { %1645 = vrot.lane.b32.xlu1 %v4877_v39, %s4602_s30  ;;  %1349 = vmatprep.subr.bf16.mxu1 %v6478_v1 }
  0x5f   : > { %525 = vrot.lane.b32.xlu0 %v4877_v39, %s4602_s30  ;;  %v4492_v39 = vld [vmem:[%s6472_s1 + $0x40] sm:$0xff]  }
  0x60   : > { %1350 = vmatpush2.bf16.msra.mxu1 %v4491_v2 }
  0x61   : > { %1647 = vrot.lane.b32.xlu1 %v4881_v44, %s4602_s30  ;;  %1351 = vmatprep.subr.bf16.mxu1 %v6478_v1 }
  0x63   : > { %527 = vrot.lane.b32.xlu0 %v4881_v44, %s4602_s30  ;;  %v1545_v44 = vld [vmem:[#allocation2 + $0xd9] sm:$0xff] }
  0x64   : > { %1352 = vmatpush2.bf16.msra.mxu1 %v4492_v39  ;;  %v739_v39 = vld [vmem:[#allocation2 + $0x4a] sm:$0xff] }
  0x65   : > { %1649 = vrot.lane.b32.xlu1 %v4889_v46, %s4602_s30  ;;  %2927 = vmatprep.subr.bf16.mxu1 %v6478_v1 }
  0x67   : > { %529 = vrot.lane.b32.xlu0 %v4889_v46, %s4602_s30  ;;  %v1546_v46 = vld [vmem:[#allocation2 + $0xe1] sm:$0xff] }
  0x68   : > { %v1570_v17 = vpack.c.bf16 %v1546_v46, %v1545_v44  ;;  %v740_v44 = vld [vmem:[#allocation2 + $0x52] sm:$0xff] }
  0x69   : > { %1651 = vrot.lane.b32.xlu1 %v4916_v55, %s4602_s30 }
  0x6b   : > { %531 = vrot.lane.b32.xlu0 %v4916_v55, %s4602_s30  ;;  %v1549_v55 = vld [vmem:[#allocation2 + $0x109] sm:$0xff] }
  0x6d   : > { %1653 = vrot.lane.b32.xlu1 %v4925_v57, %s4602_s30 }
  0x6f   : > { %533 = vrot.lane.b32.xlu0 %v4925_v57, %s4602_s30  ;;  %v1572_v57 = vpack.c.bf16 %v1550_v34, %v1549_v55  ;;  %v4490_v55 = vld [vmem:[%s6472_s1 + $0xe8] sm:$0xff]  }
  0x71   : > { %1655 = vrot.lane.b32.xlu1 %v4945_v4, %s4602_s30 }
  0x73   : > { %535 = vrot.lane.b32.xlu0 %v4945_v4, %s4602_s30  ;;  %v1554_v4 = vld [vmem:[#allocation2 + $0x141] sm:$0xff] }
  0x75   : > { %1657 = vrot.lane.b32.xlu1 %v1570_v17, %s4602_s30  ;;  %v5144_v17 = vpack.c.bf16 %v740_v44, %v739_v39  ;;  %v4496_v44 = vld [vmem:[%s6472_s1 + $0xc8] sm:$0xff]  }
  0x77   : > { %537 = vrot.lane.b32.xlu0 %v4940_v0, %s4602_s30  ;;  %v1553_v0 = vld [vmem:[#allocation2 + $0x139] sm:$0xff] }
  0x78   : > { %v1574_v37 = vpack.c.bf16 %v1554_v4, %v1553_v0  ;;  %v644_v0 = vld [vmem:[#allocation2 + $0x50] sm:$0xff] }
  0x79   : > { %1659 = vrot.lane.b32.xlu1 %v4962_v36, %s4602_s30 }
  0x7b   : > { %539 = vrot.lane.b32.xlu0 %v4962_v36, %s4602_s30  ;;  %v1557_v36 = vld [vmem:[#allocation2 + $0x169] sm:$0xff] }
  0x7d   : > { %1661 = vrot.lane.b32.xlu1 %v1572_v57, %s4602_s30  ;;  %v643_v57 = vld [vmem:[#allocation2 + $0x48] sm:$0xff] }
  0x7e   : > { %v5152_v4 = vpack.c.bf16 %v644_v0, %v643_v57  ;;  %v648_v57 = vld [vmem:[#allocation2 + $0x80] sm:$0xff] }
  0x7f   : > { %541 = vrot.lane.b32.xlu0 %v4971_v40, %s4602_s30  ;;  %v1558_v40 = vld [vmem:[#allocation2 + $0x171] sm:$0xff]  ;;  %v359_v0 = vld [vmem:[#allocation2] sm:$0xff] }
  0x81   : > { %1663 = vrot.lane.b32.xlu1 %v4980_v48, %s4602_s30 }
  0x83   : > { %543 = vrot.lane.b32.xlu0 %v4980_v48, %s4602_s30  ;;  %v1576_v48 = vpack.c.bf16 %v1558_v40, %v1557_v36 }
  0x85   : > { %1665 = vrot.lane.b32.xlu1 %v1574_v37, %s4602_s30  ;;  %v4493_v37 = vld [vmem:[%s6472_s1 + $0xe0] sm:$0xff]  }
  0x87   : > { %545 = vrot.lane.b32.xlu0 %v4984_v52, %s4602_s30  ;;  %v639_v52 = vld [vmem:[#allocation2 + $0x18] sm:$0xff] }
  0x88   : > { %v5124_v43 = vpack.c.bf16 %v640_v38, %v639_v52  ;;  %v742_v52 = vld [vmem:[#allocation2 + $0x6a] sm:$0xff] }
  0x89   : > { %1667 = vrot.lane.b32.xlu1 %v4998_v3, %s4602_s30 }
  0x8b   : > { %547 = vrot.lane.b32.xlu0 %v4998_v3, %s4602_s30  ;;  %v4482_v3 = vld [vmem:[%s6472_s1 + $0xf8] sm:$0xff]  }
  0x8d   : > { %1669 = vrot.lane.b32.xlu1 %v1576_v48, %s4602_s30  ;;  %v741_v48 = vld [vmem:[#allocation2 + $0x62] sm:$0xff] }
  0x8e   : > { %v5162_v41 = vpack.c.bf16 %v742_v52, %v741_v48  ;;  %v4497_v48 = vld [vmem:[%s6472_s1 + $0xc0] sm:$0xff]  }
  0x8f   : > { %549 = vrot.lane.b32.xlu0 %v5007_v28, %s4602_s30 }
  0x91   : > { %1671 = vrot.lane.b32.xlu1 %v5038_v54, %s4602_s30  ;;  %v1561_v54 = vld [vmem:[#allocation2 + $0x199] sm:$0xff] }
  0x92   : > { %v1578_v35 = vpack.c.bf16 %v1562_v61, %v1561_v54 }
  0x95   : > { %1673 = vrot.lane.b32.xlu1 %v1578_v35, %s4602_s30  ;;  %v744_v35 = vld [vmem:[#allocation2 + $0x82] sm:$0xff] }
  0xa5   : > { %v800_v28 = vpop.permute.xlu0 %799 }
  0xa6   : > { %v833_v60 = vsel %vm252_vm0, %v5124_v43, %v800_v28  ;;  %v645_v28 = vld [vmem:[#allocation2 + $0x60] sm:$0xff] }
  0xa7   : > { %1073 = vmatmul.mubr.bf16.vlgmr.msra.gmra.mxu0 %v833_v60  ;;  %v5172_v59 = vpack.c.bf16 %v646_v58, %v645_v28  ;;  %v4495_v60 = vld [vmem:[%s6472_s1 + $0xd0] sm:$0xff]  }
  0xa8   : > { %1885 = vmatpush1.bf16.msra.mxu0 %v4482_v3  ;;  %4186 = vmatprep.mubr.msk.bf16.mxu0 %vm252_vm0, %v5129_v47 }
  0xa9   : > { %v802_v2 = vpop.permute.xlu0 %801  ;;  %1886 = vmatprep.subr.bf16.mxu0 %v6478_v1 }
  0xaa   : > { %v837_v46 = vsel %vm252_vm0, %v5135_v63, %v802_v2  ;;  %v804_v40 = vpop.permute.xlu1 %803 }
  0xab   : > { %v841_v38 = vsel %vm252_vm0, %v5152_v4, %v804_v40 }
  0xac   : > { %1887 = vmatpush1.bf16.msra.mxu0 %v4486_v31  ;;  %v743_v31 = vld [vmem:[#allocation2 + $0x7a] sm:$0xff] }
  0xad   : > { %v808_v34 = vpop.permute.xlu0 %807  ;;  %1888 = vmatprep.subr.bf16.mxu0 %v6478_v1  ;;  %v5182_v39 = vpack.c.bf16 %v744_v35, %v743_v31  ;;  %v649_v31 = vld [vmem:[#allocation2 + $0x90] sm:$0xff]  ;;  %v650_v35 = vld [vmem:[#allocation2 + $0x98] sm:$0xff] }
  0xaf   : > { %1081 = vmatmul.mubr.bf16.gmra.mxu0 %v837_v46  ;;  %v806_v61 = vpop.permute.xlu1 %805 }
  0xb0   : > { %4187 = vmatprep.mubr.msk.bf16.mxu0 %vm252_vm0, %v5144_v17  ;;  %1889 = vmatpush1.bf16.msra.mxu0 %v4490_v55  ;;  %v845_v2 = vsel %vm252_vm0, %v5172_v59, %v806_v61  ;;  %v647_v55 = vld [vmem:[#allocation2 + $0x78] sm:$0xff] }
  0xb1   : > { %v5157_v36 = vpop.permute.xlu0 %811  ;;  %1890 = vmatprep.subr.bf16.mxu0 %v6478_v1  ;;  %v5192_v40 = vpack.c.bf16 %v648_v57, %v647_v55 }
  0xb3   : > { %v849_v58 = vsel %vm252_vm0, %v5192_v40, %v808_v34  ;;  %v5213_v34 = vpack.c.bf16 %v650_v35, %v649_v31  ;;  %v810_v55 = vpop.permute.xlu1 %809  ;;  %v749_v35 = vld [vmem:[#allocation2 + $0xc2] sm:$0xff] }
  0xb4   : > { %1891 = vmatpush1.bf16.msra.mxu0 %v4493_v37  ;;  %v360_v37 = vld [vmem:[#allocation2 + $0x8] sm:$0xff] }
  0xb5   : > { %v5167_v3 = vpop.permute.xlu0 %815  ;;  %1892 = vmatprep.subr.bf16.mxu0 %v6478_v1  ;;  %v391_v28 = vpack.c.bf16 %v360_v37, %v359_v0  ;;  %v747_v0 = vld [vmem:[#allocation2 + $0xaa] sm:$0xff]  ;;  %v748_v37 = vld [vmem:[#allocation2 + $0xb2] sm:$0xff] }
  0xb7   : > { %1089 = vmatmul.mubr.bf16.gmra.mxu0 %v841_v38  ;;  %v745_v38 = vld [vmem:[#allocation2 + $0x92] sm:$0xff] }
  0xb8   : > { %4188 = vmatprep.mubr.msk.bf16.mxu0 %vm252_vm0, %v5162_v41  ;;  %1893 = vmatpush1.bf16.msra.mxu0 %v4494_v42  ;;  %v746_v42 = vld [vmem:[#allocation2 + $0x9a] sm:$0xff] }
  0xb9   : > { %v5177_v54 = vpop.permute.xlu0 %819  ;;  %1894 = vmatprep.subr.bf16.mxu0 %v6478_v1 }
  0xbc   : > { %1895 = vmatpush1.bf16.msra.mxu0 %v4495_v60  ;;  %v5202_v60 = vpack.c.bf16 %v746_v42, %v745_v38  ;;  %v853_v38 = vsel %vm252_vm0, %v5213_v34, %v810_v55 }
  0xbd   : > { %v5187_v46 = vpop.permute.xlu0 %823  ;;  %1896 = vmatprep.subr.bf16.mxu0 %v6478_v1 }
  0xbf   : > { %1097 = vmatmul.mubr.bf16.gmra.mxu0 %v845_v2  ;;  %v4498_v2 = vld [vmem:[%s6472_s1 + $0x118] sm:$0xff]  }
  0xc0   : > { %4189 = vmatprep.mubr.msk.bf16.mxu0 %vm252_vm0, %v5182_v39  ;;  %1897 = vmatpush1.bf16.msra.mxu0 %v4496_v44 }
  0xc1   : > { %v5197_v52 = vpop.permute.xlu0 %827  ;;  %1898 = vmatprep.subr.bf16.mxu0 %v6478_v1 }
  0xc4   : > { %1899 = vmatpush1.bf16.msra.mxu0 %v4497_v48  ;;  %v4499_v48 = vld [vmem:[%s6472_s1 + $0x110] sm:$0xff]  }
  0xc5   : > { %v520_v61 = vpop.permute.xlu0 %519  ;;  %1908 = vmatprep.subr.bf16.mxu0 %v6478_v1 }
  0xc6   : > { %v553_v44 = vsel %vm252_vm0, %v391_v28, %v520_v61  ;;  %v651_v28 = vld [vmem:[#allocation2 + $0xa8] sm:$0xff] }
  0xc7   : > { %1105 = vmatmul.mubr.bf16.gmra.mxu0 %v849_v58  ;;  %1354 = vmatmul.mubr.bf16.vlgmr.msra.gmra.mxu1 %v553_v44  ;;  %v652_v58 = vld [vmem:[#allocation2 + $0xb0] sm:$0xff]  ;;  %v4500_v61 = vld [vmem:[%s6472_s1 + $0x108] sm:$0xff]   ;;  %v4501_v44 = vld [vmem:[%s6472_s1 + $0x100] sm:$0xff]  }
  0xc8   : > { %4190 = vmatprep.mubr.msk.bf16.mxu0 %vm252_vm0, %v5202_v60  ;;  %4214 = vmatprep.mubr.msk.bf16.mxu1 %vm252_vm0, %v4993_v62  ;;  %v5223_v62 = vpack.c.bf16 %v748_v37, %v747_v0  ;;  %v653_v37 = vld [vmem:[#allocation2 + $0xc0] sm:$0xff] }
  0xc9   : > { %v522_v57 = vpop.permute.xlu0 %521  ;;  %1909 = vmatpush2.bf16.msra.mxu0 %v4498_v2  ;;  %v750_v2 = vld [vmem:[#allocation2 + $0xca] sm:$0xff] }
  0xca   : > { %1910 = vmatprep.subr.bf16.mxu0 %v6478_v1  ;;  %v557_v42 = vsel %vm252_vm0, %v5124_v43, %v522_v57  ;;  %v5233_v43 = vpack.c.bf16 %v652_v58, %v651_v28  ;;  %v5244_v0 = vpack.c.bf16 %v750_v2, %v749_v35  ;;  %v751_v28 = vld [vmem:[#allocation2 + $0xda] sm:$0xff]  ;;  %v752_v58 = vld [vmem:[#allocation2 + $0xe2] sm:$0xff] }
  0xcb   : > { %v5257_v35 = vpack.c.bf16 %v752_v58, %v751_v28  ;;  %v655_v2 = vld [vmem:[#allocation2 + $0xd8] sm:$0xff]  ;;  %v657_v58 = vld [vmem:[#allocation2 + $0xf0] sm:$0xff] }
  0xcc   : > { %v857_v55 = vsel %vm252_vm0, %v5233_v43, %v5157_v36  ;;  %v814_v36 = vpop.permute.xlu1 %813 }
  0xcd   : > { %1911 = vmatpush2.bf16.msra.mxu0 %v4499_v48  ;;  %v524_v31 = vpop.permute.xlu0 %523  ;;  %v654_v48 = vld [vmem:[#allocation2 + $0xc8] sm:$0xff] }
  0xce   : > { %1912 = vmatprep.subr.bf16.mxu0 %v6478_v1  ;;  %v561_v57 = vsel %vm252_vm0, %v5135_v63, %v524_v31 }
  0xcf   : > { %1113 = vmatmul.mubr.bf16.gmra.mxu0 %v853_v38  ;;  %1362 = vmatmul.mubr.bf16.gmra.mxu1 %v557_v42  ;;  %v5251_v38 = vpack.c.bf16 %v654_v48, %v653_v37  ;;  %v753_v37 = vld [vmem:[#allocation2 + $0xf2] sm:$0xff]  ;;  %v754_v48 = vld [vmem:[#allocation2 + $0xfa] sm:$0xff] }
  0xd0   : > { %4191 = vmatprep.mubr.msk.bf16.mxu0 %vm252_vm0, %v5223_v62  ;;  %4215 = vmatprep.mubr.msk.bf16.mxu1 %vm252_vm0, %v5129_v47  ;;  %v5270_v28 = vpack.c.bf16 %v754_v48, %v753_v37 }
  0xd1   : > { %1913 = vmatpush2.bf16.msra.mxu0 %v4500_v61  ;;  %v526_v42 = vpop.permute.xlu0 %525  ;;  %v861_v61 = vsel %vm252_vm0, %v5251_v38, %v814_v36 }
  0xd2   : > { %1914 = vmatprep.subr.bf16.mxu0 %v6478_v1  ;;  %v565_v31 = vsel %vm252_vm0, %v5152_v4, %v526_v42 }
  0xd5   : > { %1915 = vmatpush2.bf16.msra.mxu0 %v4501_v44  ;;  %v656_v44 = vld [vmem:[#allocation2 + $0xe0] sm:$0xff] }
  0xd6   : > { %3208 = vmatprep.subr.bf16.mxu0 %v6478_v1  ;;  %v756_v1 = vld [vmem:[#allocation2 + $0x112] sm:$0xff] }
  0xd7   : > { %1121 = vmatmul.mubr.bf16.gmra.mxu0 %v857_v55  ;;  %1370 = vmatmul.mubr.bf16.gmra.mxu1 %v561_v57  ;;  %v5263_v55 = vpack.c.bf16 %v656_v44, %v655_v2  ;;  %v528_v57 = vpop.permute.xlu0 %527  ;;  %v818_v2 = vpop.permute.xlu1 %817 }
  0xd8   : > { %4192 = vmatprep.mubr.msk.bf16.mxu0 %vm252_vm0, %v5244_v0  ;;  %4216 = vmatprep.mubr.msk.bf16.mxu1 %vm252_vm0, %v5144_v17  ;;  %v569_v42 = vsel %vm252_vm0, %v5172_v59, %v528_v57 }
  0xd9   : > { %v865_v36 = vsel %vm252_vm0, %v5263_v55, %v5167_v3  ;;  %v755_v3 = vld [vmem:[#allocation2 + $0x10a] sm:$0xff] }
  0xda   : > { %v5282_v48 = vpack.c.bf16 %v756_v1, %v755_v3 }
  0xdb   : > { %v530_v44 = vpop.permute.xlu0 %529 }
  0xdc   : > { %v573_v37 = vsel %vm252_vm0, %v5192_v40, %v530_v44 }
  0xdf   : > { %1129 = vmatmul.mubr.bf16.gmra.mxu0 %v861_v61  ;;  %1378 = vmatmul.mubr.bf16.gmra.mxu1 %v565_v31  ;;  %v658_v61 = vld [vmem:[#allocation2 + $0xf8] sm:$0xff] }
  0xe0   : > { %4193 = vmatprep.mubr.msk.bf16.mxu0 %vm252_vm0, %v5257_v35  ;;  %4217 = vmatprep.mubr.msk.bf16.mxu1 %vm252_vm0, %v5162_v41  ;;  %v5276_v31 = vpack.c.bf16 %v658_v61, %v657_v58  ;;  %v532_v61 = vpop.permute.xlu0 %531 }
  0xe1   : > { %v577_v44 = vsel %vm252_vm0, %v5213_v34, %v532_v61 }
  0xe2   : > { %v869_v57 = vsel %vm252_vm0, %v5276_v31, %v818_v2  ;;  %v758_v2 = vld [vmem:[#allocation2 + $0x12a] sm:$0xff] }
  0xe3   : > { %v5295_v3 = vpack.c.bf16 %v758_v2, %v757_v33 }
  0xe4   : > { %v534_v30 = vpop.permute.xlu0 %533 }
  0xe5   : > { %v581_v61 = vsel %vm252_vm0, %v5233_v43, %v534_v30 }
  0xe7   : > { %1137 = vmatmul.mubr.bf16.gmra.mxu0 %v865_v36  ;;  %1386 = vmatmul.mubr.bf16.gmra.mxu1 %v569_v42  ;;  %v659_v36 = vld [vmem:[#allocation2 + $0x108] sm:$0xff]  ;;  %v660_v42 = vld [vmem:[#allocation2 + $0x110] sm:$0xff] }
  0xe8   : > { %4194 = vmatprep.mubr.msk.bf16.mxu0 %vm252_vm0, %v5270_v28  ;;  %4218 = vmatprep.mubr.msk.bf16.mxu1 %vm252_vm0, %v5182_v39  ;;  %v5288_v58 = vpack.c.bf16 %v660_v42, %v659_v36  ;;  %v822_v42 = vpop.permute.xlu1 %821 }
  0xea   : > { %v873_v1 = vsel %vm252_vm0, %v5288_v58, %v5177_v54  ;;  %v759_v54 = vld [vmem:[#allocation2 + $0x13a] sm:$0xff] }
  0xeb   : > { %v5307_v2 = vpack.c.bf16 %v760_v25, %v759_v54 }
  0xef   : > { %1145 = vmatmul.mubr.bf16.gmra.mxu0 %v869_v57  ;;  %1394 = vmatmul.mubr.bf16.gmra.mxu1 %v573_v37  ;;  %v661_v57 = vld [vmem:[#allocation2 + $0x120] sm:$0xff]  ;;  %v662_v37 = vld [vmem:[#allocation2 + $0x128] sm:$0xff] }
  0xf0   : > { %4195 = vmatprep.mubr.msk.bf16.mxu0 %vm252_vm0, %v5282_v48  ;;  %4219 = vmatprep.mubr.msk.bf16.mxu1 %vm252_vm0, %v5202_v60  ;;  %v5301_v36 = vpack.c.bf16 %v662_v37, %v661_v57  ;;  %v536_v37 = vpop.permute.xlu0 %535 }
  0xf1   : > { %v585_v30 = vsel %vm252_vm0, %v5251_v38, %v536_v37 }
  0xf2   : > { %v877_v33 = vsel %vm252_vm0, %v5301_v36, %v822_v42  ;;  %v762_v42 = vld [vmem:[#allocation2 + $0x15a] sm:$0xff] }
  0xf3   : > { %v5320_v54 = vpack.c.bf16 %v762_v42, %v761_v24 }
  0xf4   : > { %v538_v32 = vpop.permute.xlu0 %537 }
  0xf5   : > { %v589_v37 = vsel %vm252_vm0, %v5263_v55, %v538_v32 }
  0xf7   : > { %1153 = vmatmul.mubr.bf16.gmra.mxu0 %v873_v1  ;;  %1402 = vmatmul.mubr.bf16.gmra.mxu1 %v577_v44  ;;  %v663_v1 = vld [vmem:[#allocation2 + $0x138] sm:$0xff]  ;;  %v664_v44 = vld [vmem:[#allocation2 + $0x140] sm:$0xff] }
  0xf8   : > { %4196 = vmatprep.mubr.msk.bf16.mxu0 %vm252_vm0, %v5295_v3  ;;  %4220 = vmatprep.mubr.msk.bf16.mxu1 %vm252_vm0, %v5223_v62  ;;  %v5313_v57 = vpack.c.bf16 %v664_v44, %v663_v1  ;;  %v826_v44 = vpop.permute.xlu1 %825 }
  0xfa   : > { %v881_v25 = vsel %vm252_vm0, %v5313_v57, %v5187_v46  ;;  %v763_v46 = vld [vmem:[#allocation2 + $0x16a] sm:$0xff] }
  0xfb   : > { %v5332_v42 = vpack.c.bf16 %v764_v29, %v763_v46 }
  0xff   : > { %1161 = vmatmul.mubr.bf16.gmra.mxu0 %v877_v33  ;;  %1410 = vmatmul.mubr.bf16.gmra.mxu1 %v581_v61  ;;  %v665_v33 = vld [vmem:[#allocation2 + $0x150] sm:$0xff]  ;;  %v666_v61 = vld [vmem:[#allocation2 + $0x158] sm:$0xff] }
 0x100   : > { %4197 = vmatprep.mubr.msk.bf16.mxu0 %vm252_vm0, %v5307_v2  ;;  %4221 = vmatprep.mubr.msk.bf16.mxu1 %vm252_vm0, %v5244_v0  ;;  %v5326_v1 = vpack.c.bf16 %v666_v61, %v665_v33  ;;  %v540_v61 = vpop.permute.xlu0 %539 }
 0x101   : > { %v593_v32 = vsel %vm252_vm0, %v5276_v31, %v540_v61 }
 0x102   : > { %v885_v24 = vsel %vm252_vm0, %v5326_v1, %v826_v44  ;;  %v766_v44 = vld [vmem:[#allocation2 + $0x18a] sm:$0xff] }
 0x103   : > { %v5345_v46 = vpack.c.bf16 %v766_v44, %v765_v23 }
 0x104   : > { %v542_v22 = vpop.permute.xlu0 %541 }
 0x105   : > { %v597_v23 = vsel %vm252_vm0, %v5288_v58, %v542_v22 }
 0x107   : > { %1169 = vmatmul.mubr.bf16.gmra.mxu0 %v881_v25  ;;  %1418 = vmatmul.mubr.bf16.gmra.mxu1 %v585_v30  ;;  %v667_v25 = vld [vmem:[#allocation2 + $0x168] sm:$0xff]  ;;  %v668_v30 = vld [vmem:[#allocation2 + $0x170] sm:$0xff] }
 0x108   : > { %4198 = vmatprep.mubr.msk.bf16.mxu0 %vm252_vm0, %v5320_v54  ;;  %4222 = vmatprep.mubr.msk.bf16.mxu1 %vm252_vm0, %v5257_v35  ;;  %v5338_v33 = vpack.c.bf16 %v668_v30, %v667_v25  ;;  %v830_v30 = vpop.permute.xlu1 %829  ;;  %v544_v44 = vpop.permute.xlu0 %543 }
 0x10a   : > { %v889_v29 = vsel %vm252_vm0, %v5338_v33, %v5197_v52 }
 0x10c   : > { %v1644_v61 = vpop.permute.xlu1 %1643 }
 0x10f   : > { %1177 = vmatmul.mubr.bf16.gmra.mxu0 %v885_v24  ;;  %1426 = vmatmul.mubr.bf16.gmra.mxu1 %v589_v37  ;;  %v669_v24 = vld [vmem:[#allocation2 + $0x180] sm:$0xff]  ;;  %v670_v37 = vld [vmem:[#allocation2 + $0x188] sm:$0xff] }
 0x110   : > { %4199 = vmatprep.mubr.msk.bf16.mxu0 %vm252_vm0, %v5332_v42  ;;  %4223 = vmatprep.mubr.msk.bf16.mxu1 %vm252_vm0, %v5270_v28  ;;  %v5351_v25 = vpack.c.bf16 %v670_v37, %v669_v24  ;;  %v1646_v22 = vpop.permute.xlu1 %1645  ;;  %v546_v24 = vpop.permute.xlu0 %545 }
 0x111   : > { %v1681_v37 = vsel %vm252_vm0, %v5152_v4, %v1646_v22 }
 0x112   : > { %v893_v52 = vsel %vm252_vm0, %v5351_v25, %v830_v30 }
 0x114   : > { %v548_v30 = vpop.permute.xlu0 %547 }
 0x117   : > { %1185 = vmatmul.mubr.bf16.gmra.mxu0 %v889_v29  ;;  %1434 = vmatmul.mubr.bf16.gmra.mxu1 %v593_v32  ;;  %v1677_v29 = vsel %vm252_vm0, %v5135_v63, %v1644_v61  ;;  %v601_v32 = vsel %vm252_vm0, %v5301_v36, %v544_v44  ;;  %v1648_v63 = vpop.permute.xlu1 %1647 }
 0x118   : > { %4200 = vmatprep.mubr.msk.bf16.mxu0 %vm252_vm0, %v5345_v46  ;;  %4224 = vmatprep.mubr.msk.bf16.mxu1 %vm252_vm0, %v5282_v48 }
 0x11b   : > { %v1650_v4 = vpop.permute.xlu1 %1649 }
 0x11c   : > { %v1689_v61 = vsel %vm252_vm0, %v5192_v40, %v1650_v4 }
 0x11f   : > { %1193 = vmatmul.mubr.bf16.gmra.mxu0 %v893_v52  ;;  %1442 = vmatmul.mubr.bf16.gmra.mxu1 %v597_v23  ;;  %v1685_v52 = vsel %vm252_vm0, %v5172_v59, %v1648_v63  ;;  %v550_v23 = vpop.permute.xlu0 %549  ;;  %v1652_v59 = vpop.permute.xlu1 %1651 }
 0x120   : > { %4225 = vmatprep.mubr.msk.bf16.mxu1 %vm252_vm0, %v5295_v3  ;;  %4265 = vmatprep.mubr.msk.bf16.mxu0 %vm252_vm0, %v5129_v47  ;;  %v605_v47 = vsel %vm252_vm0, %v5313_v57, %v546_v24  ;;  %v1693_v44 = vsel %vm252_vm0, %v5213_v34, %v1652_v59 }
 0x127   : > { %1450 = vmatmul.mubr.bf16.gmra.mxu1 %v601_v32  ;;  %1917 = vmatmul.mubr.bf16.vlgmr.msra.gmra.mxu0 %v1677_v29 }
 0x128   : > { %4226 = vmatprep.mubr.msk.bf16.mxu1 %vm252_vm0, %v5307_v2  ;;  %4266 = vmatprep.mubr.msk.bf16.mxu0 %vm252_vm0, %v5144_v17  ;;  %v609_v17 = vsel %vm252_vm0, %v5326_v1, %v548_v30 }
 0x12f   : > { %1458 = vmatmul.mubr.bf16.gmra.mxu1 %v605_v47  ;;  %1925 = vmatmul.mubr.bf16.gmra.mxu0 %v1681_v37 }
 0x130   : > { %4227 = vmatprep.mubr.msk.bf16.mxu1 %vm252_vm0, %v5320_v54  ;;  %4267 = vmatprep.mubr.msk.bf16.mxu0 %vm252_vm0, %v5162_v41  ;;  %v613_v41 = vsel %vm252_vm0, %v5338_v33, %v550_v23 }
 0x137   : > { %1466 = vmatmul.mubr.bf16.gmra.mxu1 %v609_v17  ;;  %1933 = vmatmul.mubr.bf16.gmra.mxu0 %v1685_v52  ;;  %v4502_v17 = vld [vmem:[%s6474_s3 + $0x98] sm:$0xff]  }
 0x138   : > { %4228 = vmatprep.mubr.msk.bf16.mxu1 %vm252_vm0, %v5332_v42  ;;  %4268 = vmatprep.mubr.msk.bf16.mxu0 %vm252_vm0, %v5182_v39  ;;  %v1654_v39 = vpop.permute.xlu1 %1653 }
 0x139   : > { %v1697_v29 = vsel %vm252_vm0, %v5233_v43, %v1654_v39  ;;  %2928 = vmatpush1.bf16.msra.mxu1 %v4502_v17 }
 0x13c   : > { %v1656_v40 = vpop.permute.xlu1 %1655 }
 0x13f   : > { %1474 = vmatmul.mubr.bf16.gmra.mxu1 %v613_v41  ;;  %1941 = vmatmul.mubr.bf16.gmra.mxu0 %v1689_v61 }
 0x140   : > { %4269 = vmatprep.mubr.msk.bf16.mxu0 %vm252_vm0, %v5202_v60  ;;  %v1701_v60 = vsel %vm252_vm0, %v5251_v38, %v1656_v40  ;;  %v1658_v34 = vpop.permute.xlu1 %1657 }
 0x144   : > { %v1660_v43 = vpop.permute.xlu1 %1659 }
 0x147   : > { %1949 = vmatmul.mubr.bf16.gmra.mxu0 %v1693_v44  ;;  %v4503_v44 = vld [vmem:[%s6474_s3 + $0x90] sm:$0xff]  }
 0x148   : > { %4270 = vmatprep.mubr.msk.bf16.mxu0 %vm252_vm0, %v5223_v62  ;;  %v1705_v62 = vsel %vm252_vm0, %v5263_v55, %v1658_v34  ;;  %v1662_v22 = vpop.permute.xlu1 %1661 }
 0x149   : > { %v1713_v24 = vsel %vm252_vm0, %v5288_v58, %v1662_v22 }
 0x14c   : > { %v1664_v37 = vpop.permute.xlu1 %1663 }
 0x14d   : > { %v1717_v63 = vsel %vm252_vm0, %v5301_v36, %v1664_v37 }
 0x14f   : > { %1957 = vmatmul.mubr.bf16.gmra.mxu0 %v1697_v29 }
 0x150   : > { %4271 = vmatprep.mubr.msk.bf16.mxu0 %vm252_vm0, %v5244_v0  ;;  %v1709_v0 = vsel %vm252_vm0, %v5276_v31, %v1660_v43  ;;  %v1666_v52 = vpop.permute.xlu1 %1665 }
 0x151   : > { %v1721_v36 = vsel %vm252_vm0, %v5313_v57, %v1666_v52 }
 0x154   : > { %v1668_v59 = vpop.permute.xlu1 %1667 }
 0x155   : > { %v1725_v39 = vsel %vm252_vm0, %v5326_v1, %v1668_v59  ;;  %v1513_v59 = vld [vmem:[#allocation2 + $0x198] sm:$0xff] }
 0x157   : > { %1965 = vmatmul.mubr.bf16.gmra.mxu0 %v1701_v60 }
 0x158   : > { %4272 = vmatprep.mubr.msk.bf16.mxu0 %vm252_vm0, %v5257_v35  ;;  %v1670_v60 = vpop.permute.xlu1 %1669 }
 0x15c   : > { %v1672_v37 = vpop.permute.xlu1 %1671 }
 0x15f   : > { %1973 = vmatmul.mubr.bf16.gmra.mxu0 %v1705_v62 }
 0x160   : > { %4273 = vmatprep.mubr.msk.bf16.mxu0 %vm252_vm0, %v5270_v28 }
 0x167   : > { %v1074_v32 = vpop.f32.mrf.mxu0  ;;  %1981 = vmatmul.mubr.bf16.gmra.mxu0 %v1709_v0 }
 0x168   : > { %4274 = vmatprep.mubr.msk.bf16.mxu0 %vm252_vm0, %v5282_v48 }
 0x169   : > { %v1076_v38 = vpop.f32.mrf.mxu0 }
 0x16a   : > { %v1729_v38 = vsel %vm252_vm0, %v5338_v33, %v1670_v60  ;;  %v1610_v33 = vld [vmem:[#allocation2 + $0x1a2] sm:$0xff] }
 0x16b   : > { %v1077_v35 = vpop.f32.mrf.mxu0 }
 0x16d   : > { %v1079_v55 = vpop.f32.mrf.mxu0 }
 0x16f   : > { %v1082_v47 = vpop.f32.mrf.mxu0  ;;  %1989 = vmatmul.mubr.bf16.gmra.mxu0 %v1713_v24 }
 0x170   : > { %4275 = vmatprep.mubr.msk.bf16.mxu0 %vm252_vm0, %v5295_v3  ;;  %v6516_v3 = vmov 0  }
 0x171   : > { %v1084_v28 = vpop.f32.mrf.mxu0  ;;  %2929 = vmatprep.subr.bf16.mxu1 %v6516_v3 }
 0x172   : > { %2930 = vmatpush1.bf16.msra.mxu1 %v4503_v44  ;;  %v1514_v44 = vld [vmem:[#allocation2 + $0x1a0] sm:$0xff] }
 0x173   : > { %v1085_v31 = vpop.f32.mrf.mxu0  ;;  %2931 = vmatprep.subr.bf16.mxu1 %v6516_v3  ;;  %v1530_v60 = vpack.c.bf16 %v1514_v44, %v1513_v59 }
 0x175   : > { %v1087_v30 = vpop.f32.mrf.mxu0 }
 0x176   : > { %v1609_v30 = vld [vmem:[#allocation2 + $0x19a] sm:$0xff] }
 0x177   : > { %v1090_v48 = vpop.f32.mrf.mxu0  ;;  %1997 = vmatmul.mubr.bf16.gmra.mxu0 %v1717_v63 }
 0x178   : > { %4276 = vmatprep.mubr.msk.bf16.mxu0 %vm252_vm0, %v5307_v2 }
 0x179   : > { %v1092_v58 = vpop.f32.mrf.mxu0 }
 0x17b   : > { %v5423_v4 = vpop.f32.mrf.mxu0 }
 0x17d   : > { %v1095_v23 = vpop.f32.mrf.mxu0 }
 0x17f   : > { %v5427_v41 = vpop.f32.mrf.mxu0  ;;  %2005 = vmatmul.mubr.bf16.gmra.mxu0 %v1721_v36  ;;  %v1733_v36 = vsel %vm252_vm0, %v5351_v25, %v1672_v37 }
 0x180   : > { %4277 = vmatprep.mubr.msk.bf16.mxu0 %vm252_vm0, %v5320_v54 }
 0x181   : > { %v1100_v61 = vpop.f32.mrf.mxu0 }
 0x183   : > { %v5431_v2 = vpop.f32.mrf.mxu0 }
 0x185   : > { %v1103_v29 = vpop.f32.mrf.mxu0 }
 0x186   : > { %v4505_v29 = vld [vmem:[%s6474_s3 + $0x80] sm:$0xff]  }
 0x187   : > { %v5439_v57 = vpop.f32.mrf.mxu0  ;;  %v1355_v40 = vpop.f32.mrf.mxu1  ;;  %2013 = vmatmul.mubr.bf16.gmra.mxu0 %v1725_v39 }
 0x188   : > { %v5441_v54 = vadd.f32 %v1355_v40, %v1074_v32  ;;  %4278 = vmatprep.mubr.msk.bf16.mxu0 %vm252_vm0, %v5332_v42  ;;  %v4504_v42 = vld [vmem:[%s6474_s3 + $0x88] sm:$0xff]  }
 0x189   : > { %v1108_v34 = vpop.f32.mrf.mxu0  ;;  %v1357_v62 = vpop.f32.mrf.mxu1  ;;  %2932 = vmatpush1.bf16.msra.mxu1 %v4504_v42 }
 0x18a   : > { %2933 = vmatprep.subr.bf16.mxu1 %v6516_v3 }
 0x18b   : > { %v5445_v43 = vpop.f32.mrf.mxu0  ;;  %v1358_v0 = vpop.f32.mrf.mxu1 }
 0x18c   : > { %v5447_v1 = vadd.f32 %v1358_v0, %v1077_v35 }
 0x18d   : > { %v1111_v22 = vpop.f32.mrf.mxu0  ;;  %v1360_v24 = vpop.f32.mrf.mxu1  ;;  %2934 = vmatpush1.bf16.msra.mxu1 %v4505_v29 }
 0x18e   : > { %2935 = vmatprep.subr.bf16.mxu1 %v6516_v3 }
 0x18f   : > { %v5451_v55 = vpop.f32.mrf.mxu0  ;;  %v1363_v32 = vpop.f32.mrf.mxu1  ;;  %2021 = vmatmul.mubr.bf16.gmra.mxu0 %v1729_v38 }
 0x190   : > { %v5456_v28 = vadd.f32 %v1363_v32, %v1082_v47  ;;  %4279 = vmatprep.mubr.msk.bf16.mxu0 %vm252_vm0, %v5345_v46  ;;  %v1626_v47 = vpack.c.bf16 %v1610_v33, %v1609_v30 }
 0x191   : > { %v1116_v35 = vpop.f32.mrf.mxu0  ;;  %v1365_v63 = vpop.f32.mrf.mxu1 }
 0x193   : > { %v1117_v17 = vpop.f32.mrf.mxu0  ;;  %v1366_v58 = vpop.f32.mrf.mxu1 }
 0x194   : > { %v5461_v52 = vadd.f32 %v1366_v58, %v1085_v31  ;;  %v1674_v31 = vpop.permute.xlu1 %1673  ;;  %v4506_v58 = vld [vmem:[%s6474_s3 + $0x78] sm:$0xff]  }
 0x195   : > { %v1119_v23 = vpop.f32.mrf.mxu0  ;;  %v1368_v61 = vpop.f32.mrf.mxu1  ;;  %v1737_v22 = vsel %vm252_vm0, %v1530_v60, %v1674_v31  ;;  %2936 = vmatpush1.bf16.msra.mxu1 %v4506_v58 }
 0x196   : > { %2937 = vmatprep.subr.bf16.mxu1 %v6516_v3 }
 0x197   : > { %v1122_v46 = vpop.f32.mrf.mxu0  ;;  %v1371_v39 = vpop.f32.mrf.mxu1  ;;  %2029 = vmatmul.mubr.bf16.gmra.mxu0 %v1733_v36 }
 0x198   : > { %v5468_v40 = vadd.f32 %v1371_v39, %v1090_v48  ;;  %4280 = vmatprep.mubr.msk.bf16.mxu0 %vm252_vm0, %v1626_v47 }
 0x199   : > { %v1124_v34 = vpop.f32.mrf.mxu0  ;;  %v1373_v25 = vpop.f32.mrf.mxu1 }
 0x19b   : > { %v1125_v62 = vpop.f32.mrf.mxu0  ;;  %v1374_v0 = vpop.f32.mrf.mxu1 }
 0x19c   : > { %v5473_v38 = vadd.f32 %v1374_v0, %v5423_v4  ;;  %v4507_v0 = vld [vmem:[%s6474_s3 + $0x70] sm:$0xff]  }
 0x19d   : > { %v1127_v24 = vpop.f32.mrf.mxu0  ;;  %v1376_v32 = vpop.f32.mrf.mxu1  ;;  %2938 = vmatpush1.bf16.msra.mxu1 %v4507_v0 }
 0x19e   : > { %2939 = vmatprep.subr.bf16.mxu1 %v6516_v3 }
 0x19f   : > { %v1130_v48 = vpop.f32.mrf.mxu0  ;;  %v1379_v42 = vpop.f32.mrf.mxu1  ;;  %2037 = vmatmul.mubr.bf16.gmra.mxu0 %v1737_v22 }
 0x1a0   : > { %v5477_v37 = vadd.f32 %v1379_v42, %v5427_v41 }
 0x1a1   : > { %v1132_v35 = vpop.f32.mrf.mxu0  ;;  %v1381_v63 = vpop.f32.mrf.mxu1 }
 0x1a3   : > { %v1133_v30 = vpop.f32.mrf.mxu0  ;;  %v1382_v33 = vpop.f32.mrf.mxu1 }
 0x1a4   : > { %v5483_v4 = vadd.f32 %v1382_v33, %v5431_v2 }
 0x1a5   : > { %v1135_v36 = vpop.f32.mrf.mxu0  ;;  %v1384_v47 = vpop.f32.mrf.mxu1 }
 0x1a6   : > { %v4508_v36 = vld [vmem:[%s6474_s3 + $0x68] sm:$0xff]  }
 0x1a7   : > { %v1138_v23 = vpop.f32.mrf.mxu0  ;;  %v1387_v61 = vpop.f32.mrf.mxu1  ;;  %2940 = vmatpush1.bf16.msra.mxu1 %v4508_v36 }
 0x1a8   : > { %v5487_v41 = vadd.f32 %v1387_v61, %v5439_v57  ;;  %2941 = vmatprep.subr.bf16.mxu1 %v6516_v3 }
 0x1a9   : > { %v1140_v59 = vpop.f32.mrf.mxu0  ;;  %v1389_v44 = vpop.f32.mrf.mxu1 }
 0x1ab   : > { %v1141_v39 = vpop.f32.mrf.mxu0  ;;  %v1390_v29 = vpop.f32.mrf.mxu1 }
 0x1ac   : > { %v5490_v60 = vadd.f32 %v1390_v29, %v5445_v43 }
 0x1ad   : > { %v1143_v31 = vpop.f32.mrf.mxu0  ;;  %v1392_v2 = vpop.f32.mrf.mxu1 }
 0x1af   : > { %v1146_v34 = vpop.f32.mrf.mxu0  ;;  %v1395_v25 = vpop.f32.mrf.mxu1 }
 0x1b0   : > { %v5496_v22 = vadd.f32 %v1395_v25, %v5451_v55 }
 0x1b1   : > { %v1148_v57 = vpop.f32.mrf.mxu0  ;;  %v1397_v24 = vpop.f32.mrf.mxu1 }
 0x1b3   : > { %v1149_v32 = vpop.f32.mrf.mxu0  ;;  %v1398_v42 = vpop.f32.mrf.mxu1 }
 0x1b4   : > { %v5499_v43 = vadd.f32 %v1398_v42, %v1117_v17 }
 0x1b5   : > { %v1151_v35 = vpop.f32.mrf.mxu0  ;;  %v1400_v63 = vpop.f32.mrf.mxu1 }
 0x1b6   : > { %v4509_v35 = vld [vmem:[%s6474_s3 + $0x60] sm:$0xff]  }
 0x1b7   : > { %v1154_v33 = vpop.f32.mrf.mxu0  ;;  %v1403_v58 = vpop.f32.mrf.mxu1  ;;  %2942 = vmatpush1.bf16.msra.mxu1 %v4509_v35 }
 0x1b8   : > { %v5504_v47 = vadd.f32 %v1403_v58, %v1122_v46  ;;  %2951 = vmatprep.subr.bf16.mxu1 %v6516_v3 }
 0x1b9   : > { %v1156_v55 = vpop.f32.mrf.mxu0  ;;  %v1405_v61 = vpop.f32.mrf.mxu1 }
 0x1bb   : > { %v1157_v59 = vpop.f32.mrf.mxu0  ;;  %v1406_v44 = vpop.f32.mrf.mxu1 }
 0x1bc   : > { %v5507_v29 = vadd.f32 %v1406_v44, %v1125_v62 }
 0x1bd   : > { %v1159_v17 = vpop.f32.mrf.mxu0  ;;  %v1408_v31 = vpop.f32.mrf.mxu1 }
 0x1bf   : > { %v1162_v2 = vpop.f32.mrf.mxu0  ;;  %v1411_v25 = vpop.f32.mrf.mxu1 }
 0x1c0   : > { %v5509_v0 = vadd.f32 %v1411_v25, %v1130_v48 }
 0x1c1   : > { %v1164_v57 = vpop.f32.mrf.mxu0  ;;  %v1413_v24 = vpop.f32.mrf.mxu1 }
 0x1c3   : > { %v1165_v42 = vpop.f32.mrf.mxu0  ;;  %v1414_v46 = vpop.f32.mrf.mxu1 }
 0x1c4   : > { %v5514_v63 = vadd.f32 %v1414_v46, %v1133_v30  ;;  %v4510_v46 = vld [vmem:[%s6474_s3 + $0xb8] sm:$0xff]  }
 0x1c5   : > { %v1167_v58 = vpop.f32.mrf.mxu0  ;;  %v1416_v36 = vpop.f32.mrf.mxu1  ;;  %2952 = vmatpush2.bf16.msra.mxu1 %v4510_v46 }
 0x1c6   : > { %2953 = vmatprep.subr.bf16.mxu1 %v6516_v3 }
 0x1c7   : > { %v1170_v62 = vpop.f32.mrf.mxu0  ;;  %v1419_v55 = vpop.f32.mrf.mxu1 }
 0x1c8   : > { %v5517_v61 = vadd.f32 %v1419_v55, %v1138_v23 }
 0x1c9   : > { %v1172_v48 = vpop.f32.mrf.mxu0  ;;  %v1421_v44 = vpop.f32.mrf.mxu1 }
 0x1cb   : > { %v1173_v17 = vpop.f32.mrf.mxu0  ;;  %v1422_v31 = vpop.f32.mrf.mxu1 }
 0x1cc   : > { %v5519_v25 = vadd.f32 %v1422_v31, %v1141_v39 }
 0x1cd   : > { %v1175_v57 = vpop.f32.mrf.mxu0  ;;  %v1424_v24 = vpop.f32.mrf.mxu1 }
 0x1cf   : > { %v5521_v56 = vpop.f32.mrf.mxu0  ;;  %v1427_v30 = vpop.f32.mrf.mxu1 }
 0x1d0   : > { %v5526_v35 = vadd.f32 %v1427_v30, %v1146_v34  ;;  %v4511_v34 = vld [vmem:[%s6474_s3 + $0xb0] sm:$0xff]  }
 0x1d1   : > { %v1180_v58 = vpop.f32.mrf.mxu0  ;;  %v1429_v23 = vpop.f32.mrf.mxu1  ;;  %2954 = vmatpush2.bf16.msra.mxu1 %v4511_v34 }
 0x1d2   : > { %2955 = vmatprep.subr.bf16.mxu1 %v6516_v3 }
 0x1d3   : > { %v5529_v36 = vpop.f32.mrf.mxu0  ;;  %v1430_v39 = vpop.f32.mrf.mxu1 }
 0x1d4   : > { %v5531_v55 = vadd.f32 %v1430_v39, %v1149_v32 }
 0x1d5   : > { %v1183_v48 = vpop.f32.mrf.mxu0  ;;  %v1432_v44 = vpop.f32.mrf.mxu1 }
 0x1d7   : > { %v5533_v31 = vpop.f32.mrf.mxu0  ;;  %v1435_v57 = vpop.f32.mrf.mxu1 }
 0x1d8   : > { %v5538_v24 = vadd.f32 %v1435_v57, %v1154_v33 }
 0x1d9   : > { %v1188_v30 = vpop.f32.mrf.mxu0  ;;  %v1437_v46 = vpop.f32.mrf.mxu1 }
 0x1da   : > { %v4512_v30 = vld [vmem:[%s6474_s3 + $0xa8] sm:$0xff]  }
 0x1db   : > { %v5541_v58 = vpop.f32.mrf.mxu0  ;;  %v1438_v32 = vpop.f32.mrf.mxu1  ;;  %2956 = vmatpush2.bf16.msra.mxu1 %v4512_v30 }
 0x1dc   : > { %v5543_v23 = vadd.f32 %v1438_v32, %v1157_v59  ;;  %2957 = vmatprep.subr.bf16.mxu1 %v6516_v3 }
 0x1dd   : > { %v1191_v39 = vpop.f32.mrf.mxu0  ;;  %v1440_v48 = vpop.f32.mrf.mxu1 }
 0x1df   : > { %v5545_v44 = vpop.f32.mrf.mxu0  ;;  %v1443_v53 = vpop.f32.mrf.mxu1  ;;  %2958 = vmatpush2.bf16.msra.mxu1 %v4513_v51 }
 0x1e0   : > { %v5547_v19 = vadd.f32 %v1443_v53, %v1162_v2  ;;  %3770 = vmatprep.subr.bf16.mxu1 %v6516_v3 }
 0x1e1   : > { %v1196_v18 = vpop.f32.mrf.mxu0  ;;  %v1445_v33 = vpop.f32.mrf.mxu1 }
 0x1e2   : > { %v5560_v18 = vld [vmem:[%s6473_s2] ss:$0 sm:$0xff]  ;;  %v5565_v33 = vstv %s2116_s18 }
 0x1e3   : > { %v5549_v57 = vpop.f32.mrf.mxu0  ;;  %v1446_v34 = vpop.f32.mrf.mxu1 }
 0x1e4   : > { %v5554_v46 = vadd.f32 %v1446_v34, %v1165_v42 }
 0x1e5   : > { %v1199_v59 = vpop.f32.mrf.mxu0  ;;  %v1448_v32 = vpop.f32.mrf.mxu1 }
 0x1e7   : > { %v1451_v39 = vpop.f32.mrf.mxu1  ;;  %v1918_v53 = vpop.f32.mrf.mxu0 }
 0x1e8   : > { %v5562_v2 = vadd.f32 %v1451_v39, %v1170_v62  ;;  %v2045_v48 = vadd.f32 %v1918_v53, %v5441_v54  ;;  %v4514_v53 = vld [vmem:[%s6474_s3 + $0x38] sm:$0xff]  }
 0x1e9   : > { %v1453_v42 = vpop.f32.mrf.mxu1  ;;  %v1920_v34 = vpop.f32.mrf.mxu0  ;;  %3209 = vmatpush1.bf16.msra.mxu0 %v4514_v53 }
 0x1ea   : > { %v2084_v59 = vadd.f32 %v5560_v18, %v2045_v48  ;;  %3210 = vmatprep.subr.bf16.mxu0 %v6516_v3 }
 0x1eb   : > { %v1454_v30 = vpop.f32.mrf.mxu1  ;;  %v1921_v32 = vpop.f32.mrf.mxu0 }
 0x1ec   : > { %vm2117_vm3 = vcmp.ge.f32.partialorder %v2084_v59, 0.0  ;;  %v2150_v50 = vmul.f32 %v5565_v33, %v2084_v59  ;;  %v5572_v16 = vadd.f32 %v1454_v30, %v1173_v17  ;;  %v2046_v62 = vadd.f32 %v1921_v32, %v5447_v1 }
 0x1ed   : > { %v1456_v54 = vpop.f32.mrf.mxu1  ;;  %v1923_v39 = vpop.f32.mrf.mxu0 }
 0x1ee   : > { %v2182_v48 = vsel %vm2117_vm3, %v2084_v59, %v2150_v50  ;;  %v2085_v42 = vadd.f32 %v5560_v18, %v2046_v62 }
 0x1ef   : > { %2214 = vst.msk [vmem:[#allocation2 + $0x19] sm:$0xff] %vm252_vm0, %v2182_v48  ;;  %v1459_v34 = vpop.f32.mrf.mxu1  ;;  %v1926_v15 = vpop.f32.mrf.mxu0 }
 0x1f0   : > { %vm2118_vm4 = vcmp.ge.f32.partialorder %v2085_v42, 0.0  ;;  %v2151_v1 = vmul.f32 %v5565_v33, %v2085_v42  ;;  %v5583_v17 = vadd.f32 %v1459_v34, %v5521_v56  ;;  %v2047_v51 = vadd.f32 %v1926_v15, %v5456_v28 }
 0x1f1   : > { %v1461_v50 = vpop.f32.mrf.mxu1  ;;  %v1928_v59 = vpop.f32.mrf.mxu0 }
 0x1f2   : > { %v2183_v30 = vsel %vm2118_vm4, %v2085_v42, %v2151_v1  ;;  %v2086_v32 = vadd.f32 %v5560_v18, %v2047_v51 }
 0x1f3   : > { %2215 = vst.msk [vmem:[#allocation2 + $0x21] sm:$0xff] %vm252_vm0, %v2183_v30  ;;  %v1462_v62 = vpop.f32.mrf.mxu1  ;;  %v1929_v54 = vpop.f32.mrf.mxu0 }
 0x1f4   : > { %vm2119_vm5 = vcmp.ge.f32.partialorder %v2086_v32, 0.0  ;;  %v2152_v39 = vmul.f32 %v5565_v33, %v2086_v32  ;;  %v5591_v53 = vadd.f32 %v1462_v62, %v5529_v36  ;;  %v2048_v56 = vadd.f32 %v1929_v54, %v5461_v52 }
 0x1f5   : > { %v1464_v15 = vpop.f32.mrf.mxu1  ;;  %v1931_v28 = vpop.f32.mrf.mxu0 }
 0x1f6   : > { %v2184_v48 = vsel %vm2119_vm5, %v2086_v32, %v2152_v39  ;;  %v2087_v34 = vadd.f32 %v5560_v18, %v2048_v56  ;;  %v2574_v52 = vld [vmem:[#allocation2 + $0x19] sm:$0xff] }
 0x1f7   : > { %2216 = vst.msk [vmem:[#allocation2 + $0x31] sm:$0xff] %vm252_vm0, %v2184_v48  ;;  %v1467_v42 = vpop.f32.mrf.mxu1  ;;  %v1934_v1 = vpop.f32.mrf.mxu0 }
 0x1f8   : > { %vm2120_vm6 = vcmp.ge.f32.partialorder %v2087_v34, 0.0  ;;  %v2153_v51 = vmul.f32 %v5565_v33, %v2087_v34  ;;  %v5598_v50 = vadd.f32 %v1467_v42, %v5533_v31  ;;  %v2049_v36 = vadd.f32 %v1934_v1, %v5468_v40  ;;  %v4516_v40 = vld [vmem:[%s6474_s3 + $0x30] sm:$0xff]  }
 0x1f9   : > { %v1469_v59 = vpop.f32.mrf.mxu1  ;;  %v1936_v30 = vpop.f32.mrf.mxu0  ;;  %3211 = vmatpush1.bf16.msra.mxu0 %v4516_v40 }
 0x1fa   : > { %v2185_v62 = vsel %vm2120_vm6, %v2087_v34, %v2153_v51  ;;  %v2088_v32 = vadd.f32 %v5560_v18, %v2049_v36  ;;  %v2575_v54 = vld [vmem:[#allocation2 + $0x21] sm:$0xff]  ;;  %3212 = vmatprep.subr.bf16.mxu0 %v6516_v3 }
 0x1fb   : > { %v2622_v39 = vld [vmem:[#allocation2 + $0x1a] sm:$0xff]  ;;  %v2623_v56 = vld [vmem:[#allocation2 + $0x22] sm:$0xff]  ;;  %2217 = vst.msk [vmem:[#allocation2 + $0x39] sm:$0xff] %vm252_vm0, %v2185_v62  ;;  %v1470_v15 = vpop.f32.mrf.mxu1  ;;  %v1937_v28 = vpop.f32.mrf.mxu0  ;;  %v5603_v48 = vpack.c.bf16 %v2575_v54, %v2574_v52 }
 0x1fc   : > { %v2654_v49 = vpack.c.bf16 %v2623_v56, %v2622_v39  ;;  %vm2121_vm7 = vcmp.ge.f32.partialorder %v2088_v32, 0.0  ;;  %v2154_v31 = vmul.f32 %v5565_v33, %v2088_v32  ;;  %v5610_v34 = vadd.f32 %v1470_v15, %v5541_v58 }
 0x1fd   : > { %v2050_v42 = vadd.f32 %v1937_v28, %v5473_v38  ;;  %v1939_v1 = vpop.f32.mrf.mxu0  ;;  %2686 = vrot.lane.b32.xlu0 %v5603_v48, %s4602_s30  ;;  %v1472_v51 = vpop.f32.mrf.mxu1 }
 0x1fe   : > { %4318 = vmatprep.mubr.msk.bf16.mxu1 %vm252_vm0, %v2654_v49  ;;  %v2186_v36 = vsel %vm2121_vm7, %v2088_v32, %v2154_v31  ;;  %v2576_v56 = vld [vmem:[#allocation2 + $0x31] sm:$0xff] }
 0x1ff   : > { %v2089_v59 = vadd.f32 %v5560_v18, %v2050_v42  ;;  %2218 = vst.msk [vmem:[#allocation2 + $0x49] sm:$0xff] %vm252_vm0, %v2186_v36  ;;  %v1475_v30 = vpop.f32.mrf.mxu1  ;;  %v1942_v52 = vpop.f32.mrf.mxu0 }
 0x200   : > { %v5621_v58 = vadd.f32 %v1475_v30, %v5545_v44  ;;  %v2051_v62 = vadd.f32 %v1942_v52, %v5477_v37  ;;  %v4518_v44 = vld [vmem:[%s6474_s3 + $0x28] sm:$0xff]  }
 0x201   : > { %vm2122_vm8 = vcmp.ge.f32.partialorder %v2089_v59, 0.0  ;;  %v2155_v38 = vmul.f32 %v5565_v33, %v2089_v59  ;;  %v1477_v54 = vpop.f32.mrf.mxu1  ;;  %v1944_v49 = vpop.f32.mrf.mxu0  ;;  %3213 = vmatpush1.bf16.msra.mxu0 %v4518_v44 }
 0x202   : > { %v2090_v39 = vadd.f32 %v5560_v18, %v2051_v62  ;;  %v2577_v15 = vld [vmem:[#allocation2 + $0x39] sm:$0xff]  ;;  %3214 = vmatprep.subr.bf16.mxu0 %v6516_v3 }
 0x203   : > { %v2187_v32 = vsel %vm2122_vm8, %v2089_v59, %v2155_v38  ;;  %v1478_v28 = vpop.f32.mrf.mxu1  ;;  %v1945_v40 = vpop.f32.mrf.mxu0  ;;  %v5626_v31 = vpack.c.bf16 %v2577_v15, %v2576_v56 }
 0x204   : > { %2219 = vst.msk [vmem:[#allocation2 + $0x51] sm:$0xff] %vm252_vm0, %v2187_v32  ;;  %vm2123_vm9 = vcmp.ge.f32.partialorder %v2090_v39, 0.0  ;;  %v2156_v37 = vmul.f32 %v5565_v33, %v2090_v39  ;;  %v5633_v42 = vadd.f32 %v1478_v28, %v5549_v57  ;;  %v2052_v1 = vadd.f32 %v1945_v40, %v5483_v4 }
 0x205   : > { %v1947_v51 = vpop.f32.mrf.mxu0  ;;  %2688 = vrot.lane.b32.xlu1 %v5626_v31, %s4602_s30  ;;  %v1480_v36 = vpop.f32.mrf.mxu1 }
 0x206   : > { %v2188_v59 = vsel %vm2123_vm9, %v2090_v39, %v2156_v37  ;;  %v2091_v30 = vadd.f32 %v5560_v18, %v2052_v1  ;;  %v2578_v49 = vld [vmem:[#allocation2 + $0x49] sm:$0xff]  ;;  %v4520_v37 = vld [vmem:[%s6474_s3 + $0x20] sm:$0xff]  }
 0x207   : > { %2220 = vst.msk [vmem:[#allocation2 + $0x61] sm:$0xff] %vm252_vm0, %v2188_v59  ;;  %v1950_v52 = vpop.f32.mrf.mxu0  ;;  %3215 = vmatpush1.bf16.msra.mxu0 %v4520_v37 }
 0x208   : > { %vm2124_vm10 = vcmp.ge.f32.partialorder %v2091_v30, 0.0  ;;  %v2157_v57 = vmul.f32 %v5565_v33, %v2091_v30  ;;  %v2053_v38 = vadd.f32 %v1950_v52, %v5487_v41  ;;  %3216 = vmatprep.subr.bf16.mxu0 %v6516_v3 }
 0x209   : > { %v1952_v4 = vpop.f32.mrf.mxu0 }
 0x20a   : > { %v2189_v62 = vsel %vm2124_vm10, %v2091_v30, %v2157_v57  ;;  %v2092_v54 = vadd.f32 %v5560_v18, %v2053_v38 }
 0x20b   : > { %v2579_v32 = vld [vmem:[#allocation2 + $0x51] sm:$0xff]  ;;  %2221 = vst.msk [vmem:[#allocation2 + $0x69] sm:$0xff] %vm252_vm0, %v2189_v62  ;;  %v1953_v39 = vpop.f32.mrf.mxu0 }
 0x20c   : > { %v5645_v56 = vpack.c.bf16 %v2579_v32, %v2578_v49  ;;  %vm2125_vm11 = vcmp.ge.f32.partialorder %v2092_v54, 0.0  ;;  %v2158_v15 = vmul.f32 %v5565_v33, %v2092_v54  ;;  %v2054_v28 = vadd.f32 %v1953_v39, %v5490_v60 }
 0x20d   : > { %v1955_v40 = vpop.f32.mrf.mxu0 }
 0x20e   : > { %2690 = vrot.lane.b32.xlu0 %v5645_v56, %s4602_s30  ;;  %v2190_v41 = vsel %vm2125_vm11, %v2092_v54, %v2158_v15  ;;  %v2093_v44 = vadd.f32 %v5560_v18, %v2054_v28  ;;  %v2580_v52 = vld [vmem:[#allocation2 + $0x61] sm:$0xff] }
 0x20f   : > { %2222 = vst.msk [vmem:[#allocation2 + $0x79] sm:$0xff] %vm252_vm0, %v2190_v41  ;;  %v1958_v1 = vpop.f32.mrf.mxu0 }
 0x210   : > { %vm2126_vm12 = vcmp.ge.f32.partialorder %v2093_v44, 0.0  ;;  %v2159_v51 = vmul.f32 %v5565_v33, %v2093_v44  ;;  %v2055_v36 = vadd.f32 %v1958_v1, %v5496_v22 }
 0x211   : > { %v1960_v60 = vpop.f32.mrf.mxu0 }
 0x212   : > { %v2191_v59 = vsel %vm2126_vm12, %v2093_v44, %v2159_v51  ;;  %v2094_v30 = vadd.f32 %v5560_v18, %v2055_v36  ;;  %v2581_v57 = vld [vmem:[#allocation2 + $0x69] sm:$0xff]  ;;  %v4522_v36 = vld [vmem:[%s6474_s3 + $0x18] sm:$0xff]  }
 0x213   : > { %2223 = vst.msk [vmem:[#allocation2 + $0x81] sm:$0xff] %vm252_vm0, %v2191_v59  ;;  %v1961_v38 = vpop.f32.mrf.mxu0  ;;  %v5661_v4 = vpack.c.bf16 %v2581_v57, %v2580_v52  ;;  %3217 = vmatpush1.bf16.msra.mxu0 %v4522_v36 }
 0x214   : > { %vm2127_vm13 = vcmp.ge.f32.partialorder %v2094_v30, 0.0  ;;  %v2160_v62 = vmul.f32 %v5565_v33, %v2094_v30  ;;  %v2056_v54 = vadd.f32 %v1961_v38, %v5499_v43  ;;  %3218 = vmatprep.subr.bf16.mxu0 %v6516_v3 }
 0x215   : > { %v1963_v22 = vpop.f32.mrf.mxu0  ;;  %2692 = vrot.lane.b32.xlu1 %v5661_v4, %s4602_s30 }
 0x216   : > { %v2192_v49 = vsel %vm2127_vm13, %v2094_v30, %v2160_v62  ;;  %v2095_v32 = vadd.f32 %v5560_v18, %v2056_v54  ;;  %v2582_v43 = vld [vmem:[#allocation2 + $0x79] sm:$0xff] }
 0x217   : > { %2224 = vst.msk [vmem:[#allocation2 + $0x91] sm:$0xff] %vm252_vm0, %v2192_v49  ;;  %v1966_v39 = vpop.f32.mrf.mxu0 }
 0x218   : > { %vm2128_vm14 = vcmp.ge.f32.partialorder %v2095_v32, 0.0  ;;  %v2161_v15 = vmul.f32 %v5565_v33, %v2095_v32  ;;  %v2057_v28 = vadd.f32 %v1966_v39, %v5504_v47 }
 0x219   : > { %v1968_v40 = vpop.f32.mrf.mxu0 }
 0x21a   : > { %v2193_v41 = vsel %vm2128_vm14, %v2095_v32, %v2161_v15  ;;  %v2096_v44 = vadd.f32 %v5560_v18, %v2057_v28  ;;  %v2583_v37 = vld [vmem:[#allocation2 + $0x81] sm:$0xff]  ;;  %v4524_v28 = vld [vmem:[%s6474_s3 + $0x10] sm:$0xff]  }
 0x21b   : > { %2225 = vst.msk [vmem:[#allocation2 + $0x99] sm:$0xff] %vm252_vm0, %v2193_v41  ;;  %v1969_v1 = vpop.f32.mrf.mxu0  ;;  %v5673_v51 = vpack.c.bf16 %v2583_v37, %v2582_v43  ;;  %3219 = vmatpush1.bf16.msra.mxu0 %v4524_v28 }
 0x21c   : > { %vm2129_vm15 = vcmp.ge.f32.partialorder %v2096_v44, 0.0  ;;  %v2162_v60 = vmul.f32 %v5565_v33, %v2096_v44  ;;  %v2058_v47 = vadd.f32 %v1969_v1, %v5507_v29  ;;  %3220 = vmatprep.subr.bf16.mxu0 %v6516_v3 }
 0x21d   : > { %v1971_v59 = vpop.f32.mrf.mxu0  ;;  %2694 = vrot.lane.b32.xlu0 %v5673_v51, %s4602_s30 }
 0x21e   : > { %v2194_v30 = vsel %vm2129_vm15, %v2096_v44, %v2162_v60  ;;  %v2097_v52 = vadd.f32 %v5560_v18, %v2058_v47  ;;  %v2584_v49 = vld [vmem:[#allocation2 + $0x91] sm:$0xff] }
 0x21f   : > { %2226 = vst.msk [vmem:[#allocation2 + $0xa9] sm:$0xff] %vm252_vm0, %v2194_v30  ;;  %v1974_v57 = vpop.f32.mrf.mxu0 }
 0x220   : > { %vm2130_vm1 = vcmp.ge.f32.partialorder %v2097_v52, 0.0  ;;  %v2163_v38 = vmul.f32 %v5565_v33, %v2097_v52  ;;  %v2059_v62 = vadd.f32 %v1974_v57, %v5509_v0 }
 0x221   : > { %v1976_v54 = vpop.f32.mrf.mxu0 }
 0x222   : > { %v2195_v29 = vsel %vm2130_vm1, %v2097_v52, %v2163_v38  ;;  %v2098_v22 = vadd.f32 %v5560_v18, %v2059_v62  ;;  %v2585_v32 = vld [vmem:[#allocation2 + $0x99] sm:$0xff] }
 0x223   : > { %2227 = vst.msk [vmem:[#allocation2 + $0xb1] sm:$0xff] %vm252_vm0, %v2195_v29  ;;  %v1977_v39 = vpop.f32.mrf.mxu0  ;;  %v5689_v15 = vpack.c.bf16 %v2585_v32, %v2584_v49 }
 0x224   : > { %vm2131_vm2 = vcmp.ge.f32.partialorder %v2098_v22, 0.0  ;;  %v2164_v40 = vmul.f32 %v5565_v33, %v2098_v22  ;;  %v2060_v0 = vadd.f32 %v1977_v39, %v5514_v63 }
 0x225   : > { %v1979_v41 = vpop.f32.mrf.mxu0  ;;  %2696 = vrot.lane.b32.xlu1 %v5689_v15, %s4602_s30 }
 0x226   : > { %v2196_v44 = vsel %vm2131_vm2, %v2098_v22, %v2164_v40  ;;  %v2099_v43 = vadd.f32 %v5560_v18, %v2060_v0  ;;  %v2586_v59 = vld [vmem:[#allocation2 + $0xa9] sm:$0xff] }
 0x227   : > { %2228 = vst.msk [vmem:[#allocation2 + $0xc1] sm:$0xff] %vm252_vm0, %v2196_v44  ;;  %v1982_v37 = vpop.f32.mrf.mxu0  ;;  %v4526_v22 = vld [vmem:[%s6474_s3 + $0x8] sm:$0xff]  }
 0x228   : > { %vm2132_vm3 = vcmp.ge.f32.partialorder %v2099_v43, 0.0  ;;  %v2165_v1 = vmul.f32 %v5565_v33, %v2099_v43  ;;  %v2061_v36 = vadd.f32 %v1982_v37, %v5517_v61  ;;  %3221 = vmatpush1.bf16.msra.mxu0 %v4526_v22 }
 0x229   : > { %v1984_v60 = vpop.f32.mrf.mxu0  ;;  %3222 = vmatprep.subr.bf16.mxu0 %v6516_v3 }
 0x22a   : > { %v2197_v63 = vsel %vm2132_vm3, %v2099_v43, %v2165_v1  ;;  %v2100_v47 = vadd.f32 %v5560_v18, %v2061_v36  ;;  %v2587_v30 = vld [vmem:[#allocation2 + $0xb1] sm:$0xff] }
 0x22b   : > { %2229 = vst.msk [vmem:[#allocation2 + $0xc9] sm:$0xff] %vm252_vm0, %v2197_v63  ;;  %v1985_v52 = vpop.f32.mrf.mxu0  ;;  %v5705_v57 = vpack.c.bf16 %v2587_v30, %v2586_v59 }
 0x22c   : > { %vm2133_vm4 = vcmp.ge.f32.partialorder %v2100_v47, 0.0  ;;  %v2166_v38 = vmul.f32 %v5565_v33, %v2100_v47  ;;  %v2062_v62 = vadd.f32 %v1985_v52, %v5519_v25 }
 0x22d   : > { %v1987_v54 = vpop.f32.mrf.mxu0  ;;  %2698 = vrot.lane.b32.xlu0 %v5705_v57, %s4602_s30 }
 0x22e   : > { %v2198_v61 = vsel %vm2133_vm4, %v2100_v47, %v2166_v38  ;;  %v2101_v29 = vadd.f32 %v5560_v18, %v2062_v62  ;;  %v2588_v0 = vld [vmem:[#allocation2 + $0xc1] sm:$0xff] }
 0x22f   : > { %2230 = vst.msk [vmem:[#allocation2 + $0xd9] sm:$0xff] %vm252_vm0, %v2198_v61  ;;  %v1990_v49 = vpop.f32.mrf.mxu0 }
 0x230   : > { %vm2134_vm5 = vcmp.ge.f32.partialorder %v2101_v29, 0.0  ;;  %v2167_v32 = vmul.f32 %v5565_v33, %v2101_v29  ;;  %v2063_v39 = vadd.f32 %v1990_v49, %v5526_v35 }
 0x231   : > { %v1992_v25 = vpop.f32.mrf.mxu0 }
 0x232   : > { %v2199_v28 = vsel %vm2134_vm5, %v2101_v29, %v2167_v32  ;;  %v2102_v40 = vadd.f32 %v5560_v18, %v2063_v39  ;;  %v2589_v41 = vld [vmem:[#allocation2 + $0xc9] sm:$0xff]  ;;  %v4528_v29 = vld [vmem:[%s6474_s3] sm:$0xff]  }
 0x233   : > { %2231 = vst.msk [vmem:[#allocation2 + $0xe1] sm:$0xff] %vm252_vm0, %v2199_v28  ;;  %v1993_v44 = vpop.f32.mrf.mxu0  ;;  %v5721_v43 = vpack.c.bf16 %v2589_v41, %v2588_v0  ;;  %3223 = vmatpush1.bf16.msra.mxu0 %v4528_v29 }
 0x234   : > { %vm2135_vm6 = vcmp.ge.f32.partialorder %v2102_v40, 0.0  ;;  %v2168_v37 = vmul.f32 %v5565_v33, %v2102_v40  ;;  %v2064_v1 = vadd.f32 %v1993_v44, %v5531_v55  ;;  %3232 = vmatprep.subr.bf16.mxu0 %v6516_v3 }
 0x235   : > { %v1995_v35 = vpop.f32.mrf.mxu0  ;;  %2700 = vrot.lane.b32.xlu1 %v5721_v43, %s4602_s30 }
 0x236   : > { %v2200_v36 = vsel %vm2135_vm6, %v2102_v40, %v2168_v37  ;;  %v2103_v60 = vadd.f32 %v5560_v18, %v2064_v1  ;;  %v2590_v55 = vld [vmem:[#allocation2 + $0xd9] sm:$0xff] }
 0x237   : > { %2232 = vst.msk [vmem:[#allocation2 + $0xf1] sm:$0xff] %vm252_vm0, %v2200_v36  ;;  %v1998_v63 = vpop.f32.mrf.mxu0  ;;  %v4530_v36 = vld [vmem:[%s6474_s3 + $0x58] sm:$0xff]  }
 0x238   : > { %vm2136_vm7 = vcmp.ge.f32.partialorder %v2103_v60, 0.0  ;;  %v2169_v47 = vmul.f32 %v5565_v33, %v2103_v60  ;;  %v2065_v59 = vadd.f32 %v1998_v63, %v5538_v24  ;;  %3233 = vmatpush2.bf16.msra.mxu0 %v4530_v36 }
 0x239   : > { %v2000_v30 = vpop.f32.mrf.mxu0  ;;  %3234 = vmatprep.subr.bf16.mxu0 %v6516_v3 }
 0x23a   : > { %v2201_v52 = vsel %vm2136_vm7, %v2103_v60, %v2169_v47  ;;  %v2104_v38 = vadd.f32 %v5560_v18, %v2065_v59  ;;  %v2591_v62 = vld [vmem:[#allocation2 + $0xe1] sm:$0xff] }
 0x23b   : > { %2233 = vst.msk [vmem:[#allocation2 + $0xf9] sm:$0xff] %vm252_vm0, %v2201_v52  ;;  %v2001_v54 = vpop.f32.mrf.mxu0  ;;  %v5733_v61 = vpack.c.bf16 %v2591_v62, %v2590_v55 }
 0x23c   : > { %vm2137_vm8 = vcmp.ge.f32.partialorder %v2104_v38, 0.0  ;;  %v2170_v22 = vmul.f32 %v5565_v33, %v2104_v38  ;;  %v2066_v24 = vadd.f32 %v2001_v54, %v5543_v23 }
 0x23d   : > { %v2003_v49 = vpop.f32.mrf.mxu0  ;;  %2702 = vrot.lane.b32.xlu0 %v5733_v61, %s4602_s30 }
 0x23e   : > { %v2202_v32 = vsel %vm2137_vm8, %v2104_v38, %v2170_v22  ;;  %v2105_v39 = vadd.f32 %v5560_v18, %v2066_v24  ;;  %v2592_v44 = vld [vmem:[#allocation2 + $0xf1] sm:$0xff] }
 0x23f   : > { %2234 = vst.msk [vmem:[#allocation2 + $0x109] sm:$0xff] %vm252_vm0, %v2202_v32  ;;  %v2006_v25 = vpop.f32.mrf.mxu0  ;;  %v4532_v49 = vld [vmem:[%s6474_s3 + $0x50] sm:$0xff]  }
 0x240   : > { %vm2138_vm9 = vcmp.ge.f32.partialorder %v2105_v39, 0.0  ;;  %v2171_v28 = vmul.f32 %v5565_v33, %v2105_v39  ;;  %v2067_v40 = vadd.f32 %v2006_v25, %v5547_v19  ;;  %3235 = vmatpush2.bf16.msra.mxu0 %v4532_v49  ;;  %v4534_v49 = vld [vmem:[%s6474_s3 + $0x48] sm:$0xff]  }
 0x241   : > { %v2008_v0 = vpop.f32.mrf.mxu0  ;;  %3236 = vmatprep.subr.bf16.mxu0 %v6516_v3 }
 0x242   : > { %v2203_v23 = vsel %vm2138_vm9, %v2105_v39, %v2171_v28  ;;  %v2106_v41 = vadd.f32 %v5560_v18, %v2067_v40  ;;  %v2593_v37 = vld [vmem:[#allocation2 + $0xf9] sm:$0xff] }
 0x243   : > { %2235 = vst.msk [vmem:[#allocation2 + $0x111] sm:$0xff] %vm252_vm0, %v2203_v23  ;;  %v2009_v1 = vpop.f32.mrf.mxu0  ;;  %v5749_v35 = vpack.c.bf16 %v2593_v37, %v2592_v44 }
 0x244   : > { %vm2139_vm10 = vcmp.ge.f32.partialorder %v2106_v41, 0.0  ;;  %v2172_v60 = vmul.f32 %v5565_v33, %v2106_v41  ;;  %v2068_v19 = vadd.f32 %v2009_v1, %v5554_v46  ;;  %3237 = vmatpush2.bf16.msra.mxu0 %v4534_v49 }
 0x245   : > { %v2011_v63 = vpop.f32.mrf.mxu0  ;;  %2704 = vrot.lane.b32.xlu1 %v5749_v35, %s4602_s30  ;;  %3238 = vmatprep.subr.bf16.mxu0 %v6516_v3 }
 0x246   : > { %v2204_v47 = vsel %vm2139_vm10, %v2106_v41, %v2172_v60  ;;  %v2107_v59 = vadd.f32 %v5560_v18, %v2068_v19  ;;  %v2594_v54 = vld [vmem:[#allocation2 + $0x109] sm:$0xff] }
 0x247   : > { %2236 = vst.msk [vmem:[#allocation2 + $0x121] sm:$0xff] %vm252_vm0, %v2204_v47  ;;  %v2014_v30 = vpop.f32.mrf.mxu0 }
 0x248   : > { %vm2140_vm11 = vcmp.ge.f32.partialorder %v2107_v59, 0.0  ;;  %v2173_v52 = vmul.f32 %v5565_v33, %v2107_v59  ;;  %v2069_v38 = vadd.f32 %v2014_v30, %v5562_v2 }
 0x249   : > { %v2016_v55 = vpop.f32.mrf.mxu0 }
 0x24a   : > { %v2205_v46 = vsel %vm2140_vm11, %v2107_v59, %v2173_v52  ;;  %v2108_v62 = vadd.f32 %v5560_v18, %v2069_v38  ;;  %v2595_v29 = vld [vmem:[#allocation2 + $0x111] sm:$0xff] }
 0x24b   : > { %2237 = vst.msk [vmem:[#allocation2 + $0x129] sm:$0xff] %vm252_vm0, %v2205_v46  ;;  %v2017_v22 = vpop.f32.mrf.mxu0  ;;  %v5765_v24 = vpack.c.bf16 %v2595_v29, %v2594_v54 }
 0x24c   : > { %vm2141_vm12 = vcmp.ge.f32.partialorder %v2108_v62, 0.0  ;;  %v2174_v32 = vmul.f32 %v5565_v33, %v2108_v62  ;;  %v2070_v2 = vadd.f32 %v2017_v22, %v5572_v16 }
 0x24d   : > { %v2019_v39 = vpop.f32.mrf.mxu0  ;;  %2706 = vrot.lane.b32.xlu0 %v5765_v24, %s4602_s30 }
 0x24e   : > { %v2206_v25 = vsel %vm2141_vm12, %v2108_v62, %v2174_v32  ;;  %v2109_v28 = vadd.f32 %v5560_v18, %v2070_v2  ;;  %v2596_v37 = vld [vmem:[#allocation2 + $0x121] sm:$0xff] }
 0x24f   : > { %2238 = vst.msk [vmem:[#allocation2 + $0x139] sm:$0xff] %vm252_vm0, %v2206_v25  ;;  %v2022_v40 = vpop.f32.mrf.mxu0 }
 0x250   : > { %vm2142_vm13 = vcmp.ge.f32.partialorder %v2109_v28, 0.0  ;;  %v2175_v0 = vmul.f32 %v5565_v33, %v2109_v28  ;;  %v2071_v23 = vadd.f32 %v2022_v40, %v5583_v17 }
 0x251   : > { %v2024_v41 = vpop.f32.mrf.mxu0 }
 0x252   : > { %v2207_v16 = vsel %vm2142_vm13, %v2109_v28, %v2175_v0  ;;  %v2110_v44 = vadd.f32 %v5560_v18, %v2071_v23  ;;  %v2597_v1 = vld [vmem:[#allocation2 + $0x129] sm:$0xff] }
 0x253   : > { %2239 = vst.msk [vmem:[#allocation2 + $0x141] sm:$0xff] %vm252_vm0, %v2207_v16  ;;  %v2025_v36 = vpop.f32.mrf.mxu0  ;;  %v5781_v60 = vpack.c.bf16 %v2597_v1, %v2596_v37 }
 0x254   : > { %vm2143_vm14 = vcmp.ge.f32.partialorder %v2110_v44, 0.0  ;;  %v2176_v19 = vmul.f32 %v5565_v33, %v2110_v44  ;;  %v2072_v63 = vadd.f32 %v2025_v36, %v5591_v53  ;;  %v4536_v36 = vld [vmem:[%s6474_s3 + $0x40] sm:$0xff]  }
 0x255   : > { %v2027_v47 = vpop.f32.mrf.mxu0  ;;  %2708 = vrot.lane.b32.xlu1 %v5781_v60, %s4602_s30  ;;  %3239 = vmatpush2.bf16.msra.mxu0 %v4536_v36 }
 0x256   : > { %v2208_v17 = vsel %vm2143_vm14, %v2110_v44, %v2176_v19  ;;  %v2111_v59 = vadd.f32 %v5560_v18, %v2072_v63  ;;  %v2598_v53 = vld [vmem:[#allocation2 + $0x139] sm:$0xff]  ;;  %v2342_v63 = vld [vmem:[#allocation2 + $0x2] sm:$0xff]  ;;  %v2343_v47 = vld [vmem:[#allocation2 + $0xa] sm:$0xff] }
 0x257   : > { %2240 = vst.msk [vmem:[#allocation2 + $0x151] sm:$0xff] %vm252_vm0, %v2208_v17  ;;  %v2030_v30 = vpop.f32.mrf.mxu0 }
 0x258   : > { %vm2144_vm15 = vcmp.ge.f32.partialorder %v2111_v59, 0.0  ;;  %v2177_v52 = vmul.f32 %v5565_v33, %v2111_v59  ;;  %v2073_v38 = vadd.f32 %v2030_v30, %v5598_v50 }
 0x259   : > { %v2032_v55 = vpop.f32.mrf.mxu0 }
 0x25a   : > { %v2209_v46 = vsel %vm2144_vm15, %v2111_v59, %v2177_v52  ;;  %v2112_v62 = vadd.f32 %v5560_v18, %v2073_v38  ;;  %v2599_v54 = vld [vmem:[#allocation2 + $0x141] sm:$0xff]  ;;  %v2374_v59 = vpack.c.bf16 %v2343_v47, %v2342_v63  ;;  %v2531_v47 = vld [vmem:[#allocation2 + $0x50] sm:$0xff] }
 0x25b   : > { %2241 = vst.msk [vmem:[#allocation2 + $0x159] sm:$0xff] %vm252_vm0, %v2209_v46  ;;  %v2033_v29 = vpop.f32.mrf.mxu0  ;;  %v5793_v22 = vpack.c.bf16 %v2599_v54, %v2598_v53  ;;  %v2294_v55 = vld [vmem:[#allocation2 + $0x1] sm:$0xff]  ;;  %v2295_v53 = vld [vmem:[#allocation2 + $0x9] sm:$0xff] }
 0x25c   : > { %vm2145_vm1 = vcmp.ge.f32.partialorder %v2112_v62, 0.0  ;;  %v2178_v32 = vmul.f32 %v5565_v33, %v2112_v62  ;;  %v2074_v50 = vadd.f32 %v2033_v29, %v5610_v34  ;;  %4346 = vmatprep.mubr.msk.bf16.mxu0 %vm252_vm0, %v2374_v59  ;;  %v2527_v29 = vld [vmem:[#allocation2 + $0x20] sm:$0xff]  ;;  %v2326_v49 = vpack.c.bf16 %v2295_v53, %v2294_v55  ;;  %v2530_v59 = vld [vmem:[#allocation2 + $0x48] sm:$0xff]  ;;  %v4523_v55 = vld [vmem:[%s6474_s3 + $0xd8] sm:$0xff]  }
 0x25d   : > { %v2035_v2 = vpop.f32.mrf.mxu0  ;;  %2710 = vrot.lane.b32.xlu0 %v5793_v22, %s4602_s30  ;;  %v2532_v53 = vld [vmem:[#allocation2 + $0x60] sm:$0xff] }
 0x25e   : > { %v2210_v39 = vsel %vm2145_vm1, %v2112_v62, %v2178_v32  ;;  %v2113_v25 = vadd.f32 %v5560_v18, %v2074_v50  ;;  %v2600_v16 = vld [vmem:[#allocation2 + $0x151] sm:$0xff]  ;;  %v2625_v50 = vld [vmem:[#allocation2 + $0x3a] sm:$0xff] }
 0x25f   : > { %2242 = vst.msk [vmem:[#allocation2 + $0x169] sm:$0xff] %vm252_vm0, %v2210_v39  ;;  %v2038_v28 = vpop.f32.mrf.mxu0  ;;  %v2624_v32 = vld [vmem:[#allocation2 + $0x32] sm:$0xff] }
 0x260   : > { %vm2146_vm2 = vcmp.ge.f32.partialorder %v2113_v25, 0.0  ;;  %v2179_v40 = vmul.f32 %v5565_v33, %v2113_v25  ;;  %v2075_v0 = vadd.f32 %v2038_v28, %v5621_v58  ;;  %v5834_v28 = vpack.c.bf16 %v2625_v50, %v2624_v32  ;;  %v4527_v32 = vld [vmem:[%s6474_s3 + $0xc8] sm:$0xff]  }
 0x261   : > { %v2040_v23 = vpop.f32.mrf.mxu0 }
 0x262   : > { %v2211_v34 = vsel %vm2146_vm2, %v2113_v25, %v2179_v40  ;;  %v2114_v41 = vadd.f32 %v5560_v18, %v2075_v0  ;;  %v2601_v44 = vld [vmem:[#allocation2 + $0x159] sm:$0xff]  ;;  %v4517_v23 = vld [vmem:[%s6474_s3 + $0xf0] sm:$0xff]  }
 0x263   : > { %2243 = vst.msk [vmem:[#allocation2 + $0x171] sm:$0xff] %vm252_vm0, %v2211_v34  ;;  %v2041_v37 = vpop.f32.mrf.mxu0  ;;  %v5809_v1 = vpack.c.bf16 %v2601_v44, %v2600_v16  ;;  %v2528_v16 = vld [vmem:[#allocation2 + $0x30] sm:$0xff] }
 0x264   : > { %vm2147_vm3 = vcmp.ge.f32.partialorder %v2114_v41, 0.0  ;;  %v2180_v19 = vmul.f32 %v5565_v33, %v2114_v41  ;;  %v2076_v58 = vadd.f32 %v2041_v37, %v5633_v42  ;;  %v2626_v44 = vld [vmem:[#allocation2 + $0x4a] sm:$0xff]  ;;  %v2627_v37 = vld [vmem:[#allocation2 + $0x52] sm:$0xff] }
 0x265   : > { %v2043_v17 = vpop.f32.mrf.mxu0  ;;  %2712 = vrot.lane.b32.xlu1 %v5809_v1, %s4602_s30 }
 0x266   : > { %v2212_v30 = vsel %vm2147_vm3, %v2114_v41, %v2180_v19  ;;  %v2115_v52 = vadd.f32 %v5560_v18, %v2076_v58  ;;  %v2602_v46 = vld [vmem:[#allocation2 + $0x169] sm:$0xff]  ;;  %v2526_v18 = vld [vmem:[#allocation2 + $0x18] sm:$0xff]  ;;  %v4521_v17 = vld [vmem:[%s6474_s3 + $0xe0] sm:$0xff]  }
 0x267   : > { %2244 = vst.msk [vmem:[#allocation2 + $0x181] sm:$0xff] %vm252_vm0, %v2212_v30  ;;  %v5827_v2 = vpack.c.bf16 %v2527_v29, %v2526_v18  ;;  %v2529_v41 = vld [vmem:[#allocation2 + $0x38] sm:$0xff]  ;;  %v4519_v58 = vld [vmem:[%s6474_s3 + $0xe8] sm:$0xff]  }
 0x268   : > { %vm2148_vm4 = vcmp.ge.f32.partialorder %v2115_v52, 0.0  ;;  %v2181_v38 = vmul.f32 %v5565_v33, %v2115_v52  ;;  %v4515_v33 = vld [vmem:[%s6474_s3 + $0xf8] sm:$0xff]   ;;  %v5849_v36 = vpack.c.bf16 %v2529_v41, %v2528_v16  ;;  %v2628_v30 = vld [vmem:[#allocation2 + $0x62] sm:$0xff] }
 0x269   : > { %v2630_v29 = vld [vmem:[#allocation2 + $0x7a] sm:$0xff]  ;;  %v2631_v18 = vld [vmem:[#allocation2 + $0x82] sm:$0xff] }
 0x26a   : > { %v2213_v42 = vsel %vm2148_vm4, %v2115_v52, %v2181_v38  ;;  %v2603_v62 = vld [vmem:[#allocation2 + $0x171] sm:$0xff] }
 0x26b   : > { %2245 = vst.msk [vmem:[#allocation2 + $0x189] sm:$0xff] %vm252_vm0, %v2213_v42  ;;  %v5823_v54 = vpack.c.bf16 %v2603_v62, %v2602_v46  ;;  %v2629_v52 = vld [vmem:[#allocation2 + $0x6a] sm:$0xff]  ;;  %v4531_v41 = vld [vmem:[%s6474_s3 + $0x118] sm:$0xff]  }
 0x26c   : > { %v5880_v46 = vpack.c.bf16 %v2629_v52, %v2628_v30  ;;  %v4525_v62 = vld [vmem:[%s6474_s3 + $0xd0] sm:$0xff]   ;;  %v4537_v52 = vld [vmem:[%s6474_s3 + $0x100] sm:$0xff]  }
 0x26d   : > { %2714 = vrot.lane.b32.xlu0 %v5823_v54, %s4602_s30 }
 0x26e   : > { %v2604_v40 = vld [vmem:[#allocation2 + $0x181] sm:$0xff] }
 0x26f   : > { %v2687_v39 = vpop.permute.xlu0 %2686 }
 0x270   : > { %v2720_v25 = vsel %vm252_vm0, %v5827_v2, %v2687_v39  ;;  %v4529_v39 = vld [vmem:[%s6474_s3 + $0xc0] sm:$0xff]  }
 0x271   : > { %2960 = vmatmul.mubr.bf16.vlgmr.msra.gmra.mxu1 %v2720_v25  ;;  %2406 = vrot.lane.b32.xlu0 %v2326_v49, %s4602_s30  ;;  %v2534_v25 = vld [vmem:[#allocation2 + $0x78] sm:$0xff] }
 0x272   : > { %3771 = vmatpush1.bf16.msra.mxu1 %v4515_v33  ;;  %4319 = vmatprep.mubr.msk.bf16.mxu1 %vm252_vm0, %v5834_v28  ;;  %v2605_v0 = vld [vmem:[#allocation2 + $0x189] sm:$0xff]  ;;  %v5904_v33 = vpack.c.bf16 %v2631_v18, %v2630_v29  ;;  %v2638_v29 = vld [vmem:[#allocation2 + $0xda] sm:$0xff] }
 0x273   : > { %v5842_v34 = vpack.c.bf16 %v2605_v0, %v2604_v40  ;;  %3772 = vmatprep.subr.bf16.mxu1 %v6516_v3  ;;  %v2632_v40 = vld [vmem:[#allocation2 + $0x92] sm:$0xff]  ;;  %v2633_v0 = vld [vmem:[#allocation2 + $0x9a] sm:$0xff]  ;;  %v2639_v18 = vld [vmem:[#allocation2 + $0xe2] sm:$0xff] }
 0x275   : > { %2408 = vrot.lane.b32.xlu0 %v5603_v48, %s4602_s30  ;;  %2716 = vrot.lane.b32.xlu1 %v5842_v34, %s4602_s30  ;;  %v5857_v48 = vpack.c.bf16 %v2627_v37, %v2626_v44  ;;  %v5928_v44 = vpack.c.bf16 %v2633_v0, %v2632_v40  ;;  %v4533_v37 = vld [vmem:[%s6474_s3 + $0x110] sm:$0xff]   ;;  %v3447_v0 = vld [vmem:[#allocation2 + $0x199] sm:$0xff] }
 0x276   : > { %3773 = vmatpush1.bf16.msra.mxu1 %v4517_v23 }
 0x277   : > { %v2689_v19 = vpop.permute.xlu1 %2688  ;;  %3774 = vmatprep.subr.bf16.mxu1 %v6516_v3 }
 0x278   : > { %v2724_v63 = vsel %vm252_vm0, %v5849_v36, %v2689_v19  ;;  %v2536_v19 = vld [vmem:[#allocation2 + $0x90] sm:$0xff] }
 0x279   : > { %3529 = vrot.lane.b32.xlu1 %v5626_v31, %s4602_s30  ;;  %2968 = vmatmul.mubr.bf16.gmra.mxu1 %v2724_v63  ;;  %v2635_v63 = vld [vmem:[#allocation2 + $0xb2] sm:$0xff] }
 0x27a   : > { %2410 = vrot.lane.b32.xlu0 %v5626_v31, %s4602_s30  ;;  %4320 = vmatprep.mubr.msk.bf16.mxu1 %vm252_vm0, %v5857_v48  ;;  %v5873_v31 = vpack.c.bf16 %v2531_v47, %v2530_v59 }
 0x27b   : > { %3775 = vmatpush1.bf16.msra.mxu1 %v4519_v58  ;;  %v2634_v58 = vld [vmem:[#allocation2 + $0xaa] sm:$0xff] }
 0x27c   : > { %3776 = vmatprep.subr.bf16.mxu1 %v6516_v3  ;;  %v5952_v30 = vpack.c.bf16 %v2635_v63, %v2634_v58  ;;  %v2643_v58 = vld [vmem:[#allocation2 + $0x112] sm:$0xff] }
 0x27d   : > { %3531 = vrot.lane.b32.xlu1 %v5645_v56, %s4602_s30 }
 0x27e   : > { %2412 = vrot.lane.b32.xlu0 %v5645_v56, %s4602_s30  ;;  %v2533_v56 = vld [vmem:[#allocation2 + $0x68] sm:$0xff] }
 0x27f   : > { %3777 = vmatpush1.bf16.msra.mxu1 %v4521_v17  ;;  %v4535_v17 = vld [vmem:[%s6474_s3 + $0x108] sm:$0xff]  }
 0x280   : > { %v2691_v38 = vpop.permute.xlu0 %2690  ;;  %3778 = vmatprep.subr.bf16.mxu1 %v6516_v3 }
 0x281   : > { %v2728_v42 = vsel %vm252_vm0, %v5873_v31, %v2691_v38  ;;  %3533 = vrot.lane.b32.xlu1 %v5661_v4, %s4602_s30  ;;  %v2538_v38 = vld [vmem:[#allocation2 + $0xa8] sm:$0xff] }
 0x282   : > { %2976 = vmatmul.mubr.bf16.gmra.mxu1 %v2728_v42  ;;  %2414 = vrot.lane.b32.xlu0 %v5661_v4, %s4602_s30  ;;  %v5897_v4 = vpack.c.bf16 %v2533_v56, %v2532_v53  ;;  %v2637_v42 = vld [vmem:[#allocation2 + $0xca] sm:$0xff] }
 0x283   : > { %4321 = vmatprep.mubr.msk.bf16.mxu1 %vm252_vm0, %v5880_v46  ;;  %3779 = vmatpush1.bf16.msra.mxu1 %v4523_v55  ;;  %v2636_v55 = vld [vmem:[#allocation2 + $0xc2] sm:$0xff] }
 0x284   : > { %3780 = vmatprep.subr.bf16.mxu1 %v6516_v3  ;;  %v5973_v53 = vpack.c.bf16 %v2637_v42, %v2636_v55 }
 0x285   : > { %3535 = vrot.lane.b32.xlu1 %v5673_v51, %s4602_s30 }
 0x286   : > { %2416 = vrot.lane.b32.xlu0 %v5673_v51, %s4602_s30  ;;  %v2535_v51 = vld [vmem:[#allocation2 + $0x80] sm:$0xff] }
 0x287   : > { %v2693_v49 = vpop.permute.xlu1 %2692  ;;  %3781 = vmatpush1.bf16.msra.mxu1 %v4525_v62 }
 0x288   : > { %v2732_v50 = vsel %vm252_vm0, %v5897_v4, %v2693_v49  ;;  %3782 = vmatprep.subr.bf16.mxu1 %v6516_v3 }
 0x289   : > { %3537 = vrot.lane.b32.xlu1 %v5689_v15, %s4602_s30 }
 0x28a   : > { %2984 = vmatmul.mubr.bf16.gmra.mxu1 %v2732_v50  ;;  %2418 = vrot.lane.b32.xlu0 %v5689_v15, %s4602_s30  ;;  %v5921_v15 = vpack.c.bf16 %v2535_v51, %v2534_v25  ;;  %v2543_v51 = vld [vmem:[#allocation2 + $0xe0] sm:$0xff] }
 0x28b   : > { %4322 = vmatprep.mubr.msk.bf16.mxu1 %vm252_vm0, %v5904_v33  ;;  %3783 = vmatpush1.bf16.msra.mxu1 %v4527_v32  ;;  %v2641_v25 = vld [vmem:[#allocation2 + $0xfa] sm:$0xff] }
 0x28c   : > { %3784 = vmatprep.subr.bf16.mxu1 %v6516_v3 }
 0x28d   : > { %3539 = vrot.lane.b32.xlu1 %v5705_v57, %s4602_s30 }
 0x28e   : > { %2420 = vrot.lane.b32.xlu0 %v5705_v57, %s4602_s30  ;;  %v2537_v57 = vld [vmem:[#allocation2 + $0x98] sm:$0xff] }
 0x28f   : > { %v2695_v23 = vpop.permute.xlu0 %2694  ;;  %3785 = vmatpush1.bf16.msra.mxu1 %v4529_v39  ;;  %v2640_v39 = vld [vmem:[#allocation2 + $0xf2] sm:$0xff] }
 0x290   : > { %v2736_v16 = vsel %vm252_vm0, %v5921_v15, %v2695_v23  ;;  %3794 = vmatprep.subr.bf16.mxu1 %v6516_v3  ;;  %v3448_v23 = vld [vmem:[#allocation2 + $0x1a1] sm:$0xff] }
 0x291   : > { %3541 = vrot.lane.b32.xlu1 %v5721_v43, %s4602_s30 }
 0x292   : > { %2992 = vmatmul.mubr.bf16.gmra.mxu1 %v2736_v16  ;;  %2422 = vrot.lane.b32.xlu0 %v5721_v43, %s4602_s30  ;;  %v5945_v43 = vpack.c.bf16 %v2537_v57, %v2536_v19  ;;  %v6005_v16 = vpack.c.bf16 %v2641_v25, %v2640_v39  ;;  %v3464_v57 = vpack.c.bf16 %v3448_v23, %v3447_v0  ;;  %v2642_v19 = vld [vmem:[#allocation2 + $0x10a] sm:$0xff]  ;;  %v2551_v39 = vld [vmem:[#allocation2 + $0x140] sm:$0xff]  ;;  %v2550_v25 = vld [vmem:[#allocation2 + $0x138] sm:$0xff] }
 0x293   : > { %4323 = vmatprep.mubr.msk.bf16.mxu1 %vm252_vm0, %v5928_v44  ;;  %3795 = vmatpush2.bf16.msra.mxu1 %v4531_v41  ;;  %v2648_v0 = vld [vmem:[#allocation2 + $0x152] sm:$0xff]  ;;  %v2649_v23 = vld [vmem:[#allocation2 + $0x15a] sm:$0xff] }
 0x294   : > { %3796 = vmatprep.subr.bf16.mxu1 %v6516_v3 }
 0x295   : > { %3543 = vrot.lane.b32.xlu1 %v5733_v61, %s4602_s30 }
 0x296   : > { %2424 = vrot.lane.b32.xlu0 %v5733_v61, %s4602_s30  ;;  %v2539_v61 = vld [vmem:[#allocation2 + $0xb0] sm:$0xff] }
 0x297   : > { %v2697_v47 = vpop.permute.xlu1 %2696  ;;  %3797 = vmatpush2.bf16.msra.mxu1 %v4533_v37  ;;  %v2545_v37 = vld [vmem:[#allocation2 + $0xf8] sm:$0xff] }
 0x298   : > { %v2740_v59 = vsel %vm252_vm0, %v5945_v43, %v2697_v47  ;;  %3798 = vmatprep.subr.bf16.mxu1 %v6516_v3 }
 0x299   : > { %3545 = vrot.lane.b32.xlu1 %v5749_v35, %s4602_s30 }
 0x29a   : > { %3000 = vmatmul.mubr.bf16.gmra.mxu1 %v2740_v59  ;;  %2426 = vrot.lane.b32.xlu0 %v5749_v35, %s4602_s30  ;;  %v5969_v35 = vpack.c.bf16 %v2539_v61, %v2538_v38  ;;  %v6016_v59 = vpack.c.bf16 %v2643_v58, %v2642_v19  ;;  %v2546_v61 = vld [vmem:[#allocation2 + $0x108] sm:$0xff]  ;;  %v2552_v19 = vld [vmem:[#allocation2 + $0x150] sm:$0xff] }
 0x29b   : > { %4324 = vmatprep.mubr.msk.bf16.mxu1 %vm252_vm0, %v5952_v30  ;;  %3799 = vmatpush2.bf16.msra.mxu1 %v4535_v17  ;;  %v2645_v38 = vld [vmem:[#allocation2 + $0x12a] sm:$0xff] }
 0x29c   : > { %3800 = vmatprep.subr.bf16.mxu1 %v6516_v3  ;;  %v2541_v3 = vld [vmem:[#allocation2 + $0xc8] sm:$0xff] }
 0x29d   : > { %3547 = vrot.lane.b32.xlu1 %v5765_v24, %s4602_s30  ;;  %v2650_v58 = vld [vmem:[#allocation2 + $0x16a] sm:$0xff] }
 0x29e   : > { %2428 = vrot.lane.b32.xlu0 %v5765_v24, %s4602_s30  ;;  %v2540_v24 = vld [vmem:[#allocation2 + $0xc0] sm:$0xff] }
 0x29f   : > { %v2699_v56 = vpop.permute.xlu0 %2698  ;;  %3801 = vmatpush2.bf16.msra.mxu1 %v4537_v52  ;;  %v5985_v49 = vpack.c.bf16 %v2541_v3, %v2540_v24  ;;  %v2644_v52 = vld [vmem:[#allocation2 + $0x122] sm:$0xff] }
 0x2a0   : > { %v2744_v62 = vsel %vm252_vm0, %v5969_v35, %v2699_v56  ;;  %v2549_v3 = vld [vmem:[#allocation2 + $0x128] sm:$0xff]  ;;  %v2548_v24 = vld [vmem:[#allocation2 + $0x120] sm:$0xff] }
 0x2a1   : > { %3549 = vrot.lane.b32.xlu1 %v5781_v60, %s4602_s30 }
 0x2a2   : > { %3008 = vmatmul.mubr.bf16.gmra.mxu1 %v2744_v62  ;;  %2430 = vrot.lane.b32.xlu0 %v5781_v60, %s4602_s30  ;;  %v5989_v60 = vpack.c.bf16 %v2639_v18, %v2638_v29  ;;  %v6024_v62 = vpack.c.bf16 %v2645_v38, %v2644_v52  ;;  %v2646_v29 = vld [vmem:[#allocation2 + $0x13a] sm:$0xff]  ;;  %v2647_v18 = vld [vmem:[#allocation2 + $0x142] sm:$0xff]  ;;  %v2555_v38 = vld [vmem:[#allocation2 + $0x170] sm:$0xff] }
 0x2a3   : > { %4325 = vmatprep.mubr.msk.bf16.mxu1 %vm252_vm0, %v5973_v53 }
 0x2a5   : > { %3551 = vrot.lane.b32.xlu1 %v5793_v22, %s4602_s30 }
 0x2a6   : > { %2432 = vrot.lane.b32.xlu0 %v5793_v22, %s4602_s30  ;;  %v2542_v22 = vld [vmem:[#allocation2 + $0xd8] sm:$0xff] }
 0x2a7   : > { %v2701_v32 = vpop.permute.xlu1 %2700  ;;  %v6001_v40 = vpack.c.bf16 %v2543_v51, %v2542_v22  ;;  %v6032_v22 = vpack.c.bf16 %v2647_v18, %v2646_v29  ;;  %v2653_v29 = vld [vmem:[#allocation2 + $0x18a] sm:$0xff] }
 0x2a8   : > { %v2748_v50 = vsel %vm252_vm0, %v5985_v49, %v2701_v32  ;;  %v6028_v32 = vpack.c.bf16 %v2549_v3, %v2548_v24  ;;  %v2554_v3 = vld [vmem:[#allocation2 + $0x168] sm:$0xff] }
 0x2a9   : > { %3553 = vrot.lane.b32.xlu1 %v5809_v1, %s4602_s30  ;;  %v2652_v24 = vld [vmem:[#allocation2 + $0x182] sm:$0xff]  ;;  %v6052_v18 = vpack.c.bf16 %v2555_v38, %v2554_v3 }
 0x2aa   : > { %3016 = vmatmul.mubr.bf16.gmra.mxu1 %v2748_v50  ;;  %2434 = vrot.lane.b32.xlu0 %v5809_v1, %s4602_s30 }
 0x2ab   : > { %4326 = vmatprep.mubr.msk.bf16.mxu1 %vm252_vm0, %v5989_v60 }
 0x2ad   : > { %3555 = vrot.lane.b32.xlu1 %v5823_v54, %s4602_s30 }
 0x2ae   : > { %2436 = vrot.lane.b32.xlu0 %v5823_v54, %s4602_s30  ;;  %v2544_v54 = vld [vmem:[#allocation2 + $0xf0] sm:$0xff] }
 0x2af   : > { %v2703_v41 = vpop.permute.xlu0 %2702  ;;  %v6012_v63 = vpack.c.bf16 %v2545_v37, %v2544_v54  ;;  %v6040_v37 = vpack.c.bf16 %v2649_v23, %v2648_v0  ;;  %v2553_v54 = vld [vmem:[#allocation2 + $0x158] sm:$0xff]  ;;  %v2345_v23 = vld [vmem:[#allocation2 + $0x22] sm:$0xff] }
 0x2b0   : > { %v2752_v1 = vsel %vm252_vm0, %v6001_v40, %v2703_v41  ;;  %v6036_v41 = vpack.c.bf16 %v2551_v39, %v2550_v25  ;;  %v6056_v39 = vpack.c.bf16 %v2653_v29, %v2652_v24  ;;  %v2344_v0 = vld [vmem:[#allocation2 + $0x1a] sm:$0xff] }
 0x2b1   : > { %3557 = vrot.lane.b32.xlu1 %v5842_v34, %s4602_s30  ;;  %v2547_v34 = vld [vmem:[#allocation2 + $0x110] sm:$0xff] }
 0x2b2   : > { %3024 = vmatmul.mubr.bf16.gmra.mxu1 %v2752_v1  ;;  %v6020_v55 = vpack.c.bf16 %v2547_v34, %v2546_v61 }
 0x2b3   : > { %4327 = vmatprep.mubr.msk.bf16.mxu1 %vm252_vm0, %v6005_v16 }
 0x2b5   : > { %3559 = vrot.lane.b32.xlu1 %v3464_v57, %s4602_s30  ;;  %s243_s30 = sand.u32 1, %s4590_s24  }
 0x2b6   : > { %s4146_s15 = sshll.u32 %s243_s30, 8  ;;  %s6431_s5 = scalar_lea.sflag [#allocation5], %s243_s30 }
 0x2b7   : > { %v2705_v47 = vpop.permute.xlu1 %2704  ;;  %s6263_s16 = scalar_lea.vmem [#allocation4], %s4146_s15 }
 0x2b8   : > { %v2756_v17 = vsel %vm252_vm0, %v6012_v63, %v2705_v47  ;;  %v2651_v47 = vld [vmem:[#allocation2 + $0x172] sm:$0xff]  ;;  %s4080_s18 = sshll.u32 %s6263_s16, 4  ;;  %s6424_s18 = int_to_ptr.vmem [resolvable:$true] %s4080_s18 }
 0x2b9   : > { %v6048_v52 = vpack.c.bf16 %v2651_v47, %v2650_v58  ;;  %v2556_v58 = vld [vmem:[#allocation2 + $0x180] sm:$0xff]  ;;  %s4538_s22 = scalar_lea.vmem %s6424_s18, 4096  ;;  %p4545_p0 = scmp.lt.s32.totalorder %s6424_s18, %s4543_s29 }
 0x2ba   : > { %3032 = vmatmul.mubr.bf16.gmra.mxu1 %v2756_v17  ;;  %v6044_v17 = vpack.c.bf16 %v2553_v54, %v2552_v19  ;;  %v2375_v19 = vpack.c.bf16 %v2345_v23, %v2344_v0  ;;  %p4539_p11 = scmp.ne.s32.totalorder %s6424_s18, %s4538_s22  ;;  %p4546_p1 = scmp.lt.s32.totalorder %s4544_s10, %s4538_s22 }
 0x2bb   : > { %4328 = vmatprep.mubr.msk.bf16.mxu1 %vm252_vm0, %v6016_v59 }
 0x2bc   : > { %p4540_p12 = pnand %p4539_p11, %p4682_p5  ;;  %p4547_p2 = por %p4546_p1, %p4545_p0 }
 0x2be   : > { %p4541_p13 = pneg %p4540_p12 }
 0x2bf   : > { %v2707_v42 = vpop.permute.xlu0 %2706 }
 0x2c0   : > { %v2760_v56 = vsel %vm252_vm0, %v6020_v55, %v2707_v42  ;;  %v2246_v42 = vld [vmem:[#allocation2] sm:$0xff]  ;;  %p4548_p3 = pnand %p4547_p2, %p4541_p13 }
 0x2c2   : > { %3040 = vmatmul.mubr.bf16.gmra.mxu1 %v2760_v56  ;;  %v2247_v56 = vld [vmem:[#allocation2 + $0x8] sm:$0xff] }
 0x2c3   : > { %4329 = vmatprep.mubr.msk.bf16.mxu1 %vm252_vm0, %v6024_v62  ;;  %v2278_v25 = vpack.c.bf16 %v2247_v56, %v2246_v42 }
 0x2c7   : > { %v2709_v50 = vpop.permute.xlu1 %2708 }
 0x2c8   : > { %v2764_v51 = vsel %vm252_vm0, %v6028_v32, %v2709_v50 }
 0x2ca   : > { %3048 = vmatmul.mubr.bf16.gmra.mxu1 %v2764_v51 }
 0x2cb   : > { %4330 = vmatprep.mubr.msk.bf16.mxu1 %vm252_vm0, %v6032_v22 }
 0x2cf   : > { %v2711_v1 = vpop.permute.xlu0 %2710 }
 0x2d0   : > { %v2768_v57 = vsel %vm252_vm0, %v6036_v41, %v2711_v1 }
 0x2d2   : > { %3056 = vmatmul.mubr.bf16.gmra.mxu1 %v2768_v57  ;;  %v2557_v57 = vld [vmem:[#allocation2 + $0x188] sm:$0xff] }
 0x2d3   : > { %4331 = vmatprep.mubr.msk.bf16.mxu1 %vm252_vm0, %v6040_v37  ;;  %v6062_v47 = vpack.c.bf16 %v2557_v57, %v2556_v58 }
 0x2d7   : > { %v2713_v34 = vpop.permute.xlu1 %2712 }
 0x2d8   : > { %v2772_v61 = vsel %vm252_vm0, %v6044_v17, %v2713_v34 }
 0x2da   : > { %3064 = vmatmul.mubr.bf16.gmra.mxu1 %v2772_v61 }
 0x2db   : > { %4332 = vmatprep.mubr.msk.bf16.mxu1 %vm252_vm0, %v6048_v52 }
 0x2df   : > { %v2715_v50 = vpop.permute.xlu0 %2714 }
 0x2e0   : > { %v2776_v51 = vsel %vm252_vm0, %v6052_v18, %v2715_v50 }
 0x2e2   : > { %3072 = vmatmul.mubr.bf16.gmra.mxu1 %v2776_v51 }
 0x2e3   : > { %4333 = vmatprep.mubr.msk.bf16.mxu1 %vm252_vm0, %v6056_v39  ;;  %v2407_v1 = vpop.permute.xlu0 %2406 }
 0x2e4   : > { %v2440_v54 = vsel %vm252_vm0, %v2278_v25, %v2407_v1 }
 0x2e5   : > { %3241 = vmatmul.mubr.bf16.vlgmr.msra.gmra.mxu0 %v2440_v54 }
 0x2e6   : > { %4347 = vmatprep.mubr.msk.bf16.mxu0 %vm252_vm0, %v2375_v19 }
 0x2e7   : > { %v2717_v34 = vpop.permute.xlu1 %2716  ;;  %v2409_v38 = vpop.permute.xlu0 %2408 }
 0x2e8   : > { %v2780_v61 = vsel %vm252_vm0, %v6062_v47, %v2717_v34  ;;  %v2444_v42 = vsel %vm252_vm0, %v5827_v2, %v2409_v38 }
 0x2ea   : > { %3080 = vmatmul.mubr.bf16.gmra.mxu1 %v2780_v61 }
 0x2eb   : > { %4398 = vmatprep.mubr.msk.bf16.mxu1 %vm252_vm0, %v5834_v28  ;;  %v3530_v56 = vpop.permute.xlu1 %3529 }
 0x2ec   : > { %v3563_v3 = vsel %vm252_vm0, %v5849_v36, %v3530_v56  ;;  %v2411_v24 = vpop.permute.xlu0 %2410 }
 0x2ed   : > { %3249 = vmatmul.mubr.bf16.gmra.mxu0 %v2444_v42  ;;  %v2448_v29 = vsel %vm252_vm0, %v5849_v36, %v2411_v24 }
 0x2ee   : > { %4348 = vmatprep.mubr.msk.bf16.mxu0 %vm252_vm0, %v5834_v28 }
 0x2ef   : > { %v3532_v50 = vpop.permute.xlu1 %3531 }
 0x2f0   : > { %v3567_v2 = vsel %vm252_vm0, %v5873_v31, %v3532_v50  ;;  %v2413_v28 = vpop.permute.xlu0 %2412 }
 0x2f1   : > { %v2452_v51 = vsel %vm252_vm0, %v5873_v31, %v2413_v28 }
 0x2f2   : > { %3803 = vmatmul.mubr.bf16.vlgmr.msra.gmra.mxu1 %v3563_v3 }
 0x2f3   : > { %4399 = vmatprep.mubr.msk.bf16.mxu1 %vm252_vm0, %v5857_v48  ;;  %v3534_v25 = vpop.permute.xlu1 %3533 }
 0x2f4   : > { %v3571_v36 = vsel %vm252_vm0, %v5897_v4, %v3534_v25 }
 0x2f5   : > { %3257 = vmatmul.mubr.bf16.gmra.mxu0 %v2448_v29 }
 0x2f6   : > { %4349 = vmatprep.mubr.msk.bf16.mxu0 %vm252_vm0, %v5857_v48  ;;  %v2415_v48 = vpop.permute.xlu0 %2414 }
 0x2f7   : > { %v2456_v0 = vsel %vm252_vm0, %v5897_v4, %v2415_v48  ;;  %v3536_v23 = vpop.permute.xlu1 %3535 }
 0x2f8   : > { %v3575_v31 = vsel %vm252_vm0, %v5921_v15, %v3536_v23 }
 0x2fa   : > { %3811 = vmatmul.mubr.bf16.gmra.mxu1 %v3567_v2 }
 0x2fb   : > { %4400 = vmatprep.mubr.msk.bf16.mxu1 %vm252_vm0, %v5880_v46  ;;  %v3538_v57 = vpop.permute.xlu1 %3537 }
 0x2fc   : > { %v3579_v4 = vsel %vm252_vm0, %v5945_v43, %v3538_v57 }
 0x2fd   : > { %3265 = vmatmul.mubr.bf16.gmra.mxu0 %v2452_v51 }
 0x2fe   : > { %4350 = vmatprep.mubr.msk.bf16.mxu0 %vm252_vm0, %v5880_v46  ;;  %v2417_v46 = vpop.permute.xlu0 %2416 }
 0x2ff   : > { %v2460_v1 = vsel %vm252_vm0, %v5921_v15, %v2417_v46  ;;  %v3540_v19 = vpop.permute.xlu1 %3539 }
 0x300   : > { %v3583_v15 = vsel %vm252_vm0, %v5969_v35, %v3540_v19 }
 0x302   : > { %3819 = vmatmul.mubr.bf16.gmra.mxu1 %v3571_v36 }
 0x303   : > { %4401 = vmatprep.mubr.msk.bf16.mxu1 %vm252_vm0, %v5904_v33  ;;  %v3542_v34 = vpop.permute.xlu1 %3541 }
 0x305   : > { %3273 = vmatmul.mubr.bf16.gmra.mxu0 %v2456_v0 }
 0x306   : > { %4351 = vmatprep.mubr.msk.bf16.mxu0 %vm252_vm0, %v5904_v33  ;;  %v2419_v33 = vpop.permute.xlu0 %2418 }
 0x307   : > { %v2464_v54 = vsel %vm252_vm0, %v5945_v43, %v2419_v33  ;;  %v3587_v43 = vsel %vm252_vm0, %v5985_v49, %v3542_v34  ;;  %v3544_v38 = vpop.permute.xlu1 %3543 }
 0x30a   : > { %3827 = vmatmul.mubr.bf16.gmra.mxu1 %v3575_v31 }
 0x30b   : > { %4402 = vmatprep.mubr.msk.bf16.mxu1 %vm252_vm0, %v5928_v44  ;;  %v3546_v56 = vpop.permute.xlu1 %3545 }
 0x30d   : > { %3281 = vmatmul.mubr.bf16.gmra.mxu0 %v2460_v1 }
 0x30e   : > { %4352 = vmatprep.mubr.msk.bf16.mxu0 %vm252_vm0, %v5928_v44  ;;  %v2421_v44 = vpop.permute.xlu0 %2420 }
 0x30f   : > { %v2468_v58 = vsel %vm252_vm0, %v5969_v35, %v2421_v44  ;;  %v3591_v35 = vsel %vm252_vm0, %v6001_v40, %v3544_v38 }
 0x312   : > { %3835 = vmatmul.mubr.bf16.gmra.mxu1 %v3579_v4 }
 0x313   : > { %4403 = vmatprep.mubr.msk.bf16.mxu1 %vm252_vm0, %v5952_v30 }
 0x315   : > { %3289 = vmatmul.mubr.bf16.gmra.mxu0 %v2464_v54 }
 0x316   : > { %4353 = vmatprep.mubr.msk.bf16.mxu0 %vm252_vm0, %v5952_v30  ;;  %v2423_v30 = vpop.permute.xlu0 %2422 }
 0x317   : > { %v2472_v61 = vsel %vm252_vm0, %v5985_v49, %v2423_v30  ;;  %v3595_v49 = vsel %vm252_vm0, %v6012_v63, %v3546_v56 }
 0x31a   : > { %3843 = vmatmul.mubr.bf16.gmra.mxu1 %v3583_v15 }
 0x31b   : > { %4404 = vmatprep.mubr.msk.bf16.mxu1 %vm252_vm0, %v5973_v53 }
 0x31d   : > { %3297 = vmatmul.mubr.bf16.gmra.mxu0 %v2468_v58 }
 0x31e   : > { %4354 = vmatprep.mubr.msk.bf16.mxu0 %vm252_vm0, %v5973_v53  ;;  %v2425_v53 = vpop.permute.xlu0 %2424 }
 0x31f   : > { %v2476_v42 = vsel %vm252_vm0, %v6001_v40, %v2425_v53  ;;  %v3548_v40 = vpop.permute.xlu1 %3547 }
 0x320   : > { %v3599_v2 = vsel %vm252_vm0, %v6020_v55, %v3548_v40 }
 0x322   : > { %3851 = vmatmul.mubr.bf16.gmra.mxu1 %v3587_v43 }
 0x323   : > { %4405 = vmatprep.mubr.msk.bf16.mxu1 %vm252_vm0, %v5989_v60  ;;  %v3550_v36 = vpop.permute.xlu1 %3549 }
 0x324   : > { %v3603_v0 = vsel %vm252_vm0, %v6028_v32, %v3550_v36 }
 0x325   : > { %3305 = vmatmul.mubr.bf16.gmra.mxu0 %v2472_v61 }
 0x326   : > { %4355 = vmatprep.mubr.msk.bf16.mxu0 %vm252_vm0, %v5989_v60  ;;  %v2427_v60 = vpop.permute.xlu0 %2426 }
 0x327   : > { %v2480_v29 = vsel %vm252_vm0, %v6012_v63, %v2427_v60  ;;  %v3552_v1 = vpop.permute.xlu1 %3551 }
 0x328   : > { %v3607_v4 = vsel %vm252_vm0, %v6036_v41, %v3552_v1 }
 0x32a   : > { %3859 = vmatmul.mubr.bf16.gmra.mxu1 %v3591_v35  ;;  %v2429_v28 = vpop.permute.xlu0 %2428 }
 0x32b   : > { %4406 = vmatprep.mubr.msk.bf16.mxu1 %vm252_vm0, %v6005_v16  ;;  %v2484_v63 = vsel %vm252_vm0, %v6020_v55, %v2429_v28  ;;  %v3554_v15 = vpop.permute.xlu1 %3553 }
 0x32c   : > { %v3611_v58 = vsel %vm252_vm0, %v6044_v17, %v3554_v15 }
 0x32d   : > { %3313 = vmatmul.mubr.bf16.gmra.mxu0 %v2476_v42 }
 0x32e   : > { %4356 = vmatprep.mubr.msk.bf16.mxu0 %vm252_vm0, %v6005_v16  ;;  %v2431_v23 = vpop.permute.xlu0 %2430 }
 0x32f   : > { %v2488_v55 = vsel %vm252_vm0, %v6028_v32, %v2431_v23  ;;  %v3556_v61 = vpop.permute.xlu1 %3555 }
 0x330   : > { %v3615_v35 = vsel %vm252_vm0, %v6052_v18, %v3556_v61 }
 0x331   : > { %v6138_v3 = vpop.f32.mrf.mxu1 }
 0x332   : > { %3867 = vmatmul.mubr.bf16.gmra.mxu1 %v3595_v49  ;;  %v2433_v33 = vpop.permute.xlu0 %2432  ;;  %v3496_v49 = vld [vmem:[#allocation2 + $0x1a2] sm:$0xff] }
 0x333   : > { %4407 = vmatprep.mubr.msk.bf16.mxu1 %vm252_vm0, %v6016_v59  ;;  %v2963_v24 = vpop.f32.mrf.mxu1  ;;  %v2492_v32 = vsel %vm252_vm0, %v6036_v41, %v2433_v33 }
 0x334   : > { %v3558_v24 = vpop.permute.xlu1 %3557 }
 0x335   : > { %v6144_v50 = vpop.f32.mrf.mxu1  ;;  %3321 = vmatmul.mubr.bf16.gmra.mxu0 %v2480_v29  ;;  %v3619_v28 = vsel %vm252_vm0, %v6062_v47, %v3558_v24 }
 0x336   : > { %4357 = vmatprep.mubr.msk.bf16.mxu0 %vm252_vm0, %v6016_v59  ;;  %v2435_v34 = vpop.permute.xlu0 %2434 }
 0x337   : > { %v2966_v16 = vpop.f32.mrf.mxu1  ;;  %v2496_v41 = vsel %vm252_vm0, %v6044_v17, %v2435_v34  ;;  %v3495_v17 = vld [vmem:[#allocation2 + $0x19a] sm:$0xff] }
 0x338   : > { %v3399_v16 = vld [vmem:[#allocation2 + $0x198] sm:$0xff]  ;;  %v3560_v36 = vpop.permute.xlu1 %3559 }
 0x339   : > { %v6150_v51 = vpop.f32.mrf.mxu1 }
 0x33a   : > { %3875 = vmatmul.mubr.bf16.gmra.mxu1 %v3599_v2  ;;  %v2437_v53 = vpop.permute.xlu0 %2436  ;;  %v3400_v2 = vld [vmem:[#allocation2 + $0x1a0] sm:$0xff] }
 0x33b   : > { %4408 = vmatprep.mubr.msk.bf16.mxu1 %vm252_vm0, %v6024_v62  ;;  %v2971_v25 = vpop.f32.mrf.mxu1  ;;  %v2500_v60 = vsel %vm252_vm0, %v6052_v18, %v2437_v53 }
 0x33d   : > { %v6156_v48 = vpop.f32.mrf.mxu1  ;;  %3329 = vmatmul.mubr.bf16.gmra.mxu0 %v2484_v63 }
 0x33e   : > { %4358 = vmatprep.mubr.msk.bf16.mxu0 %vm252_vm0, %v6024_v62 }
 0x33f   : > { %v2974_v59 = vpop.f32.mrf.mxu1 }
 0x342   : > { %v6162_v31 = vpop.f32.mrf.mxu1  ;;  %3883 = vmatmul.mubr.bf16.gmra.mxu1 %v3603_v0 }
 0x343   : > { %4409 = vmatprep.mubr.msk.bf16.mxu1 %vm252_vm0, %v6032_v22 }
 0x344   : > { %v2979_v46 = vpop.f32.mrf.mxu1 }
 0x345   : > { %3337 = vmatmul.mubr.bf16.gmra.mxu0 %v2488_v55 }
 0x346   : > { %v6168_v57 = vpop.f32.mrf.mxu1  ;;  %4359 = vmatprep.mubr.msk.bf16.mxu0 %vm252_vm0, %v6032_v22 }
 0x348   : > { %v2982_v62 = vpop.f32.mrf.mxu1 }
 0x34a   : > { %v6174_v54 = vpop.f32.mrf.mxu1  ;;  %3891 = vmatmul.mubr.bf16.gmra.mxu1 %v3607_v4 }
 0x34b   : > { %4410 = vmatprep.mubr.msk.bf16.mxu1 %vm252_vm0, %v6040_v37 }
 0x34c   : > { %v2987_v19 = vpop.f32.mrf.mxu1 }
 0x34d   : > { %3345 = vmatmul.mubr.bf16.gmra.mxu0 %v2492_v32 }
 0x34e   : > { %v6180_v44 = vpop.f32.mrf.mxu1  ;;  %4360 = vmatprep.mubr.msk.bf16.mxu0 %vm252_vm0, %v6040_v37 }
 0x350   : > { %v2990_v22 = vpop.f32.mrf.mxu1 }
 0x352   : > { %v6186_v43 = vpop.f32.mrf.mxu1  ;;  %3899 = vmatmul.mubr.bf16.gmra.mxu1 %v3611_v58 }
 0x353   : > { %4411 = vmatprep.mubr.msk.bf16.mxu1 %vm252_vm0, %v6048_v52 }
 0x354   : > { %v2995_v30 = vpop.f32.mrf.mxu1 }
 0x355   : > { %3353 = vmatmul.mubr.bf16.gmra.mxu0 %v2496_v41 }
 0x356   : > { %v6192_v38 = vpop.f32.mrf.mxu1  ;;  %4361 = vmatprep.mubr.msk.bf16.mxu0 %vm252_vm0, %v6048_v52  ;;  %v3512_v52 = vpack.c.bf16 %v3496_v49, %v3495_v17 }
 0x358   : > { %v2998_v37 = vpop.f32.mrf.mxu1 }
 0x35a   : > { %v6198_v42 = vpop.f32.mrf.mxu1  ;;  %3907 = vmatmul.mubr.bf16.gmra.mxu1 %v3615_v35 }
 0x35b   : > { %4412 = vmatprep.mubr.msk.bf16.mxu1 %vm252_vm0, %v6056_v39  ;;  %v3416_v39 = vpack.c.bf16 %v3400_v2, %v3399_v16 }
 0x35c   : > { %v3003_v56 = vpop.f32.mrf.mxu1 }
 0x35d   : > { %3361 = vmatmul.mubr.bf16.gmra.mxu0 %v2500_v60  ;;  %v3623_v59 = vsel %vm252_vm0, %v3416_v39, %v3560_v36 }
 0x35e   : > { %v6204_v29 = vpop.f32.mrf.mxu1 }
 0x360   : > { %v3006_v40 = vpop.f32.mrf.mxu1 }
 0x362   : > { %v6208_v25 = vpop.f32.mrf.mxu1  ;;  %3915 = vmatmul.mubr.bf16.gmra.mxu1 %v3619_v28 }
 0x363   : > { %4413 = vmatprep.mubr.msk.bf16.mxu1 %vm252_vm0, %v3512_v52 }
 0x364   : > { %v3011_v63 = vpop.f32.mrf.mxu1 }
 0x366   : > { %v6211_v18 = vpop.f32.mrf.mxu1 }
 0x368   : > { %v3014_v0 = vpop.f32.mrf.mxu1 }
 0x36a   : > { %v6214_v23 = vpop.f32.mrf.mxu1  ;;  %3923 = vmatmul.mubr.bf16.gmra.mxu1 %v3623_v59 }
 0x36c   : > { %v3019_v46 = vpop.f32.mrf.mxu1 }
 0x36e   : > { %v6216_v55 = vpop.f32.mrf.mxu1 }
 0x370   : > { %v3022_v47 = vpop.f32.mrf.mxu1 }
 0x372   : > { %v6218_v1 = vpop.f32.mrf.mxu1 }
 0x374   : > { %v3027_v62 = vpop.f32.mrf.mxu1 }
 0x376   : > { %v6220_v4 = vpop.f32.mrf.mxu1 }
 0x378   : > { %v3030_v33 = vpop.f32.mrf.mxu1 }
 0x37a   : > { %v6222_v19 = vpop.f32.mrf.mxu1 }
 0x37c   : > { %v3035_v32 = vpop.f32.mrf.mxu1 }
 0x37e   : > { %v6224_v15 = vpop.f32.mrf.mxu1 }
 0x380   : > { %v3038_v22 = vpop.f32.mrf.mxu1 }
 0x382   : > { %v6226_v58 = vpop.f32.mrf.mxu1 }
 0x384   : > { %v3043_v34 = vpop.f32.mrf.mxu1 }
 0x386   : > { %v6228_v30 = vpop.f32.mrf.mxu1 }
 0x388   : > { %v3046_v41 = vpop.f32.mrf.mxu1 }
 0x38a   : > { %v6230_v61 = vpop.f32.mrf.mxu1 }
 0x38c   : > { %v3051_v37 = vpop.f32.mrf.mxu1 }
 0x38e   : > { %v6232_v35 = vpop.f32.mrf.mxu1 }
 0x390   : > { %v3054_v53 = vpop.f32.mrf.mxu1 }
 0x392   : > { %v6234_v56 = vpop.f32.mrf.mxu1 }
 0x394   : > { %v3059_v17 = vpop.f32.mrf.mxu1 }
 0x395   : > { %v6255_v17 = vld [vmem:[%s6475_s4] ss:$0 sm:$0xff] }
 0x396   : > { %v6236_v49 = vpop.f32.mrf.mxu1 }
 0x398   : > { %v3062_v60 = vpop.f32.mrf.mxu1 }
 0x39a   : > { %v6238_v24 = vpop.f32.mrf.mxu1 }
 0x39c   : > { %v3067_v52 = vpop.f32.mrf.mxu1 }
 0x39e   : > { %v6240_v40 = vpop.f32.mrf.mxu1 }
 0x3a0   : > { %v3070_v16 = vpop.f32.mrf.mxu1 }
 0x3a2   : > { %v6242_v2 = vpop.f32.mrf.mxu1 }
 0x3a4   : > { %v3075_v28 = vpop.f32.mrf.mxu1 }
 0x3a5   : > { %v3242_v63 = vpop.f32.mrf.mxu0 }
 0x3a6   : > { %v6244_v39 = vpop.f32.mrf.mxu1  ;;  %v3243_v41 = vadd.f32 %v3242_v63, %v6138_v3 }
 0x3a7   : > { %v3244_v59 = vpop.f32.mrf.mxu0 }
 0x3a8   : > { %v3078_v36 = vpop.f32.mrf.mxu1 }
 0x3a9   : > { %v3245_v46 = vpop.f32.mrf.mxu0 }
 0x3aa   : > { %v6246_v0 = vpop.f32.mrf.mxu1  ;;  %v3246_v28 = vadd.f32 %v3245_v46, %v6144_v50 }
 0x3ab   : > { %v3247_v62 = vpop.f32.mrf.mxu0 }
 0x3ac   : > { %v3083_v47 = vpop.f32.mrf.mxu1 }
 0x3ad   : > { %v3250_v32 = vpop.f32.mrf.mxu0 }
 0x3ae   : > { %v6248_v33 = vpop.f32.mrf.mxu1 }
 0x3af   : > { %v3252_v34 = vpop.f32.mrf.mxu0 }
 0x3b0   : > { %v3086_v22 = vpop.f32.mrf.mxu1  ;;  %v3251_v34 = vadd.f32 %v3250_v32, %v6150_v51 }
 0x3b1   : > { %v3253_v37 = vpop.f32.mrf.mxu0 }
 0x3b2   : > { %v3804_v53 = vpop.f32.mrf.mxu1 }
 0x3b3   : > { %v3931_v60 = vadd.f32 %v3804_v53, %v3243_v41  ;;  %v3255_v52 = vpop.f32.mrf.mxu0 }
 0x3b4   : > { %v3806_v16 = vpop.f32.mrf.mxu1 }
 0x3b5   : > { %v3970_v36 = vadd.f32 %v6255_v17, %v3931_v60  ;;  %v3258_v59 = vpop.f32.mrf.mxu0  ;;  %v3254_v16 = vadd.f32 %v3253_v37, %v6156_v48 }
 0x3b6   : > { %v3807_v47 = vpop.f32.mrf.mxu1 }
 0x3b7   : > { %v4002_v3 = vadd.f32 %v3970_v36, %v4753_v5  ;;  %v3932_v63 = vadd.f32 %v3807_v47, %v3246_v28  ;;  %v3260_v62 = vpop.f32.mrf.mxu0 }
 0x3b8   : > { %v3809_v22 = vpop.f32.mrf.mxu1  ;;  %v3259_v62 = vadd.f32 %v3258_v59, %v6162_v31 }
 0x3b9   : > { %4034 = vst.msk [vmem:[%s6263_s16] sm:$0xff] %vm252_vm0, %v4002_v3  ;;  %v3971_v41 = vadd.f32 %v6255_v17, %v3932_v63  ;;  %v3261_v50 = vpop.f32.mrf.mxu0 }
 0x3ba   : > { %v3812_v46 = vpop.f32.mrf.mxu1 }
 0x3bb   : > { %v4003_v53 = vadd.f32 %v3971_v41, %v4756_v6  ;;  %v3933_v60 = vadd.f32 %v3812_v46, %v3251_v34  ;;  %v3263_v5 = vpop.f32.mrf.mxu0 }
 0x3bc   : > { %v3814_v52 = vpop.f32.mrf.mxu1 }
 0x3bd   : > { %4035 = vst.msk [vmem:[%s6263_s16 + $0x8] sm:$0xff] %vm252_vm0, %v4003_v53  ;;  %v3972_v51 = vadd.f32 %v6255_v17, %v3933_v60  ;;  %v3266_v32 = vpop.f32.mrf.mxu0  ;;  %v3262_v53 = vadd.f32 %v3261_v50, %v6168_v57 }
 0x3be   : > { %v3815_v28 = vpop.f32.mrf.mxu1 }
 0x3bf   : > { %v4004_v36 = vadd.f32 %v3972_v51, %v4759_v7  ;;  %v3934_v47 = vadd.f32 %v3815_v28, %v3254_v16  ;;  %v3268_v3 = vpop.f32.mrf.mxu0  ;;  %v3267_v51 = vadd.f32 %v3266_v32, %v6174_v54 }
 0x3c0   : > { %v3817_v63 = vpop.f32.mrf.mxu1 }
 0x3c1   : > { %4036 = vst.msk [vmem:[%s6263_s16 + $0x10] sm:$0xff] %vm252_vm0, %v4004_v36  ;;  %v3973_v6 = vadd.f32 %v6255_v17, %v3934_v47  ;;  %v3269_v22 = vpop.f32.mrf.mxu0 }
 0x3c2   : > { %v3820_v48 = vpop.f32.mrf.mxu1  ;;  %v3270_v63 = vadd.f32 %v3269_v22, %v6180_v44 }
 0x3c3   : > { %v4005_v37 = vadd.f32 %v3973_v6, %v4766_v8  ;;  %v3935_v34 = vadd.f32 %v3820_v48, %v3259_v62  ;;  %v3271_v41 = vpop.f32.mrf.mxu0 }
 0x3c4   : > { %v3822_v46 = vpop.f32.mrf.mxu1 }
 0x3c5   : > { %4037 = vst.msk [vmem:[%s6263_s16 + $0x18] sm:$0xff] %vm252_vm0, %v4005_v37  ;;  %v3974_v7 = vadd.f32 %v6255_v17, %v3935_v34  ;;  %v3274_v60 = vpop.f32.mrf.mxu0 }
 0x3c6   : > { %v3823_v31 = vpop.f32.mrf.mxu1  ;;  %v3275_v34 = vadd.f32 %v3274_v60, %v6186_v43 }
 0x3c7   : > { %v4006_v59 = vadd.f32 %v3974_v7, %v4789_v13  ;;  %v3936_v5 = vadd.f32 %v3823_v31, %v3262_v53  ;;  %v3276_v52 = vpop.f32.mrf.mxu0 }
 0x3c8   : > { %v3825_v16 = vpop.f32.mrf.mxu1 }
 0x3c9   : > { %4038 = vst.msk [vmem:[%s6263_s16 + $0x20] sm:$0xff] %vm252_vm0, %v4006_v59  ;;  %v3975_v8 = vadd.f32 %v6255_v17, %v3936_v5  ;;  %v3277_v28 = vpop.f32.mrf.mxu0 }
 0x3ca   : > { %v3828_v57 = vpop.f32.mrf.mxu1  ;;  %v3278_v31 = vadd.f32 %v3277_v28, %v6192_v38 }
 0x3cb   : > { %v4007_v50 = vadd.f32 %v3975_v8, %v4797_v14  ;;  %v3937_v36 = vadd.f32 %v3828_v57, %v3267_v51  ;;  %v3279_v47 = vpop.f32.mrf.mxu0 }
 0x3cc   : > { %v3830_v3 = vpop.f32.mrf.mxu1 }
 0x3cd   : > { %4039 = vst.msk [vmem:[%s6263_s16 + $0x28] sm:$0xff] %vm252_vm0, %v4007_v50  ;;  %v3976_v13 = vadd.f32 %v6255_v17, %v3937_v36  ;;  %v3282_v62 = vpop.f32.mrf.mxu0 }
 0x3ce   : > { %v3831_v54 = vpop.f32.mrf.mxu1  ;;  %v3283_v51 = vadd.f32 %v3282_v62, %v6198_v42 }
 0x3cf   : > { %v4008_v32 = vadd.f32 %v3976_v13, %v4823_v20  ;;  %v3938_v6 = vadd.f32 %v3831_v54, %v3270_v63  ;;  %v3284_v48 = vpop.f32.mrf.mxu0 }
 0x3d0   : > { %v3833_v37 = vpop.f32.mrf.mxu1 }
 0x3d1   : > { %4040 = vst.msk [vmem:[%s6263_s16 + $0x30] sm:$0xff] %vm252_vm0, %v4008_v32  ;;  %v3977_v14 = vadd.f32 %v6255_v17, %v3938_v6  ;;  %v3285_v41 = vpop.f32.mrf.mxu0 }
 0x3d2   : > { %v3836_v44 = vpop.f32.mrf.mxu1  ;;  %v3286_v47 = vadd.f32 %v3285_v41, %v6204_v29 }
 0x3d3   : > { %v4009_v22 = vadd.f32 %v3977_v14, %v4830_v21  ;;  %v3939_v46 = vadd.f32 %v3836_v44, %v3275_v34  ;;  %v3287_v53 = vpop.f32.mrf.mxu0 }
 0x3d4   : > { %v3838_v7 = vpop.f32.mrf.mxu1 }
 0x3d5   : > { %4041 = vst.msk [vmem:[%s6263_s16 + $0x38] sm:$0xff] %vm252_vm0, %v4009_v22  ;;  %v3978_v20 = vadd.f32 %v6255_v17, %v3939_v46  ;;  %v3290_v59 = vpop.f32.mrf.mxu0 }
 0x3d6   : > { %v3839_v43 = vpop.f32.mrf.mxu1  ;;  %v3291_v32 = vadd.f32 %v3290_v59, %v6208_v25 }
 0x3d7   : > { %v4010_v60 = vadd.f32 %v3978_v20, %v4771_v9  ;;  %v3940_v5 = vadd.f32 %v3839_v43, %v3278_v31  ;;  %v3292_v52 = vpop.f32.mrf.mxu0 }
 0x3d8   : > { %v3841_v16 = vpop.f32.mrf.mxu1 }
 0x3d9   : > { %4042 = vst.msk [vmem:[%s6263_s16 + $0x40] sm:$0xff] %vm252_vm0, %v4010_v60  ;;  %v3979_v21 = vadd.f32 %v6255_v17, %v3940_v5  ;;  %v3293_v8 = vpop.f32.mrf.mxu0 }
 0x3da   : > { %v3844_v38 = vpop.f32.mrf.mxu1  ;;  %v3294_v41 = vadd.f32 %v3293_v8, %v6211_v18 }
 0x3db   : > { %v4011_v28 = vadd.f32 %v3979_v21, %v4774_v10  ;;  %v3941_v57 = vadd.f32 %v3844_v38, %v3283_v51  ;;  %v3295_v50 = vpop.f32.mrf.mxu0 }
 0x3dc   : > { %v3846_v36 = vpop.f32.mrf.mxu1  ;;  %v6517_v50 = vld [vmem:[#allocation15_spill] sm:$0xff] }
 0x3dd   : > { %4043 = vst.msk [vmem:[%s6263_s16 + $0x48] sm:$0xff] %vm252_vm0, %v4011_v28  ;;  %v3980_v9 = vadd.f32 %v6255_v17, %v3941_v57  ;;  %v3298_v3 = vpop.f32.mrf.mxu0 }
 0x3de   : > { %v3847_v42 = vpop.f32.mrf.mxu1  ;;  %v3299_v31 = vadd.f32 %v3298_v3, %v6214_v23 }
 0x3df   : > { %v4012_v63 = vadd.f32 %v3980_v9, %v4858_v26  ;;  %v3942_v13 = vadd.f32 %v3847_v42, %v3286_v47  ;;  %v3300_v62 = vpop.f32.mrf.mxu0 }
 0x3e0   : > { %v3849_v54 = vpop.f32.mrf.mxu1 }
 0x3e1   : > { %4044 = vst.msk [vmem:[%s6263_s16 + $0x50] sm:$0xff] %vm252_vm0, %v4012_v63  ;;  %v3981_v10 = vadd.f32 %v6255_v17, %v3942_v13  ;;  %v3301_v6 = vpop.f32.mrf.mxu0  ;;  %v6518_v13 = vld [vmem:[#allocation7_spill] sm:$0xff] }
 0x3e2   : > { %v3852_v29 = vpop.f32.mrf.mxu1  ;;  %v3302_v52 = vadd.f32 %v3301_v6, %v6216_v55 }
 0x3e3   : > { %v4013_v48 = vadd.f32 %v3981_v10, %v4861_v27  ;;  %v3943_v37 = vadd.f32 %v3852_v29, %v3291_v32  ;;  %v3303_v34 = vpop.f32.mrf.mxu0 }
 0x3e4   : > { %v3854_v14 = vpop.f32.mrf.mxu1 }
 0x3e5   : > { %4045 = vst.msk [vmem:[%s6263_s16 + $0x58] sm:$0xff] %vm252_vm0, %v4013_v48  ;;  %v3982_v26 = vadd.f32 %v6255_v17, %v3943_v37  ;;  %v3306_v44 = vpop.f32.mrf.mxu0  ;;  %v6519_v37 = vld [vmem:[#allocation8_spill] sm:$0xff] }
 0x3e6   : > { %v3855_v25 = vpop.f32.mrf.mxu1  ;;  %v3307_v28 = vadd.f32 %v3306_v44, %v6218_v1 }
 0x3e7   : > { %v4014_v22 = vadd.f32 %v3982_v26, %v4783_v11  ;;  %v3944_v46 = vadd.f32 %v3855_v25, %v3294_v41  ;;  %v3308_v53 = vpop.f32.mrf.mxu0 }
 0x3e8   : > { %v3857_v7 = vpop.f32.mrf.mxu1 }
 0x3e9   : > { %4046 = vst.msk [vmem:[%s6263_s16 + $0x60] sm:$0xff] %vm252_vm0, %v4014_v22  ;;  %v3983_v27 = vadd.f32 %v6255_v17, %v3944_v46  ;;  %v3309_v20 = vpop.f32.mrf.mxu0  ;;  %v6520_v46 = vld [vmem:[#allocation16_spill] sm:$0xff] }
 0x3ea   : > { %v3860_v18 = vpop.f32.mrf.mxu1  ;;  %v3310_v42 = vadd.f32 %v3309_v20, %v6220_v4 }
 0x3eb   : > { %v4015_v59 = vadd.f32 %v3983_v27, %v4786_v12  ;;  %v3945_v43 = vadd.f32 %v3860_v18, %v3299_v31  ;;  %v3311_v60 = vpop.f32.mrf.mxu0 }
 0x3ec   : > { %v3862_v5 = vpop.f32.mrf.mxu1 }
 0x3ed   : > { %4047 = vst.msk [vmem:[%s6263_s16 + $0x68] sm:$0xff] %vm252_vm0, %v4015_v59  ;;  %v3984_v11 = vadd.f32 %v6255_v17, %v3945_v43  ;;  %v3314_v16 = vpop.f32.mrf.mxu0  ;;  %v6521_v43 = vld [vmem:[#allocation17_spill] sm:$0xff] }
 0x3ee   : > { %v3863_v23 = vpop.f32.mrf.mxu1  ;;  %v3315_v6 = vadd.f32 %v3314_v16, %v6222_v19 }
 0x3ef   : > { %v4016_v51 = vadd.f32 %v3984_v11, %v4884_v45  ;;  %v3946_v21 = vadd.f32 %v3863_v23, %v3302_v52  ;;  %v3316_v8 = vpop.f32.mrf.mxu0 }
 0x3f0   : > { %v3865_v38 = vpop.f32.mrf.mxu1 }
 0x3f1   : > { %4048 = vst.msk [vmem:[%s6263_s16 + $0x70] sm:$0xff] %vm252_vm0, %v4016_v51  ;;  %v3985_v12 = vadd.f32 %v6255_v17, %v3946_v21  ;;  %v3317_v57 = vpop.f32.mrf.mxu0  ;;  %v6522_v21 = vld [vmem:[#allocation9_spill] sm:$0xff] }
 0x3f2   : > { %v3868_v55 = vpop.f32.mrf.mxu1  ;;  %v3318_v44 = vadd.f32 %v3317_v57, %v6224_v15 }
 0x3f3   : > { %v4017_v36 = vadd.f32 %v3985_v12, %v6517_v50  ;;  %v3947_v47 = vadd.f32 %v3868_v55, %v3307_v28  ;;  %v3319_v9 = vpop.f32.mrf.mxu0 }
 0x3f4   : > { %v3870_v3 = vpop.f32.mrf.mxu1 }
 0x3f5   : > { %4049 = vst.msk [vmem:[%s6263_s16 + $0x78] sm:$0xff] %vm252_vm0, %v4017_v36  ;;  %v3986_v45 = vadd.f32 %v6255_v17, %v3947_v47  ;;  %v3322_v63 = vpop.f32.mrf.mxu0  ;;  %v6523_v36 = vld [vmem:[#allocation10_spill] sm:$0xff] }
 0x3f6   : > { %v3871_v1 = vpop.f32.mrf.mxu1  ;;  %v3323_v20 = vadd.f32 %v3322_v63, %v6226_v58 }
 0x3f7   : > { %v4018_v62 = vadd.f32 %v3986_v45, %v6518_v13  ;;  %v3948_v54 = vadd.f32 %v3871_v1, %v3310_v42  ;;  %v3324_v32 = vpop.f32.mrf.mxu0  ;;  %v6524_v13 = vld [vmem:[#allocation18_spill] sm:$0xff] }
 0x3f8   : > { %v3873_v10 = vpop.f32.mrf.mxu1 }
 0x3f9   : > { %4050 = vst.msk [vmem:[%s6263_s16 + $0x80] sm:$0xff] %vm252_vm0, %v4018_v62  ;;  %v3987_v29 = vadd.f32 %v6255_v17, %v3948_v54  ;;  %v3325_v48 = vpop.f32.mrf.mxu0 }
 0x3fa   : > { %v3876_v4 = vpop.f32.mrf.mxu1  ;;  %v3326_v16 = vadd.f32 %v3325_v48, %v6228_v30 }
 0x3fb   : > { %v4019_v34 = vadd.f32 %v3987_v29, %v6519_v37  ;;  %v3949_v14 = vadd.f32 %v3876_v4, %v3315_v6  ;;  %v3327_v41 = vpop.f32.mrf.mxu0  ;;  %v6525_v4 = vld [vmem:[#allocation19_spill] sm:$0xff] }
 0x3fc   : > { %v3878_v26 = vpop.f32.mrf.mxu1 }
 0x3fd   : > { %4051 = vst.msk [vmem:[%s6263_s16 + $0x88] sm:$0xff] %vm252_vm0, %v4019_v34  ;;  %v3988_v25 = vadd.f32 %v6255_v17, %v3949_v14  ;;  %v3330_v22 = vpop.f32.mrf.mxu0 }
 0x3fe   : > { %v3879_v19 = vpop.f32.mrf.mxu1  ;;  %v3331_v57 = vadd.f32 %v3330_v22, %v6230_v61  ;;  %v6526_v22 = vld [vmem:[#allocation11_spill] sm:$0xff] }
 0x3ff   : > { %v4020_v53 = vadd.f32 %v3988_v25, %v6520_v46  ;;  %v3950_v7 = vadd.f32 %v3879_v19, %v3318_v44  ;;  %v3332_v31 = vpop.f32.mrf.mxu0 }
 0x400   : > { %v3881_v27 = vpop.f32.mrf.mxu1 }
 0x401   : > { %4052 = vst.msk [vmem:[%s6263_s16 + $0x90] sm:$0xff] %vm252_vm0, %v4020_v53  ;;  %v3989_v18 = vadd.f32 %v6255_v17, %v3950_v7  ;;  %v3333_v59 = vpop.f32.mrf.mxu0 }
 0x402   : > { %v3884_v15 = vpop.f32.mrf.mxu1  ;;  %v3334_v45 = vadd.f32 %v3333_v59, %v6232_v35 }
 0x403   : > { %v4021_v60 = vadd.f32 %v3989_v18, %v6521_v43  ;;  %v3951_v5 = vadd.f32 %v3884_v15, %v3323_v20  ;;  %v3335_v52 = vpop.f32.mrf.mxu0  ;;  %v6527_v18 = vld [vmem:[#allocation12_spill] sm:$0xff] }
 0x404   : > { %v3886_v11 = vpop.f32.mrf.mxu1 }
 0x405   : > { %4053 = vst.msk [vmem:[%s6263_s16 + $0x98] sm:$0xff] %vm252_vm0, %v4021_v60  ;;  %v3990_v23 = vadd.f32 %v6255_v17, %v3951_v5  ;;  %v3338_v51 = vpop.f32.mrf.mxu0 }
 0x406   : > { %v3887_v58 = vpop.f32.mrf.mxu1  ;;  %v3339_v6 = vadd.f32 %v3338_v51, %v6234_v56 }
 0x407   : > { %v4022_v8 = vadd.f32 %v3990_v23, %v6522_v21  ;;  %v3952_v38 = vadd.f32 %v3887_v58, %v3326_v16  ;;  %v3340_v28 = vpop.f32.mrf.mxu0  ;;  %v6528_v16 = vld [vmem:[#allocation20_spill] sm:$0xff] }
 0x408   : > { %v3889_v12 = vpop.f32.mrf.mxu1 }
 0x409   : > { %4054 = vst.msk [vmem:[%s6263_s16 + $0xa0] sm:$0xff] %vm252_vm0, %v4022_v8  ;;  %v3991_v55 = vadd.f32 %v6255_v17, %v3952_v38  ;;  %v3341_v50 = vpop.f32.mrf.mxu0  ;;  %v6529_v12 = vld [vmem:[#allocation21_spill] sm:$0xff] }
 0x40a   : > { %v3892_v30 = vpop.f32.mrf.mxu1  ;;  %v3342_v26 = vadd.f32 %v3341_v50, %v6236_v49 }
 0x40b   : > { %v4023_v47 = vadd.f32 %v3991_v55, %v6523_v36  ;;  %v3953_v9 = vadd.f32 %v3892_v30, %v3331_v57  ;;  %v3343_v3 = vpop.f32.mrf.mxu0 }
 0x40c   : > { %v3894_v42 = vpop.f32.mrf.mxu1 }
 0x40d   : > { %4055 = vst.msk [vmem:[%s6263_s16 + $0xa8] sm:$0xff] %vm252_vm0, %v4023_v47  ;;  %v3992_v63 = vadd.f32 %v6255_v17, %v3953_v9  ;;  %v3346_v1 = vpop.f32.mrf.mxu0  ;;  %v6530_v9 = vld [vmem:[#allocation13_spill] sm:$0xff] }
 0x40e   : > { %v3895_v61 = vpop.f32.mrf.mxu1  ;;  %v3347_v31 = vadd.f32 %v3346_v1, %v6238_v24 }
 0x40f   : > { %v4024_v62 = vadd.f32 %v3992_v63, %v6524_v13  ;;  %v3954_v54 = vadd.f32 %v3895_v61, %v3334_v45  ;;  %v3348_v32 = vpop.f32.mrf.mxu0 }
 0x410   : > { %v3897_v10 = vpop.f32.mrf.mxu1 }
 0x411   : > { %4056 = vst.msk [vmem:[%s6263_s16 + $0xb0] sm:$0xff] %vm252_vm0, %v4024_v62  ;;  %v3993_v29 = vadd.f32 %v6255_v17, %v3954_v54  ;;  %v3349_v48 = vpop.f32.mrf.mxu0 }
 0x412   : > { %v3900_v35 = vpop.f32.mrf.mxu1  ;;  %v3350_v5 = vadd.f32 %v3349_v48, %v6240_v40 }
 0x413   : > { %v4025_v37 = vadd.f32 %v3993_v29, %v6525_v4  ;;  %v3955_v34 = vadd.f32 %v3900_v35, %v3339_v6  ;;  %v3351_v14 = vpop.f32.mrf.mxu0  ;;  %v6532_v6 = vld [vmem:[#allocation22_spill] sm:$0xff] }
 0x414   : > { %v3902_v41 = vpop.f32.mrf.mxu1 }
 0x415   : > { %4057 = vst.msk [vmem:[%s6263_s16 + $0xb8] sm:$0xff] %vm252_vm0, %v4025_v37  ;;  %v3994_v44 = vadd.f32 %v6255_v17, %v3955_v34  ;;  %v3354_v25 = vpop.f32.mrf.mxu0 }
 0x416   : > { %v3903_v56 = vpop.f32.mrf.mxu1  ;;  %v3355_v8 = vadd.f32 %v3354_v25, %v6242_v2 }
 0x417   : > { %v4026_v19 = vadd.f32 %v3994_v44, %v6526_v22  ;;  %v3956_v46 = vadd.f32 %v3903_v56, %v3342_v26  ;;  %v3356_v53 = vpop.f32.mrf.mxu0 }
 0x418   : > { %v3905_v7 = vpop.f32.mrf.mxu1 }
 0x419   : > { %4058 = vst.msk [vmem:[%s6263_s16 + $0xc0] sm:$0xff] %vm252_vm0, %v4026_v19  ;;  %v3995_v27 = vadd.f32 %v6255_v17, %v3956_v46  ;;  %v3357_v20 = vpop.f32.mrf.mxu0 }
 0x41a   : > { %v3908_v49 = vpop.f32.mrf.mxu1  ;;  %v3358_v36 = vadd.f32 %v3357_v20, %v6244_v39  ;;  %v6531_v39 = vld [vmem:[#allocation14_spill] sm:$0xff] }
 0x41b   : > { %v4027_v59 = vadd.f32 %v3995_v27, %v6527_v18  ;;  %v3957_v15 = vadd.f32 %v3908_v49, %v3347_v31  ;;  %v3359_v43 = vpop.f32.mrf.mxu0 }
 0x41c   : > { %v3910_v60 = vpop.f32.mrf.mxu1 }
 0x41d   : > { %4059 = vst.msk [vmem:[%s6263_s16 + $0xc8] sm:$0xff] %vm252_vm0, %v4027_v59  ;;  %v3996_v52 = vadd.f32 %v6255_v17, %v3957_v15  ;;  %v3362_v11 = vpop.f32.mrf.mxu0 }
 0x41e   : > { %v3911_v24 = vpop.f32.mrf.mxu1  ;;  %v3363_v63 = vadd.f32 %v3362_v11, %v6246_v0 }
 0x41f   : > { %v4028_v23 = vadd.f32 %v3996_v52, %v6528_v16  ;;  %v3958_v51 = vadd.f32 %v3911_v24, %v3350_v5  ;;  %v3364_v58 = vpop.f32.mrf.mxu0 }
 0x420   : > { %v3913_v21 = vpop.f32.mrf.mxu1 }
 0x421   : > { %4060 = vst.msk [vmem:[%s6263_s16 + $0xd0] sm:$0xff] %vm252_vm0, %v4028_v23  ;;  %v3997_v38 = vadd.f32 %v6255_v17, %v3958_v51  ;;  %v3365_v40 = vpop.f32.mrf.mxu0 }
 0x422   : > { %v3916_v28 = vpop.f32.mrf.mxu1  ;;  %v3366_v32 = vadd.f32 %v3365_v40, %v6248_v33  ;;  %v6533_v33 = vld [vmem:[#allocation23_spill] sm:$0xff] }
 0x423   : > { %v4029_v57 = vadd.f32 %v3997_v38, %v6529_v12  ;;  %v3959_v55 = vadd.f32 %v3916_v28, %v3355_v8  ;;  %v3367_v50 = vpop.f32.mrf.mxu0 }
 0x424   : > { %v3918_v30 = vpop.f32.mrf.mxu1 }
 0x425   : > { %4061 = vst.msk [vmem:[%s6263_s16 + $0xd8] sm:$0xff] %vm252_vm0, %v4029_v57  ;;  %v3998_v47 = vadd.f32 %v6255_v17, %v3959_v55 }
 0x426   : > { %v3919_v2 = vpop.f32.mrf.mxu1 }
 0x427   : > { %v4030_v3 = vadd.f32 %v3998_v47, %v6530_v9  ;;  %v3960_v42 = vadd.f32 %v3919_v2, %v3358_v36 }
 0x428   : > { %v3921_v45 = vpop.f32.mrf.mxu1 }
 0x429   : > { %4062 = vst.msk [vmem:[%s6263_s16 + $0xe0] sm:$0xff] %vm252_vm0, %v4030_v3  ;;  %v3999_v1 = vadd.f32 %v6255_v17, %v3960_v42 }
 0x42a   : > { %v3924_v61 = vpop.f32.mrf.mxu1 }
 0x42b   : > { %v4031_v13 = vadd.f32 %v3999_v1, %v6531_v39  ;;  %v3961_v62 = vadd.f32 %v3924_v61, %v3363_v63 }
 0x42c   : > { %v3926_v54 = vpop.f32.mrf.mxu1 }
 0x42d   : > { %4063 = vst.msk [vmem:[%s6263_s16 + $0xe8] sm:$0xff] %vm252_vm0, %v4031_v13  ;;  %v4000_v10 = vadd.f32 %v6255_v17, %v3961_v62 }
 0x42e   : > { %v3927_v0 = vpop.f32.mrf.mxu1 }
 0x42f   : > { %v4032_v29 = vadd.f32 %v4000_v10, %v6532_v6  ;;  %v3962_v48 = vadd.f32 %v3927_v0, %v3366_v32 }
 0x430   : > { %v3929_v35 = vpop.f32.mrf.mxu1 }
 0x431   : > { %4064 = vst.msk [vmem:[%s6263_s16 + $0xf0] sm:$0xff] %vm252_vm0, %v4032_v29  ;;  %v4001_v4 = vadd.f32 %v6255_v17, %v3962_v48 }
 0x433   : > { %v4033_v37 = vadd.f32 %v4001_v4, %v6533_v33 }
 0x435   : > { %4065 = vst.msk [vmem:[%s6263_s16 + $0xf8] sm:$0xff] %vm252_vm0, %v4033_v37 }
 0x436   : > { %4551 = shalt.err (!%p4548_p3)
}
 0x437   : > { %s4552_s11 = scalar_lea.hbm %s6422_s21, 4096  ;;  %s4556_s13 = scalar_lea.hbm %s6477_s6, 8192 }
 0x438   : > { %p4553_p4 = scmp.ne.s32.totalorder %s6422_s21, %s4552_s11  ;;  %p4557_p9 = scmp.lt.s32.totalorder %s6422_s21, %s6477_s6 }
 0x439   : > { %p4558_p10 = scmp.lt.s32.totalorder %s4556_s13, %s4552_s11 }
 0x43a   : > { %p4554_p7 = pnand %p4553_p4, %p4682_p5 }
 0x43b   : > { %p4559_p11 = por %p4558_p10, %p4557_p9 }
 0x43c   : > { %p4555_p8 = pneg %p4554_p7 }
 0x43e   : > { %p4560_p12 = pnand %p4559_p11, %p4555_p8 }
 0x440   : > { %4563 = shalt.err (!%p4560_p12)
}
 0x441   : > { %s4604_s16 = smov 128   ;;  %s4605_s17 = smov 8  }
 0x442   : > { %4422 = dma.vmem_to_hbm [thread:$0]  (%p4682_p5), %s6424_s18, 4096, %s6422_s21, %s6431_s5, %s4604_s16, %s4604_s16, %s4605_s17  }
 0x443 PF: > { %p4428_p13 = scmp.ge.s32.totalorder %s4598_s26, 2  ;;  %s4095_s19 = sand.u32 1, %s4586_s23  }
 0x444   : > { %s4096_s20 = scalar_lea.sflag [#allocation5], %s4095_s19 }
 0x445   : > { %p4425_p0 = pnand %p4428_p13, %p4686_p6 }
 0x447   : > { %p4426_p1 = pneg %p4425_p0 }
 0x449   : > { %4581 = dma.done.wait (%p4426_p1), %s4096_s20, 4096  }
 0x44a   : > { %4583 = vsyncadd (%p4426_p1), %s4096_s20, 4294963200  ;;  %p17_p2 = scmp.ge.s32.totalorder %s4669_s28, 4   ;;  %s6534_s23 = smov %s4590_s24 }
 0x44b   : > { %s6535_s24 = smov %s4594_s25  ;;  %s6536_s25 = smov %s4680_s7 }
 0x44c   : > { %s6537_s26 = smov %s4669_s28  ;;  %19 = sbr.rel (!%p17_p2) target bundleno = 5 (0x5), region = 86 }
 0x451   :  { %4101 = vsyncpa [#allocation5], 1 }
 0x452   :  { %4103 = vsyncpa [#allocation5 + $0x1], 1 }

</bundles_post_ra>
